<compile_context>
chip_gen: v5e
topology: v5e:2x2
jax: 0.10.0
libtpu: 0.0.40
codegen_flags: <defaults>
</compile_context>

<pallas_src>
import functools

import numpy as np
import jax
import jax.numpy as jnp
from jax import lax
from jax.experimental import pallas as pl
from jax.experimental.pallas import tpu as pltpu


# --------------------------------------------------------------------------
# Glue helpers (parameter / transform setup)
# --------------------------------------------------------------------------
def computeExtrinsicMatrix(translation, rotation):
    """Build a 3x4 extrinsic matrix [R | t] from Euler angles (roll,pitch,yaw)."""
    roll, pitch, yaw = [float(r) for r in rotation]
    cr, sr = np.cos(roll), np.sin(roll)
    cp, sp = np.cos(pitch), np.sin(pitch)
    cy, sy = np.cos(yaw), np.sin(yaw)
    Rx = np.array([[1, 0, 0], [0, cr, -sr], [0, sr, cr]])
    Ry = np.array([[cp, 0, sp], [0, 1, 0], [-sp, 0, cp]])
    Rz = np.array([[cy, -sy, 0], [sy, cy, 0], [0, 0, 1]])
    R = Rz @ Ry @ Rx
    t = np.asarray(translation, dtype=np.float64).reshape(3, 1)
    return np.concatenate([R, t], axis=1).astype(np.float32)  # (3, 4)


def _round_up(x, m):
    return ((x + m - 1) // m) * m


def _pick_tile(total, preferred):
    """Pick the tile first (multiple of 128, <= preferred), then pad up to it."""
    tile = max(128, min(preferred, _round_up(total, 128)))
    return tile, _round_up(total, tile)


def _fold_transforms(T, fv_extrinsics, batch_size):
    """point' = T @ (T_ext @ point)  ==  (T @ T_ext) @ point, folded per batch."""
    hom_row = jnp.broadcast_to(
        jnp.array([[0.0, 0.0, 0.0, 1.0]], jnp.float32), (batch_size, 1, 4))
    T_full = jnp.concatenate([T.astype(jnp.float32), hom_row], axis=1)       # (B,4,4)
    T_ext = computeExtrinsicMatrix(fv_extrinsics['translation'],
                                   fv_extrinsics['rotation'])                # (3,4)
    T_ext_b = jnp.broadcast_to(jnp.asarray(T_ext)[None], (batch_size, 3, 4))
    T_ext_full = jnp.concatenate([T_ext_b, hom_row], axis=1)                 # (B,4,4)
    return jnp.einsum('bij,bjk->bik', T_full, T_ext_full)                    # (B,4,4)


def _project_bev_to_fv(height_flat, Mmat, Kmat, *, wb, hf, wf,
                       x_min, z_max, resolution):
    """Pure-JAX mirror of the in-kernel geometry: BEV flat index -> FV pixel."""
    B, n_pad = height_flat.shape
    lin = jnp.arange(n_pad, dtype=jnp.float32)
    row = jnp.floor(lin / float(wb))
    col = lin - row * float(wb)
    x = jnp.broadcast_to((x_min + (col + 0.5) * resolution)[None], (B, n_pad))
    z = jnp.broadcast_to((z_max - (row + 0.5) * resolution)[None], (B, n_pad))
    y = height_flat
    pts = jnp.stack([x, y, z, jnp.ones_like(x)], axis=1)            # (B,4,n)
    cam = jnp.einsum('bij,bjn->bin', Mmat[:, :3, :], pts)           # (B,3,n)
    uvw = jnp.einsum('bij,bjn->bin', Kmat, cam)                     # (B,3,n)
    denom = uvw[:, 2] + 1e-7
    denom = jnp.where(jnp.abs(denom) > 1e-6, denom, 1e-6)           # NaN/inf guard
    u = uvw[:, 0] / denom
    v = uvw[:, 1] / denom
    # normalize-to-[-1,1] then grid_sample unnormalize (align_corners=False),
    # folded into one affine:  ix = u * W/(W-1) - 0.5
    ix = u * (float(wf) / float(max(wf - 1, 1))) - 0.5
    iy = v * (float(hf) / float(max(hf - 1, 1))) - 0.5
    ix = jnp.clip(ix, -2.0 * wf, 2.0 * wf)
    iy = jnp.clip(iy, -2.0 * hf, 2.0 * hf)
    return ix, iy


def _compute_fv_bands(height_flat, Mmat, Kmat, *, n, wb, hf, wf, x_min, z_max,
                      resolution, tn, tk, nfv):
    """Per (batch, BEV tile): first FV tile and #FV tiles touched by any
    bilinear corner of any real (non-padded) BEV cell in that tile."""
    B, n_pad = height_flat.shape
    n_tiles = n_pad // tn
    ix, iy = _project_bev_to_fv(height_flat, Mmat, Kmat, wb=wb, hf=hf, wf=wf,
                                x_min=x_min, z_max=z_max, resolution=resolution)
    x0 = jnp.floor(ix).astype(jnp.int32)
    y0 = jnp.floor(iy).astype(jnp.int32)
    lane_ok = (jnp.arange(n_pad) < n)[None, :]
    BIG = jnp.int32(1 << 30)
    fmin = jnp.full((B, n_pad), BIG, jnp.int32)
    fmax = jnp.full((B, n_pad), -1, jnp.int32)
    any_ok = jnp.zeros((B, n_pad), bool)
    for dy in (0, 1):
        for dx in (0, 1):
            yc, xc = y0 + dy, x0 + dx
            ok = (yc >= 0) & (yc < hf) & (xc >= 0) & (xc < wf) & lane_ok
            flat = yc * wf + xc
            fmin = jnp.minimum(fmin, jnp.where(ok, flat, BIG))
            fmax = jnp.maximum(fmax, jnp.where(ok, flat, -1))
            any_ok = any_ok | ok
    fmin_t = fmin.reshape(B, n_tiles, tn).min(axis=2)
    fmax_t = fmax.reshape(B, n_tiles, tn).max(axis=2)
    any_t = any_ok.reshape(B, n_tiles, tn).any(axis=2)
    # one image-row safety pad (covers fp drift between pre-pass and kernel)
    fmin_t = jnp.clip(fmin_t - (wf + 1), 0, nfv - 1)
    fmax_t = jnp.clip(fmax_t + (wf + 1), 0, nfv - 1)
    kstart = jnp.where(any_t, fmin_t // tk, 0).astype(jnp.int32)
    kend = jnp.where(any_t, fmax_t // tk, -1).astype(jnp.int32)
    knum = jnp.where(any_t, kend - kstart + 1, 0).astype(jnp.int32)
    return kstart.reshape(-1), knum.reshape(-1)          # (B*n_tiles,) each


# --------------------------------------------------------------------------
# Pallas kernel
# --------------------------------------------------------------------------
def _fv_to_bev_warp_kernel(ks_ref, kn_ref, m_ref, intr_ref, h_ref, fv_ref,
                           out_ref, idx_sc, w00_sc, w01_sc, w10_sc, w11_sc, *,
                           n_tiles, wb, hf, wf, x_min, z_max, resolution,
                           tn, tk):
    """Grid = (batch, bev_tile, fv_band_step).

    ks_ref/kn_ref : SMEM (B*n_tiles,) band start / length tables (scalar prefetch)
    m_ref         : SMEM (B*16,) folded transform M = T @ T_ext (row major 4x4)
    intr_ref      : SMEM (B*9,)  camera intrinsics (row major 3x3)
    h_ref         : VMEM (1, 1, tn)  BEV height tile
    fv_ref        : VMEM (1, C, tk)  FV image tile (band tile, data-dependent)
    out_ref       : VMEM (1, C, tn)  output tile, resident across the band axis
    idx_sc/w*_sc  : VMEM (1, tn) per-(b,i) hoisted geometry (base index + weights)
    """
    b = pl.program_id(0)
    i = pl.program_id(1)   # BEV tile index
    kk = pl.program_id(2)  # step within this BEV tile's FV band

    @pl.when(kk == 0)
    def _init():
        out_ref[...] = jnp.zeros_like(out_ref)

        # ---- per-(b, i) geometry, hoisted out of the reduction loop --------
        def M(r, c):
            return m_ref[16 * b + 4 * r + c]

        def K(r, c):
            return intr_ref[9 * b + 3 * r + c]

        lin = (lax.broadcasted_iota(jnp.int32, (1, tn), 1)
               + i * tn).astype(jnp.float32)
        row = jnp.floor(lin / float(wb))            # BEV row (depth direction)
        col = lin - row * float(wb)                 # BEV col (lateral)
        x = x_min + (col + 0.5) * resolution
        z = z_max - (row + 0.5) * resolution        # row 0 = farthest
        y = h_ref[0]                                # (1, tn) heights

        # rigid transform (folded 4x4), then pinhole projection
        xc = M(0, 0) * x + M(0, 1) * y + M(0, 2) * z + M(0, 3)
        yc = M(1, 0) * x + M(1, 1) * y + M(1, 2) * z + M(1, 3)
        zc = M(2, 0) * x + M(2, 1) * y + M(2, 2) * z + M(2, 3)
        u_h = K(0, 0) * xc + K(0, 1) * yc + K(0, 2) * zc
        v_h = K(1, 0) * xc + K(1, 1) * yc + K(1, 2) * zc
        w_h = K(2, 0) * xc + K(2, 1) * yc + K(2, 2) * zc
        denom = w_h + 1e-7
        denom = jnp.where(jnp.abs(denom) > 1e-6, denom, 1e-6)   # NaN/inf guard
        u = u_h / denom                                         # exact division
        v = v_h / denom

        ix = u * (float(wf) / float(max(wf - 1, 1))) - 0.5
        iy = v * (float(hf) / float(max(hf - 1, 1))) - 0.5
        ix = jnp.clip(ix, -2.0 * wf, 2.0 * wf)
        iy = jnp.clip(iy, -2.0 * hf, 2.0 * hf)

        x0f = jnp.floor(ix)
        y0f = jnp.floor(iy)
        wx1 = ix - x0f
        wy1 = iy - y0f
        wx0 = 1.0 - wx1
        wy0 = 1.0 - wy1
        x0 = x0f.astype(jnp.int32)
        x1 = x0 + 1
        y0 = y0f.astype(jnp.int32)
        y1 = y0 + 1
        inx0 = ((x0 >= 0) & (x0 < wf)).astype(jnp.float32)
        inx1 = ((x1 >= 0) & (x1 < wf)).astype(jnp.float32)
        iny0 = ((y0 >= 0) & (y0 < hf)).astype(jnp.float32)
        iny1 = ((y1 >= 0) & (y1 < hf)).astype(jnp.float32)

        idx_sc[...] = y0 * wf + x0                  # base corner flat index
        w00_sc[...] = wy0 * wx0 * iny0 * inx0       # OOB corners carry 0 weight
        w01_sc[...] = wy0 * wx1 * iny0 * inx1
        w10_sc[...] = wy1 * wx0 * iny1 * inx0
        w11_sc[...] = wy1 * wx1 * iny1 * inx1

    # ---- band-limited reduction step ----------------------------------------
    nk = kn_ref[b * n_tiles + i]

    @pl.when(kk < nk)
    def _accum():
        fv_tile = ks_ref[b * n_tiles + i] + kk
        jidx = lax.broadcasted_iota(jnp.int32, (tk, tn), 0) + fv_tile * tk
        d = jidx - idx_sc[...]                      # (tk, tn) single int subtract
        # single select chain (offsets 0, 1, wf, wf+1 are distinct for wf >= 2)
        sT = jnp.where(d == 0, w00_sc[...],
             jnp.where(d == 1, w01_sc[...],
             jnp.where(d == wf, w10_sc[...],
             jnp.where(d == wf + 1, w11_sc[...], 0.0))))
        # out^T tile (C, tn): lane-dense accumulate (tn is a multiple of 128)
        out_ref[0] += jnp.dot(fv_ref[0], sT, preferred_element_type=jnp.float32)


# --------------------------------------------------------------------------
# Module wrapper
# --------------------------------------------------------------------------
class FvToBevWarper:
    def __init__(self, extents, resolution, fv_extrinsics):
        self.extents = extents            # (x_min, z_min, x_max, z_max)
        self.resolution = float(resolution)
        self.fv_extrinsics = fv_extrinsics

    def __call__(self, fv_img, bev_height_map, T, intrinsics, scale=1,
                 warp_mode='bilinear'):
        assert bev_height_map.ndim == 4, 'bev_height_map must be B x 1 x H x W'
        assert bev_height_map.shape[1] == 1, 'bev_height_map must have 1 channel'
        assert warp_mode == 'bilinear'
        # TODO(synk): scale != 1 path (bilinear resize + intrinsics rescale).
        assert scale == 1

        B, C, Hf, Wf = fv_img.shape
        _, _, Hb, Wb = bev_height_map.shape
        x_min, z_min, x_max, z_max = [float(e) for e in self.extents]
        res = self.resolution * float(scale)

        Mmat = _fold_transforms(T, self.fv_extrinsics, B)             # (B,4,4)
        Kmat = intrinsics[:, :3, :3].astype(jnp.float32)              # (B,3,3)
        m_flat = Mmat.reshape(-1).astype(jnp.float32)                 # (B*16,)
        intr_flat = Kmat.reshape(-1)                                  # (B*9,)

        # ---- tile-first padding (lane-dense spatial-last buffers) ----------
        n, nfv = Hb * Wb, Hf * Wf
        tn, n_pad = _pick_tile(n, 512)
        tk, nfv_pad = _pick_tile(nfv, 256)
        n_tiles = n_pad // tn
        num_fv_tiles = nfv_pad // tk

        height = bev_height_map.astype(jnp.float32).reshape(B, 1, n)
        if n_pad != n:
            height = jnp.pad(height, ((0, 0), (0, 0), (0, n_pad - n)))
        fv = fv_img.astype(jnp.float32).reshape(B, C, nfv)            # free reshape
        if nfv_pad != nfv:
            fv = jnp.pad(fv, ((0, 0), (0, 0), (0, nfv_pad - nfv)))

        # ---- sparsity pre-pass: FV tile band per (b, bev_tile) -------------
        kstart, knum = _compute_fv_bands(
            height.reshape(B, n_pad), Mmat, Kmat, n=n, wb=Wb, hf=Hf, wf=Wf,
            x_min=x_min, z_max=z_max, resolution=res, tn=tn, tk=tk, nfv=nfv)
        try:
            k_band = max(int(jnp.max(knum)), 1)
        except jax.errors.ConcretizationTypeError:
            # Under jit the max band width is not host-readable; run all FV
            # tiles and rely on the per-(b,i) pl.when guard to skip empty ones.
            k_band = num_fv_tiles

        def fv_index_map(b, i, k, ks, kn):
            t = b * n_tiles + i
            last = jnp.maximum(kn[t] - 1, 0)
            # steps past the band re-use the previous block index -> no new DMA
            return (b, 0, ks[t] + jnp.minimum(k, last))

        kernel = functools.partial(
            _fv_to_bev_warp_kernel, n_tiles=n_tiles, wb=Wb, hf=Hf, wf=Wf,
            x_min=x_min, z_max=z_max, resolution=res, tn=tn, tk=tk)

        grid_spec = pltpu.PrefetchScalarGridSpec(
            num_scalar_prefetch=2,                       # kstart, knum tables
            grid=(B, n_tiles, k_band),
            in_specs=[
                pl.BlockSpec(memory_space=pltpu.MemorySpace.SMEM),     # M (B*16,)
                pl.BlockSpec(memory_space=pltpu.MemorySpace.SMEM),     # K (B*9,)
                pl.BlockSpec((1, 1, tn), lambda b, i, k, ks, kn: (b, 0, i)),
                pl.BlockSpec((1, C, tk), fv_index_map),                # fv band tile
            ],
            out_specs=pl.BlockSpec((1, C, tn), lambda b, i, k, ks, kn: (b, 0, i)),
            scratch_shapes=[pltpu.VMEM((1, tn), jnp.int32)]            # base idx
                           + [pltpu.VMEM((1, tn), jnp.float32)] * 4,   # weights
        )

        out = pl.pallas_call(
            kernel,
            out_shape=jax.ShapeDtypeStruct((B, C, n_pad), jnp.float32),
            grid_spec=grid_spec,
            compiler_params=pltpu.CompilerParams(
                dimension_semantics=("parallel", "parallel", "arbitrary"),
                vmem_limit_bytes=32 * 1024 * 1024),
        )(kstart, knum, m_flat, intr_flat, height, fv)

        # crop padding; spatial-last -> NCHW is a free reshape (no transpose)
        warped_img = out[:, :, :n].reshape(B, C, Hb, Wb)
        return warped_img


# --------------------------------------------------------------------------
# Pure-JAX reference (same math, dense bilinear gather) for the demo check
# --------------------------------------------------------------------------
def _reference_warp(fv_img, bev_height_map, Mmat, Kmat, extents, resolution):
    B, C, Hf, Wf = fv_img.shape
    _, _, Hb, Wb = bev_height_map.shape
    n, nfv = Hb * Wb, Hf * Wf
    x_min, _, _, z_max = [float(e) for e in extents]
    height = bev_height_map.astype(jnp.float32).reshape(B, n)
    ix, iy = _project_bev_to_fv(height, Mmat, Kmat, wb=Wb, hf=Hf, wf=Wf,
                                x_min=x_min, z_max=z_max, resolution=resolution)
    x0f = jnp.floor(ix)
    y0f = jnp.floor(iy)
    wx1 = ix - x0f
    wy1 = iy - y0f
    x0 = x0f.astype(jnp.int32)
    y0 = y0f.astype(jnp.int32)
    fv = fv_img.astype(jnp.float32).reshape(B, C, nfv)
    out = jnp.zeros((B, C, n), jnp.float32)
    for dy, wy in ((0, 1.0 - wy1), (1, wy1)):
        for dx, wx in ((0, 1.0 - wx1), (1, wx1)):
            yc, xc = y0 + dy, x0 + dx
            ok = ((yc >= 0) & (yc < Hf) & (xc >= 0) & (xc < Wf)).astype(jnp.float32)
            flat = jnp.clip(yc * Wf + xc, 0, nfv - 1)
            g = jnp.take_along_axis(
                fv, jnp.broadcast_to(flat[:, None, :], (B, C, n)), axis=2)
            out = out + (wy * wx * ok)[:, None, :] * g
    return out.reshape(B, C, Hb, Wb)


# --------------------------------------------------------------------------
# Demo
# --------------------------------------------------------------------------
if __name__ == "__main__":
    key = jax.random.PRNGKey(0)
    B, C = 2, 4
    Hf = Wf = 32          # frontal-view image
    Hb = Wb = 32          # BEV grid
    extents = (-16.0, 0.0, 16.0, 32.0)   # x_min, z_min, x_max, z_max [m]
    resolution = 1.0                     # m / BEV cell
    fv_extrinsics = {"translation": (0.0, -1.5, 0.0),
                     "rotation": (0.0, 0.0, 0.0)}

    k1, k2, k3 = jax.random.split(key, 3)
    fv_img = jax.random.normal(k1, (B, C, Hf, Wf), jnp.float32)
    bev_height_map = 0.5 * jax.random.normal(k2, (B, 1, Hb, Wb), jnp.float32)

    T_base = jnp.concatenate([jnp.eye(3, dtype=jnp.float32),
                              jnp.zeros((3, 1), jnp.float32)], axis=1)
    T = jnp.broadcast_to(T_base, (B, 3, 4)) \
        + 0.01 * jax.random.normal(k3, (B, 3, 4), jnp.float32)

    intrinsics = jnp.broadcast_to(
        jnp.array([[16.0, 0.0, 15.5],
                   [0.0, 16.0, 15.5],
                   [0.0, 0.0, 1.0]], jnp.float32), (B, 3, 3))

    warper = FvToBevWarper(extents, resolution, fv_extrinsics)
    warped = warper(fv_img, bev_height_map, T, intrinsics, scale=1)
    warped = jax.block_until_ready(warped)

    assert warped.shape == (B, C, Hb, Wb), warped.shape
    assert warped.dtype == jnp.float32
    assert bool(jnp.all(jnp.isfinite(warped)))

    ref = _reference_warp(fv_img, bev_height_map,
                          _fold_transforms(T, fv_extrinsics, B),
                          intrinsics[:, :3, :3].astype(jnp.float32),
                          extents, resolution)
    max_err = float(jnp.max(jnp.abs(warped - ref)))
    assert max_err < 1e-3, f"max abs error vs reference = {max_err}"
    print("KERNEL_OK")
</pallas_src>

<mosaic_0001>
module attributes {stable_mosaic.version = 11 : i64} {
  func.func @_fv_to_bev_warp_kernel(%arg0: i32, %arg1: i32, %arg2: i32, %arg3: memref<4xi32, #tpu.memory_space<smem>>, %arg4: memref<4xi32, #tpu.memory_space<smem>>, %arg5: memref<32xf32, #tpu.memory_space<smem>>, %arg6: memref<18xf32, #tpu.memory_space<smem>>, %arg7: memref<1x1x512xf32, #tpu.memory_space<vmem>>, %arg8: memref<1x4x256xf32, #tpu.memory_space<vmem>>, %arg9: memref<1x4x512xf32, #tpu.memory_space<vmem>>, %arg10: memref<1x512xi32, #tpu.memory_space<vmem>>, %arg11: memref<1x512xf32, #tpu.memory_space<vmem>>, %arg12: memref<1x512xf32, #tpu.memory_space<vmem>>, %arg13: memref<1x512xf32, #tpu.memory_space<vmem>>, %arg14: memref<1x512xf32, #tpu.memory_space<vmem>>) attributes {dimension_semantics = [#tpu.dimension_semantics<parallel>, #tpu.dimension_semantics<parallel>, #tpu.dimension_semantics<arbitrary>], iteration_bounds = array<i64: 2, 2, 3>, scalar_prefetch = 2 : i64, scratch_operands = 5 : i64, tpu.core_type = #tpu.core_type<tc>, window_params = [{transform_indices = @transform_0, window_bounds = array<i64: 32>}, {transform_indices = @transform_1, window_bounds = array<i64: 18>}, {transform_indices = @transform_2, window_bounds = array<i64: 1, 1, 512>}, {transform_indices = @transform_3, window_bounds = array<i64: 1, 4, 256>}, {transform_indices = @transform_4, window_bounds = array<i64: 1, 4, 512>}]} {
    %c0_i32 = arith.constant 0 : i32
    %0 = arith.cmpi eq, %arg2, %c0_i32 : i32
    %1 = arith.extui %0 : i1 to i32
    %c0_i32_0 = arith.constant 0 : i32
    %2 = arith.cmpi ne, %1, %c0_i32_0 : i32
    scf.if %2 {
      %cst = arith.constant 0.000000e+00 : f32
      %10 = vector.broadcast %cst : f32 to vector<1x4x512xf32>
      %c0 = arith.constant 0 : index
      %c0_2 = arith.constant 0 : index
      %c0_3 = arith.constant 0 : index
      %11 = vector.load %arg9[%c0, %c0_2, %c0_3] : memref<1x4x512xf32, #tpu.memory_space<vmem>>, vector<1x4x512xf32>
      tpu.vector_store %arg9[%c0, %c0_2, %c0_3], %10 {strides = array<i32>} : memref<1x4x512xf32, #tpu.memory_space<vmem>>, vector<1x4x512xf32>,
      %12 = tpu.iota {dimensions = array<i32: 1>} : vector<1x512xi32>
      %c512_i32 = arith.constant 512 : i32
      %13 = arith.muli %arg1, %c512_i32 : i32
      %14 = vector.broadcast %13 : i32 to vector<1x512xi32>
      %15 = arith.addi %12, %14 : vector<1x512xi32>
      %16 = arith.sitofp %15 : vector<1x512xi32> to vector<1x512xf32>
      %cst_4 = arith.constant 3.200000e+01 : f32
      %17 = vector.broadcast %cst_4 : f32 to vector<1x512xf32>
      %18 = arith.divf %16, %17 : vector<1x512xf32>
      %19 = math.floor %18 : vector<1x512xf32>
      %cst_5 = arith.constant 3.200000e+01 : f32
      %20 = vector.broadcast %cst_5 : f32 to vector<1x512xf32>
      %21 = arith.mulf %19, %20 : vector<1x512xf32>
      %22 = arith.subf %16, %21 : vector<1x512xf32>
      %cst_6 = arith.constant 5.000000e-01 : f32
      %23 = vector.broadcast %cst_6 : f32 to vector<1x512xf32>
      %24 = arith.addf %22, %23 : vector<1x512xf32>
      %cst_7 = arith.constant 1.000000e+00 : f32
      %25 = vector.broadcast %cst_7 : f32 to vector<1x512xf32>
      %26 = arith.mulf %24, %25 : vector<1x512xf32>
      %cst_8 = arith.constant -1.600000e+01 : f32
      %27 = vector.broadcast %cst_8 : f32 to vector<1x512xf32>
      %28 = arith.addf %27, %26 : vector<1x512xf32>
      %cst_9 = arith.constant 5.000000e-01 : f32
      %29 = vector.broadcast %cst_9 : f32 to vector<1x512xf32>
      %30 = arith.addf %19, %29 : vector<1x512xf32>
      %cst_10 = arith.constant 1.000000e+00 : f32
      %31 = vector.broadcast %cst_10 : f32 to vector<1x512xf32>
      %32 = arith.mulf %30, %31 : vector<1x512xf32>
      %cst_11 = arith.constant 3.200000e+01 : f32
      %33 = vector.broadcast %cst_11 : f32 to vector<1x512xf32>
      %34 = arith.subf %33, %32 : vector<1x512xf32>
      %c0_12 = arith.constant 0 : index
      %c0_13 = arith.constant 0 : index
      %c0_14 = arith.constant 0 : index
      %35 = vector.load %arg7[%c0_12, %c0_13, %c0_14] : memref<1x1x512xf32, #tpu.memory_space<vmem>>, vector<1x1x512xf32>
      %36 = vector.shape_cast %35 : vector<1x1x512xf32> to vector<1x512xf32>
      %c16_i32 = arith.constant 16 : i32
      %37 = arith.muli %c16_i32, %arg0 : i32
      %c0_i32_15 = arith.constant 0 : i32
      %38 = arith.addi %37, %c0_i32_15 : i32
      %c0_i32_16 = arith.constant 0 : i32
      %39 = arith.addi %38, %c0_i32_16 : i32
      %40 = arith.index_cast %39 : i32 to index
      %41 = memref.load %arg5[%40] : memref<32xf32, #tpu.memory_space<smem>>
      %42 = vector.broadcast %41 : f32 to vector<1x512xf32>
      %43 = arith.mulf %42, %28 : vector<1x512xf32>
      %c16_i32_17 = arith.constant 16 : i32
      %44 = arith.muli %c16_i32_17, %arg0 : i32
      %c0_i32_18 = arith.constant 0 : i32
      %45 = arith.addi %44, %c0_i32_18 : i32
      %c1_i32 = arith.constant 1 : i32
      %46 = arith.addi %45, %c1_i32 : i32
      %47 = arith.index_cast %46 : i32 to index
      %48 = memref.load %arg5[%47] : memref<32xf32, #tpu.memory_space<smem>>
      %49 = vector.broadcast %48 : f32 to vector<1x512xf32>
      %50 = arith.mulf %49, %36 : vector<1x512xf32>
      %51 = arith.addf %43, %50 : vector<1x512xf32>
      %c16_i32_19 = arith.constant 16 : i32
      %52 = arith.muli %c16_i32_19, %arg0 : i32
      %c0_i32_20 = arith.constant 0 : i32
      %53 = arith.addi %52, %c0_i32_20 : i32
      %c2_i32_21 = arith.constant 2 : i32
      %54 = arith.addi %53, %c2_i32_21 : i32
      %55 = arith.index_cast %54 : i32 to index
      %56 = memref.load %arg5[%55] : memref<32xf32, #tpu.memory_space<smem>>
      %57 = vector.broadcast %56 : f32 to vector<1x512xf32>
      %58 = arith.mulf %57, %34 : vector<1x512xf32>
      %59 = arith.addf %51, %58 : vector<1x512xf32>
      %c16_i32_22 = arith.constant 16 : i32
      %60 = arith.muli %c16_i32_22, %arg0 : i32
      %c0_i32_23 = arith.constant 0 : i32
      %61 = arith.addi %60, %c0_i32_23 : i32
      %c3_i32 = arith.constant 3 : i32
      %62 = arith.addi %61, %c3_i32 : i32
      %63 = arith.index_cast %62 : i32 to index
      %64 = memref.load %arg5[%63] : memref<32xf32, #tpu.memory_space<smem>>
      %65 = vector.broadcast %64 : f32 to vector<1x512xf32>
      %66 = arith.addf %59, %65 : vector<1x512xf32>
      %c16_i32_24 = arith.constant 16 : i32
      %67 = arith.muli %c16_i32_24, %arg0 : i32
      %c4_i32 = arith.constant 4 : i32
      %68 = arith.addi %67, %c4_i32 : i32
      %c0_i32_25 = arith.constant 0 : i32
      %69 = arith.addi %68, %c0_i32_25 : i32
      %70 = arith.index_cast %69 : i32 to index
      %71 = memref.load %arg5[%70] : memref<32xf32, #tpu.memory_space<smem>>
      %72 = vector.broadcast %71 : f32 to vector<1x512xf32>
      %73 = arith.mulf %72, %28 : vector<1x512xf32>
      %c16_i32_26 = arith.constant 16 : i32
      %74 = arith.muli %c16_i32_26, %arg0 : i32
      %c4_i32_27 = arith.constant 4 : i32
      %75 = arith.addi %74, %c4_i32_27 : i32
      %c1_i32_28 = arith.constant 1 : i32
      %76 = arith.addi %75, %c1_i32_28 : i32
      %77 = arith.index_cast %76 : i32 to index
      %78 = memref.load %arg5[%77] : memref<32xf32, #tpu.memory_space<smem>>
      %79 = vector.broadcast %78 : f32 to vector<1x512xf32>
      %80 = arith.mulf %79, %36 : vector<1x512xf32>
      %81 = arith.addf %73, %80 : vector<1x512xf32>
      %c16_i32_29 = arith.constant 16 : i32
      %82 = arith.muli %c16_i32_29, %arg0 : i32
      %c4_i32_30 = arith.constant 4 : i32
      %83 = arith.addi %82, %c4_i32_30 : i32
      %c2_i32_31 = arith.constant 2 : i32
      %84 = arith.addi %83, %c2_i32_31 : i32
      %85 = arith.index_cast %84 : i32 to index
      %86 = memref.load %arg5[%85] : memref<32xf32, #tpu.memory_space<smem>>
      %87 = vector.broadcast %86 : f32 to vector<1x512xf32>
      %88 = arith.mulf %87, %34 : vector<1x512xf32>
      %89 = arith.addf %81, %88 : vector<1x512xf32>
      %c16_i32_32 = arith.constant 16 : i32
      %90 = arith.muli %c16_i32_32, %arg0 : i32
      %c4_i32_33 = arith.constant 4 : i32
      %91 = arith.addi %90, %c4_i32_33 : i32
      %c3_i32_34 = arith.constant 3 : i32
      %92 = arith.addi %91, %c3_i32_34 : i32
      %93 = arith.index_cast %92 : i32 to index
      %94 = memref.load %arg5[%93] : memref<32xf32, #tpu.memory_space<smem>>
      %95 = vector.broadcast %94 : f32 to vector<1x512xf32>
      %96 = arith.addf %89, %95 : vector<1x512xf32>
      %c16_i32_35 = arith.constant 16 : i32
      %97 = arith.muli %c16_i32_35, %arg0 : i32
      %c8_i32 = arith.constant 8 : i32
      %98 = arith.addi %97, %c8_i32 : i32
      %c0_i32_36 = arith.constant 0 : i32
      %99 = arith.addi %98, %c0_i32_36 : i32
      %100 = arith.index_cast %99 : i32 to index
      %101 = memref.load %arg5[%100] : memref<32xf32, #tpu.memory_space<smem>>
      %102 = vector.broadcast %101 : f32 to vector<1x512xf32>
      %103 = arith.mulf %102, %28 : vector<1x512xf32>
      %c16_i32_37 = arith.constant 16 : i32
      %104 = arith.muli %c16_i32_37, %arg0 : i32
      %c8_i32_38 = arith.constant 8 : i32
      %105 = arith.addi %104, %c8_i32_38 : i32
      %c1_i32_39 = arith.constant 1 : i32
      %106 = arith.addi %105, %c1_i32_39 : i32
      %107 = arith.index_cast %106 : i32 to index
      %108 = memref.load %arg5[%107] : memref<32xf32, #tpu.memory_space<smem>>
      %109 = vector.broadcast %108 : f32 to vector<1x512xf32>
      %110 = arith.mulf %109, %36 : vector<1x512xf32>
      %111 = arith.addf %103, %110 : vector<1x512xf32>
      %c16_i32_40 = arith.constant 16 : i32
      %112 = arith.muli %c16_i32_40, %arg0 : i32
      %c8_i32_41 = arith.constant 8 : i32
      %113 = arith.addi %112, %c8_i32_41 : i32
      %c2_i32_42 = arith.constant 2 : i32
      %114 = arith.addi %113, %c2_i32_42 : i32
      %115 = arith.index_cast %114 : i32 to index
      %116 = memref.load %arg5[%115] : memref<32xf32, #tpu.memory_space<smem>>
      %117 = vector.broadcast %116 : f32 to vector<1x512xf32>
      %118 = arith.mulf %117, %34 : vector<1x512xf32>
      %119 = arith.addf %111, %118 : vector<1x512xf32>
      %c16_i32_43 = arith.constant 16 : i32
      %120 = arith.muli %c16_i32_43, %arg0 : i32
      %c8_i32_44 = arith.constant 8 : i32
      %121 = arith.addi %120, %c8_i32_44 : i32
      %c3_i32_45 = arith.constant 3 : i32
      %122 = arith.addi %121, %c3_i32_45 : i32
      %123 = arith.index_cast %122 : i32 to index
      %124 = memref.load %arg5[%123] : memref<32xf32, #tpu.memory_space<smem>>
      %125 = vector.broadcast %124 : f32 to vector<1x512xf32>
      %126 = arith.addf %119, %125 : vector<1x512xf32>
      %c9_i32 = arith.constant 9 : i32
      %127 = arith.muli %c9_i32, %arg0 : i32
      %c0_i32_46 = arith.constant 0 : i32
      %128 = arith.addi %127, %c0_i32_46 : i32
      %c0_i32_47 = arith.constant 0 : i32
      %129 = arith.addi %128, %c0_i32_47 : i32
      %130 = arith.index_cast %129 : i32 to index
      %131 = memref.load %arg6[%130] : memref<18xf32, #tpu.memory_space<smem>>
      %132 = vector.broadcast %131 : f32 to vector<1x512xf32>
      %133 = arith.mulf %132, %66 : vector<1x512xf32>
      %c9_i32_48 = arith.constant 9 : i32
      %134 = arith.muli %c9_i32_48, %arg0 : i32
      %c0_i32_49 = arith.constant 0 : i32
      %135 = arith.addi %134, %c0_i32_49 : i32
      %c1_i32_50 = arith.constant 1 : i32
      %136 = arith.addi %135, %c1_i32_50 : i32
      %137 = arith.index_cast %136 : i32 to index
      %138 = memref.load %arg6[%137] : memref<18xf32, #tpu.memory_space<smem>>
      %139 = vector.broadcast %138 : f32 to vector<1x512xf32>
      %140 = arith.mulf %139, %96 : vector<1x512xf32>
      %141 = arith.addf %133, %140 : vector<1x512xf32>
      %c9_i32_51 = arith.constant 9 : i32
      %142 = arith.muli %c9_i32_51, %arg0 : i32
      %c0_i32_52 = arith.constant 0 : i32
      %143 = arith.addi %142, %c0_i32_52 : i32
      %c2_i32_53 = arith.constant 2 : i32
      %144 = arith.addi %143, %c2_i32_53 : i32
      %145 = arith.index_cast %144 : i32 to index
      %146 = memref.load %arg6[%145] : memref<18xf32, #tpu.memory_space<smem>>
      %147 = vector.broadcast %146 : f32 to vector<1x512xf32>
      %148 = arith.mulf %147, %126 : vector<1x512xf32>
      %149 = arith.addf %141, %148 : vector<1x512xf32>
      %c9_i32_54 = arith.constant 9 : i32
      %150 = arith.muli %c9_i32_54, %arg0 : i32
      %c3_i32_55 = arith.constant 3 : i32
      %151 = arith.addi %150, %c3_i32_55 : i32
      %c0_i32_56 = arith.constant 0 : i32
      %152 = arith.addi %151, %c0_i32_56 : i32
      %153 = arith.index_cast %152 : i32 to index
      %154 = memref.load %arg6[%153] : memref<18xf32, #tpu.memory_space<smem>>
      %155 = vector.broadcast %154 : f32 to vector<1x512xf32>
      %156 = arith.mulf %155, %66 : vector<1x512xf32>
      %c9_i32_57 = arith.constant 9 : i32
      %157 = arith.muli %c9_i32_57, %arg0 : i32
      %c3_i32_58 = arith.constant 3 : i32
      %158 = arith.addi %157, %c3_i32_58 : i32
      %c1_i32_59 = arith.constant 1 : i32
      %159 = arith.addi %158, %c1_i32_59 : i32
      %160 = arith.index_cast %159 : i32 to index
      %161 = memref.load %arg6[%160] : memref<18xf32, #tpu.memory_space<smem>>
      %162 = vector.broadcast %161 : f32 to vector<1x512xf32>
      %163 = arith.mulf %162, %96 : vector<1x512xf32>
      %164 = arith.addf %156, %163 : vector<1x512xf32>
      %c9_i32_60 = arith.constant 9 : i32
      %165 = arith.muli %c9_i32_60, %arg0 : i32
      %c3_i32_61 = arith.constant 3 : i32
      %166 = arith.addi %165, %c3_i32_61 : i32
      %c2_i32_62 = arith.constant 2 : i32
      %167 = arith.addi %166, %c2_i32_62 : i32
      %168 = arith.index_cast %167 : i32 to index
      %169 = memref.load %arg6[%168] : memref<18xf32, #tpu.memory_space<smem>>
      %170 = vector.broadcast %169 : f32 to vector<1x512xf32>
      %171 = arith.mulf %170, %126 : vector<1x512xf32>
      %172 = arith.addf %164, %171 : vector<1x512xf32>
      %c9_i32_63 = arith.constant 9 : i32
      %173 = arith.muli %c9_i32_63, %arg0 : i32
      %c6_i32 = arith.constant 6 : i32
      %174 = arith.addi %173, %c6_i32 : i32
      %c0_i32_64 = arith.constant 0 : i32
      %175 = arith.addi %174, %c0_i32_64 : i32
      %176 = arith.index_cast %175 : i32 to index
      %177 = memref.load %arg6[%176] : memref<18xf32, #tpu.memory_space<smem>>
      %178 = vector.broadcast %177 : f32 to vector<1x512xf32>
      %179 = arith.mulf %178, %66 : vector<1x512xf32>
      %c9_i32_65 = arith.constant 9 : i32
      %180 = arith.muli %c9_i32_65, %arg0 : i32
      %c6_i32_66 = arith.constant 6 : i32
      %181 = arith.addi %180, %c6_i32_66 : i32
      %c1_i32_67 = arith.constant 1 : i32
      %182 = arith.addi %181, %c1_i32_67 : i32
      %183 = arith.index_cast %182 : i32 to index
      %184 = memref.load %arg6[%183] : memref<18xf32, #tpu.memory_space<smem>>
      %185 = vector.broadcast %184 : f32 to vector<1x512xf32>
      %186 = arith.mulf %185, %96 : vector<1x512xf32>
      %187 = arith.addf %179, %186 : vector<1x512xf32>
      %c9_i32_68 = arith.constant 9 : i32
      %188 = arith.muli %c9_i32_68, %arg0 : i32
      %c6_i32_69 = arith.constant 6 : i32
      %189 = arith.addi %188, %c6_i32_69 : i32
      %c2_i32_70 = arith.constant 2 : i32
      %190 = arith.addi %189, %c2_i32_70 : i32
      %191 = arith.index_cast %190 : i32 to index
      %192 = memref.load %arg6[%191] : memref<18xf32, #tpu.memory_space<smem>>
      %193 = vector.broadcast %192 : f32 to vector<1x512xf32>
      %194 = arith.mulf %193, %126 : vector<1x512xf32>
      %195 = arith.addf %187, %194 : vector<1x512xf32>
      %cst_71 = arith.constant 1.000000e-07 : f32
      %196 = vector.broadcast %cst_71 : f32 to vector<1x512xf32>
      %197 = arith.addf %195, %196 : vector<1x512xf32>
      %198 = math.absf %197 : vector<1x512xf32>
      %cst_72 = arith.constant 9.99999997E-7 : f32
      %199 = vector.broadcast %cst_72 : f32 to vector<1x512xf32>
      %200 = arith.cmpf ogt, %198, %199 : vector<1x512xf32>
      %cst_73 = arith.constant 9.99999997E-7 : f32
      %201 = vector.broadcast %cst_73 : f32 to vector<1x512xf32>
      %202 = arith.select %200, %197, %201 : vector<1x512xi1>, vector<1x512xf32>
      %203 = arith.divf %149, %202 : vector<1x512xf32>
      %204 = arith.divf %172, %202 : vector<1x512xf32>
      %cst_74 = arith.constant 1.03225803 : f32
      %205 = vector.broadcast %cst_74 : f32 to vector<1x512xf32>
      %206 = arith.mulf %203, %205 : vector<1x512xf32>
      %cst_75 = arith.constant 5.000000e-01 : f32
      %207 = vector.broadcast %cst_75 : f32 to vector<1x512xf32>
      %208 = arith.subf %206, %207 : vector<1x512xf32>
      %cst_76 = arith.constant 1.03225803 : f32
      %209 = vector.broadcast %cst_76 : f32 to vector<1x512xf32>
      %210 = arith.mulf %204, %209 : vector<1x512xf32>
      %cst_77 = arith.constant 5.000000e-01 : f32
      %211 = vector.broadcast %cst_77 : f32 to vector<1x512xf32>
      %212 = arith.subf %210, %211 : vector<1x512xf32>
      %cst_78 = arith.constant -6.400000e+01 : f32
      %cst_79 = arith.constant 6.400000e+01 : f32
      %213 = vector.broadcast %cst_78 : f32 to vector<1x512xf32>
      %214 = arith.maximumf %213, %208 : vector<1x512xf32>
      %215 = vector.broadcast %cst_79 : f32 to vector<1x512xf32>
      %216 = arith.minimumf %215, %214 : vector<1x512xf32>
      %cst_80 = arith.constant -6.400000e+01 : f32
      %cst_81 = arith.constant 6.400000e+01 : f32
      %217 = vector.broadcast %cst_80 : f32 to vector<1x512xf32>
      %218 = arith.maximumf %217, %212 : vector<1x512xf32>
      %219 = vector.broadcast %cst_81 : f32 to vector<1x512xf32>
      %220 = arith.minimumf %219, %218 : vector<1x512xf32>
      %221 = math.floor %216 : vector<1x512xf32>
      %222 = math.floor %220 : vector<1x512xf32>
      %223 = arith.subf %216, %221 : vector<1x512xf32>
      %224 = arith.subf %220, %222 : vector<1x512xf32>
      %cst_82 = arith.constant 1.000000e+00 : f32
      %225 = vector.broadcast %cst_82 : f32 to vector<1x512xf32>
      %226 = arith.subf %225, %223 : vector<1x512xf32>
      %cst_83 = arith.constant 1.000000e+00 : f32
      %227 = vector.broadcast %cst_83 : f32 to vector<1x512xf32>
      %228 = arith.subf %227, %224 : vector<1x512xf32>
      %229 = arith.fptosi %221 : vector<1x512xf32> to vector<1x512xi32>
      %c1_i32_84 = arith.constant 1 : i32
      %230 = vector.broadcast %c1_i32_84 : i32 to vector<1x512xi32>
      %231 = arith.addi %229, %230 : vector<1x512xi32>
      %232 = arith.fptosi %222 : vector<1x512xf32> to vector<1x512xi32>
      %c1_i32_85 = arith.constant 1 : i32
      %233 = vector.broadcast %c1_i32_85 : i32 to vector<1x512xi32>
      %234 = arith.addi %232, %233 : vector<1x512xi32>
      %c0_i32_86 = arith.constant 0 : i32
      %235 = vector.broadcast %c0_i32_86 : i32 to vector<1x512xi32>
      %236 = arith.cmpi sge, %229, %235 : vector<1x512xi32>
      %c32_i32 = arith.constant 32 : i32
      %237 = vector.broadcast %c32_i32 : i32 to vector<1x512xi32>
      %238 = arith.cmpi slt, %229, %237 : vector<1x512xi32>
      %239 = arith.andi %236, %238 : vector<1x512xi1>
      %240 = arith.extui %239 : vector<1x512xi1> to vector<1x512xi32>
      %241 = arith.sitofp %240 : vector<1x512xi32> to vector<1x512xf32>
      %c0_i32_87 = arith.constant 0 : i32
      %242 = vector.broadcast %c0_i32_87 : i32 to vector<1x512xi32>
      %243 = arith.cmpi sge, %231, %242 : vector<1x512xi32>
      %c32_i32_88 = arith.constant 32 : i32
      %244 = vector.broadcast %c32_i32_88 : i32 to vector<1x512xi32>
      %245 = arith.cmpi slt, %231, %244 : vector<1x512xi32>
      %246 = arith.andi %243, %245 : vector<1x512xi1>
      %247 = arith.extui %246 : vector<1x512xi1> to vector<1x512xi32>
      %248 = arith.sitofp %247 : vector<1x512xi32> to vector<1x512xf32>
      %c0_i32_89 = arith.constant 0 : i32
      %249 = vector.broadcast %c0_i32_89 : i32 to vector<1x512xi32>
      %250 = arith.cmpi sge, %232, %249 : vector<1x512xi32>
      %c32_i32_90 = arith.constant 32 : i32
      %251 = vector.broadcast %c32_i32_90 : i32 to vector<1x512xi32>
      %252 = arith.cmpi slt, %232, %251 : vector<1x512xi32>
      %253 = arith.andi %250, %252 : vector<1x512xi1>
      %254 = arith.extui %253 : vector<1x512xi1> to vector<1x512xi32>
      %255 = arith.sitofp %254 : vector<1x512xi32> to vector<1x512xf32>
      %c0_i32_91 = arith.constant 0 : i32
      %256 = vector.broadcast %c0_i32_91 : i32 to vector<1x512xi32>
      %257 = arith.cmpi sge, %234, %256 : vector<1x512xi32>
      %c32_i32_92 = arith.constant 32 : i32
      %258 = vector.broadcast %c32_i32_92 : i32 to vector<1x512xi32>
      %259 = arith.cmpi slt, %234, %258 : vector<1x512xi32>
      %260 = arith.andi %257, %259 : vector<1x512xi1>
      %261 = arith.extui %260 : vector<1x512xi1> to vector<1x512xi32>
      %262 = arith.sitofp %261 : vector<1x512xi32> to vector<1x512xf32>
      %c32_i32_93 = arith.constant 32 : i32
      %263 = vector.broadcast %c32_i32_93 : i32 to vector<1x512xi32>
      %264 = arith.muli %232, %263 : vector<1x512xi32>
      %265 = arith.addi %264, %229 : vector<1x512xi32>
      %c0_94 = arith.constant 0 : index
      %c0_95 = arith.constant 0 : index
      %266 = vector.load %arg10[%c0_94, %c0_95] : memref<1x512xi32, #tpu.memory_space<vmem>>, vector<1x512xi32>
      tpu.vector_store %arg10[%c0_94, %c0_95], %265 {strides = array<i32>} : memref<1x512xi32, #tpu.memory_space<vmem>>, vector<1x512xi32>,
      %267 = arith.mulf %228, %226 : vector<1x512xf32>
      %268 = arith.mulf %267, %255 : vector<1x512xf32>
      %269 = arith.mulf %268, %241 : vector<1x512xf32>
      %c0_96 = arith.constant 0 : index
      %c0_97 = arith.constant 0 : index
      %270 = vector.load %arg11[%c0_96, %c0_97] : memref<1x512xf32, #tpu.memory_space<vmem>>, vector<1x512xf32>
      tpu.vector_store %arg11[%c0_96, %c0_97], %269 {strides = array<i32>} : memref<1x512xf32, #tpu.memory_space<vmem>>, vector<1x512xf32>,
      %271 = arith.mulf %228, %223 : vector<1x512xf32>
      %272 = arith.mulf %271, %255 : vector<1x512xf32>
      %273 = arith.mulf %272, %248 : vector<1x512xf32>
      %c0_98 = arith.constant 0 : index
      %c0_99 = arith.constant 0 : index
      %274 = vector.load %arg12[%c0_98, %c0_99] : memref<1x512xf32, #tpu.memory_space<vmem>>, vector<1x512xf32>
      tpu.vector_store %arg12[%c0_98, %c0_99], %273 {strides = array<i32>} : memref<1x512xf32, #tpu.memory_space<vmem>>, vector<1x512xf32>,
      %275 = arith.mulf %224, %226 : vector<1x512xf32>
      %276 = arith.mulf %275, %262 : vector<1x512xf32>
      %277 = arith.mulf %276, %241 : vector<1x512xf32>
      %c0_100 = arith.constant 0 : index
      %c0_101 = arith.constant 0 : index
      %278 = vector.load %arg13[%c0_100, %c0_101] : memref<1x512xf32, #tpu.memory_space<vmem>>, vector<1x512xf32>
      tpu.vector_store %arg13[%c0_100, %c0_101], %277 {strides = array<i32>} : memref<1x512xf32, #tpu.memory_space<vmem>>, vector<1x512xf32>,
      %279 = arith.mulf %224, %223 : vector<1x512xf32>
      %280 = arith.mulf %279, %262 : vector<1x512xf32>
      %281 = arith.mulf %280, %248 : vector<1x512xf32>
      %c0_102 = arith.constant 0 : index
      %c0_103 = arith.constant 0 : index
      %282 = vector.load %arg14[%c0_102, %c0_103] : memref<1x512xf32, #tpu.memory_space<vmem>>, vector<1x512xf32>
      tpu.vector_store %arg14[%c0_102, %c0_103], %281 {strides = array<i32>} : memref<1x512xf32, #tpu.memory_space<vmem>>, vector<1x512xf32>,
    } else {
    }
    %c2_i32 = arith.constant 2 : i32
    %3 = arith.muli %arg0, %c2_i32 : i32
    %4 = arith.addi %3, %arg1 : i32
    %5 = arith.index_cast %4 : i32 to index
    %6 = memref.load %arg4[%5] : memref<4xi32, #tpu.memory_space<smem>>
    %7 = arith.cmpi slt, %arg2, %6 : i32
    %8 = arith.extui %7 : i1 to i32
    %c0_i32_1 = arith.constant 0 : i32
    %9 = arith.cmpi ne, %8, %c0_i32_1 : i32
    scf.if %9 {
      %c2_i32_2 = arith.constant 2 : i32
      %10 = arith.muli %arg0, %c2_i32_2 : i32
      %11 = arith.addi %10, %arg1 : i32
      %12 = arith.index_cast %11 : i32 to index
      %13 = memref.load %arg3[%12] : memref<4xi32, #tpu.memory_space<smem>>
      %14 = arith.addi %13, %arg2 : i32
      %15 = tpu.iota {dimensions = array<i32: 0>} : vector<256x512xi32>
      %c256_i32 = arith.constant 256 : i32
      %16 = arith.muli %14, %c256_i32 : i32
      %17 = vector.broadcast %16 : i32 to vector<256x512xi32>
      %18 = arith.addi %15, %17 : vector<256x512xi32>
      %c0 = arith.constant 0 : index
      %c0_3 = arith.constant 0 : index
      %19 = vector.load %arg10[%c0, %c0_3] : memref<1x512xi32, #tpu.memory_space<vmem>>, vector<1x512xi32>
      %20 = vector.broadcast %19 : vector<1x512xi32> to vector<256x512xi32>
      %21 = arith.subi %18, %20 : vector<256x512xi32>
      %c0_i32_4 = arith.constant 0 : i32
      %22 = vector.broadcast %c0_i32_4 : i32 to vector<256x512xi32>
      %23 = arith.cmpi eq, %21, %22 : vector<256x512xi32>
      %c0_5 = arith.constant 0 : index
      %c0_6 = arith.constant 0 : index
      %24 = vector.load %arg11[%c0_5, %c0_6] : memref<1x512xf32, #tpu.memory_space<vmem>>, vector<1x512xf32>
      %c1_i32 = arith.constant 1 : i32
      %25 = vector.broadcast %c1_i32 : i32 to vector<256x512xi32>
      %26 = arith.cmpi eq, %21, %25 : vector<256x512xi32>
      %c0_7 = arith.constant 0 : index
      %c0_8 = arith.constant 0 : index
      %27 = vector.load %arg12[%c0_7, %c0_8] : memref<1x512xf32, #tpu.memory_space<vmem>>, vector<1x512xf32>
      %c32_i32 = arith.constant 32 : i32
      %28 = vector.broadcast %c32_i32 : i32 to vector<256x512xi32>
      %29 = arith.cmpi eq, %21, %28 : vector<256x512xi32>
      %c0_9 = arith.constant 0 : index
      %c0_10 = arith.constant 0 : index
      %30 = vector.load %arg13[%c0_9, %c0_10] : memref<1x512xf32, #tpu.memory_space<vmem>>, vector<1x512xf32>
      %c33_i32 = arith.constant 33 : i32
      %31 = vector.broadcast %c33_i32 : i32 to vector<256x512xi32>
      %32 = arith.cmpi eq, %21, %31 : vector<256x512xi32>
      %c0_11 = arith.constant 0 : index
      %c0_12 = arith.constant 0 : index
      %33 = vector.load %arg14[%c0_11, %c0_12] : memref<1x512xf32, #tpu.memory_space<vmem>>, vector<1x512xf32>
      %cst = arith.constant 0.000000e+00 : f32
      %34 = vector.shape_cast %33 : vector<1x512xf32> to vector<1x512xf32>
      %35 = vector.broadcast %34 : vector<1x512xf32> to vector<256x512xf32>
      %36 = vector.broadcast %cst : f32 to vector<256x512xf32>
      %37 = arith.select %32, %35, %36 : vector<256x512xi1>, vector<256x512xf32>
      %38 = vector.shape_cast %30 : vector<1x512xf32> to vector<1x512xf32>
      %39 = vector.broadcast %38 : vector<1x512xf32> to vector<256x512xf32>
      %40 = arith.select %29, %39, %37 : vector<256x512xi1>, vector<256x512xf32>
      %41 = vector.shape_cast %27 : vector<1x512xf32> to vector<1x512xf32>
      %42 = vector.broadcast %41 : vector<1x512xf32> to vector<256x512xf32>
      %43 = arith.select %26, %42, %40 : vector<256x512xi1>, vector<256x512xf32>
      %44 = vector.shape_cast %24 : vector<1x512xf32> to vector<1x512xf32>
      %45 = vector.broadcast %44 : vector<1x512xf32> to vector<256x512xf32>
      %46 = arith.select %23, %45, %43 : vector<256x512xi1>, vector<256x512xf32>
      %c0_13 = arith.constant 0 : index
      %c0_14 = arith.constant 0 : index
      %c0_15 = arith.constant 0 : index
      %47 = vector.load %arg9[%c0_13, %c0_14, %c0_15] : memref<1x4x512xf32, #tpu.memory_space<vmem>>, vector<1x4x512xf32>
      %48 = vector.shape_cast %47 : vector<1x4x512xf32> to vector<4x512xf32>
      %c0_16 = arith.constant 0 : index
      %c0_17 = arith.constant 0 : index
      %c0_18 = arith.constant 0 : index
      %49 = vector.load %arg8[%c0_16, %c0_17, %c0_18] : memref<1x4x256xf32, #tpu.memory_space<vmem>>, vector<1x4x256xf32>
      %50 = vector.shape_cast %49 : vector<1x4x256xf32> to vector<4x256xf32>
      %cst_19 = arith.constant dense<0.000000e+00> : vector<4x512xf32>
      %51 = tpu.matmul %50, %46, %cst_19 {dimension_numbers = #tpu.dot_dimension_numbers<[1], [0], [0], [1], [0, 0, 1, 1], [], []>} : vector<4x256xf32>, vector<256x512xf32>, vector<4x512xf32> -> vector<4x512xf32>
      %52 = arith.addf %48, %51 : vector<4x512xf32>
      %c0_20 = arith.constant 0 : index
      %c0_21 = arith.constant 0 : index
      %c0_22 = arith.constant 0 : index
      %53 = vector.load %arg9[%c0_20, %c0_21, %c0_22] : memref<1x4x512xf32, #tpu.memory_space<vmem>>, vector<1x4x512xf32>
      %54 = vector.shape_cast %53 : vector<1x4x512xf32> to vector<4x512xf32>
      %55 = vector.shape_cast %52 : vector<4x512xf32> to vector<1x4x512xf32>
      tpu.vector_store %arg9[%c0_20, %c0_21, %c0_22], %55 {strides = array<i32>} : memref<1x4x512xf32, #tpu.memory_space<vmem>>, vector<1x4x512xf32>,
    } else {
    }
    return
  }
  func.func @transform_0(%arg0: i32, %arg1: i32, %arg2: i32, %arg3: memref<4xi32, #tpu.memory_space<smem>>, %arg4: memref<4xi32, #tpu.memory_space<smem>>) -> i32 {
    %c0_i32 = arith.constant 0 : i32
    %c0_i32_0 = arith.constant 0 : i32
    return %c0_i32 : i32
  }
  func.func @transform_1(%arg0: i32, %arg1: i32, %arg2: i32, %arg3: memref<4xi32, #tpu.memory_space<smem>>, %arg4: memref<4xi32, #tpu.memory_space<smem>>) -> i32 {
    %c0_i32 = arith.constant 0 : i32
    %c0_i32_0 = arith.constant 0 : i32
    return %c0_i32 : i32
  }
  func.func @transform_2(%arg0: i32, %arg1: i32, %arg2: i32, %arg3: memref<4xi32, #tpu.memory_space<smem>>, %arg4: memref<4xi32, #tpu.memory_space<smem>>) -> (i32, i32, i32) {
    %c0_i32 = arith.constant 0 : i32
    %c0_i32_0 = arith.constant 0 : i32
    return %arg0, %c0_i32, %arg1 : i32, i32, i32
  }
  func.func @transform_3(%arg0: i32, %arg1: i32, %arg2: i32, %arg3: memref<4xi32, #tpu.memory_space<smem>>, %arg4: memref<4xi32, #tpu.memory_space<smem>>) -> (i32, i32, i32) {
    %c2_i32 = arith.constant 2 : i32
    %0 = arith.muli %arg0, %c2_i32 : i32
    %1 = arith.addi %0, %arg1 : i32
    %2 = arith.index_cast %1 : i32 to index
    %3 = memref.load %arg4[%2] : memref<4xi32, #tpu.memory_space<smem>>
    %c1_i32 = arith.constant 1 : i32
    %4 = arith.subi %3, %c1_i32 : i32
    %c0_i32 = arith.constant 0 : i32
    %5 = arith.maxsi %4, %c0_i32 : i32
    %6 = arith.index_cast %1 : i32 to index
    %7 = memref.load %arg3[%6] : memref<4xi32, #tpu.memory_space<smem>>
    %8 = arith.minsi %arg2, %5 : i32
    %9 = arith.addi %7, %8 : i32
    %c0_i32_0 = arith.constant 0 : i32
    %c0_i32_1 = arith.constant 0 : i32
    return %arg0, %c0_i32_0, %9 : i32, i32, i32
  }
  func.func @transform_4(%arg0: i32, %arg1: i32, %arg2: i32, %arg3: memref<4xi32, #tpu.memory_space<smem>>, %arg4: memref<4xi32, #tpu.memory_space<smem>>) -> (i32, i32, i32) {
    %c0_i32 = arith.constant 0 : i32
    %c0_i32_0 = arith.constant 0 : i32
    return %arg0, %c0_i32, %arg1 : i32, i32, i32
  }
}

</mosaic_0001>

<bundles_post_ra>
// kernel: tpu_custom_call.1
= control target key start
LH: loop header
LB: loop body
LE: loop exit
PB: predicated region body
PF: predicated region fallthrough
CT: control target
= control target key end

     0   :  { %s3134_s27 = smov [#allocation8]   ;;  %s3135_s28 = smov [#allocation9]   ;;  %s5212_s0 = inlined_call_operand.hbm [shape: s32[4], index: 0, kind: input, shape index: {}]   ;;  %s5213_s2 = inlined_call_operand.vmem [shape: f32[32], index: 2, kind: input, shape index: {}]   ;;  %s5214_s3 = inlined_call_operand.vmem [shape: f32[18], index: 3, kind: input, shape index: {}]   ;;  %s5215_s4 = inlined_call_operand.hbm [shape: f32[2,1,1024], index: 4, kind: input, shape index: {}]   ;;  %s5216_s5 = inlined_call_operand.hbm [shape: f32[2,4,1024], index: 5, kind: input, shape index: {}]   ;;  %s5217_s6 = inlined_call_operand.hbm [shape: f32[2,4,1024], index: 6, kind: output, shape index: {}]   ;;  %s5218_s1 = inlined_call_operand.hbm [shape: s32[4], index: 1, kind: input, shape index: {}]  }
   0x1   :  { %5234 = sst [smem:[#allocation43_spill]] %s5213_s2  ;;  %s12_s23 = sshll.u32 %s5212_s0, 4  ;;  %s13_s23 = int_to_ptr.hbm [resolvable:$true] %s12_s23 }
   0x2   :  { %5235 = sst [smem:[#allocation44_spill]] %s5214_s3  ;;  %s17_s26 = sshll.u32 %s5218_s1, 4  ;;  %s18_s26 = int_to_ptr.hbm [resolvable:$true] %s17_s26 }
   0x3   :  { %5236 = sst [smem:[#allocation45_spill]] %s5215_s4 }
   0x4   :  { %5237 = sst [smem:[#allocation46_spill]] %s5217_s6 }
   0x5   :  { %15 = dma.hbm_to_smem %s13_s23, 16, %s3134_s27, [#allocation7] }
   0x6   :  { %20 = dma.hbm_to_smem %s18_s26, 16, %s3135_s28, [#allocation7] }
   0x7   :  { %3060 = dma.done.wait [#allocation7], 32 }
   0x8   :  { %3061 = vsyncadd [#allocation7], 4294967264 }
   0x9   :  { %23 = sfence }
   0xa   :  { %24 = vsyncpa [#allocation13], 0 }
   0xb   :  { %25 = vsyncpa [#allocation15], 0 }
   0xc   :  { %26 = vsyncpa [#allocation11], 0 }
   0xd   :  { %28 = vsyncpa [#allocation11 + $0x1], 0 }
   0xe   :  { %29 = vsyncpa [#allocation18], 0 }
   0xf   :  { %31 = vsyncpa [#allocation18 + $0x1], 0 }
  0x10   :  { %32 = vsyncpa [#allocation12], 0 }
  0x11   :  { %34 = vsyncpa [#allocation12 + $0x1], 0  ;;  %s3181_s0 = smov 0   ;;  %s3183_s1 = smov 0  }
  0x12   :  { %s3185_s29 = smov 0   ;;  %s3187_s30 = smov 0  }
  0x13   :  { %s3189_s7 = smov 0   ;;  %s3191_s8 = smov 0  }
  0x14   :  { %s3193_s9 = smov 0   ;;  %s3195_s10 = smov 0  }
  0x15   :  { %s3197_s11 = smov 0   ;;  %s3199_s12 = smov 0  }
  0x16   :  { %s3201_s13 = smov 0   ;;  %s3203_s14 = smov 0  }
  0x17   :  { %s3205_s15 = smov 0  }
  0x18 LB: > { %5238 = sst [smem:[#allocation30_spill]] %s3104_s8  ;;  %s2610_s16 = sadd.s32 4294967295, %s3132_s15   ;;  %s3132_s15 = sphi %s3205_s15, %s40_s15   ;;  %s3128_s14 = sphi %s3203_s14, %s5321_s14   ;;  %s3124_s13 = sphi %s3201_s13, %s5309_s13   ;;  %s3120_s12 = sphi %s3199_s12, %s5320_s12   ;;  %s3116_s11 = sphi %s3197_s11, %s5319_s11   ;;  %s3112_s10 = sphi %s3195_s10, %s5307_s10   ;;  %s3108_s9 = sphi %s3193_s9, %s5318_s9   ;;  %s3104_s8 = sphi %s3191_s8, %s5317_s8   ;;  %s3100_s7 = sphi %s3189_s7, %s5316_s7   ;;  %s3096_s30 = sphi %s3187_s30, %s5315_s30   ;;  %s3092_s29 = sphi %s3185_s29, %s5314_s29   ;;  %s3088_s1 = sphi %s3183_s1, %s5313_s1   ;;  %s3084_s0 = sphi %s3181_s0, %s5312_s0  }
  0x19   : > { %5239 = sst [smem:[#allocation31_spill]] %s3108_s9  ;;  %p171_p0 = scmp.ne.s32.totalorder %s3088_s1, %s3084_s0 }
  0x1a   : > { %5240 = sst [smem:[#allocation32_spill]] %s3112_s10  ;;  %p3246_p1 = scmp.eq.s32.totalorder %s2610_s16, 0 }
  0x1b   : > { %5241 = sst [smem:[#allocation33_spill]] %s3116_s11  ;;  %p3250_p2 = scmp.eq.s32.totalorder %s2610_s16, 11 }
  0x1c   : > { %5242 = sst [smem:[#allocation34_spill]] %s3124_s13  ;;  %p2616_p3 = scmp.ge.s32.totalorder %s3132_s15, 1 }
  0x1d   : > { %p210_p4 = scmp.lt.s32.totalorder %s3132_s15, 13  ;;  %p3258_p5 = por %p171_p0, %p3246_p1 }
  0x1e   : > { %s5248_s2 = sld [smem:[#allocation43_spill]]  ;;  %s3136_s27 = smov [#allocation10]  }
  0x1f   : > { %s5245_s19 = scalar_select %p3258_p5, 1, 0 }
  0x20   : > { %p3262_p6 = pnand %p2616_p3, %p210_p4  ;;  %s5249_s3 = sld [smem:[#allocation44_spill]] }
  0x21   : > { %5246 = sst [smem:[#allocation35_spill]] %s5245_s19  ;;  %s3137_s28 = smov [#allocation14]  }
  0x22   : > { %p2713_p7 = pneg %p3262_p6  ;;  %s2611_s0 = sadd.s32 4294967294, %s3132_s15  }
  0x23   : > { %s52_s16 = sadd.s32 1, %s3120_s12  ;;  %s55_s21 = sadd.s32 1, %s3124_s13 }
  0x24   : > { %s222_s23 = sshll.u32 %s5248_s2, 4  ;;  %p2714_p8 = pnand %p2713_p7, %p3246_p1  ;;  %s223_s23 = int_to_ptr.vmem [resolvable:$true] %s222_s23 }
  0x25   : > { %p53_p9 = scmp.ge.s32.totalorder %s52_s16, 3  ;;  %s59_s22 = sadd.s32 1, %s3128_s14 }
  0x26   : > { %s232_s26 = sshll.u32 %s5249_s3, 4  ;;  %p117_p10 = scmp.ne.s32.totalorder %s3104_s8, %s3100_s7  ;;  %s233_s26 = int_to_ptr.vmem [resolvable:$true] %s232_s26 }
  0x27   : > { %2716 = dma.vmem_to_smem (!%p2714_p8), %s223_s23, 16, %s3136_s27, [#allocation13]  }
  0x28   : > { %2719 = dma.vmem_to_smem (!%p2714_p8), %s233_s26, 16, %s3137_s28, [#allocation15]  }
  0x29   : > { %s5323_s16 = smov (%p53_p9, %s52_s16), 0  ;;  %s5325_s21 = smov (!%p53_p9, %s55_s21), %s3124_s13 }
  0x2a   : > { %5250 = sst [smem:[#allocation36_spill]] %s5323_s16  ;;  %p5228_p11 = scmp.eq.s32.totalorder %s3132_s15, 0 }
  0x2b   : > { %p123_p12 = scmp.ne.s32.totalorder %s3100_s7, %s3096_s30  ;;  %p57_p13 = scmp.ge.s32.totalorder %s5325_s21, 2 }
  0x2c   : > { %s2612_s23 = sshll.u32 %s3128_s14, 1  ;;  %p3295_p0 = por %p5228_p11, %p117_p10 }
  0x2d   : > { %p3304_p3 = por %p3246_p1, %p123_p12  ;;  %s5327_s21 = smov (%p57_p13, %s5325_s21), 0 }
  0x2e   : > { %5254 = sst [smem:[#allocation38_spill]] %s5327_s21  ;;  %s5329_s22 = smov (!%p57_p13, %s59_s22), %s3128_s14 }
  0x2f   : > { %s5252_s26 = scalar_select %p3304_p3, 1, 0 }
  0x30   : > { %s106_s27 = ssub.s32 %s3124_s13, %s5327_s21  ;;  %s3314_s28 = sadd.s32 %s3124_s13, %s2612_s23 }
  0x31   : > { %5253 = sst [smem:[#allocation37_spill]] %s5252_s26  ;;  %p61_p4 = scmp.ge.s32.totalorder %s5329_s22, 2 }
  0x32   : > { %s135_s24 = sld [smem:[#allocation9 + %s3314_s28]]  ;;  %p3325_p7 = por %p3250_p2, %p117_p10 }
  0x33   : > { %s3318_s2 = sld [smem:[#allocation8 + %s3314_s28]]  ;;  %s5331_s22 = smov (%p61_p4, %s5329_s22), 0 }
  0x34   : > { %s5255_s3 = scalar_select %p3325_p7, 1, 0 }
  0x35   : > { %5257 = sst [smem:[#allocation40_spill]] %s5331_s22  ;;  %p3331_p8 = scmp.eq.s32.totalorder %s2611_s0, 11 }
  0x36   : > { %5256 = sst [smem:[#allocation39_spill]] %s5255_s3  ;;  %p2737_p9 = scmp.lt.s32.totalorder %s3132_s15, 12 }
  0x37   : > { %s3338_s6 = ssub.s32 %s3128_s14, %s5331_s22  ;;  %s2614_s18 = sshll.u32 %s5331_s22, 1 }
  0x38   : > { %s107_s11 = sor.u32 %s106_s27, %s3338_s6  ;;  %s144_s3 = sadd.s32 %s2614_s18, %s5327_s21 }
  0x39   : > { %p108_p2 = scmp.eq.s32.totalorder %s107_s11, 0  ;;  %s2613_s10 = sadd.s32 4294967295, %s135_s24 }
  0x3a   : > { %p137_p10 = scmp.gt.s32.totalorder %s2613_s10, 0  ;;  %s145_s9 = sld [smem:[#allocation9 + %s144_s3]] }
  0x3b   : > { %s5259_s19 = sadd.s32 1, %s3104_s8  ;;  %s149_s26 = sld [smem:[#allocation8 + %s144_s3]] }
  0x3c   : > { %s3346_s0 = scalar_select %p108_p2, %s3104_s8, %s5259_s19  }
  0x3d   : > { %s5333_s10 = smov (!%p137_p10, %s2613_s10), 0  ;;  %p3353_p13 = por %p3331_p8, %p123_p12 }
  0x3e   : > { %5260 = sst [smem:[#allocation41_spill]] %s3346_s0  ;;  %p140_p4 = scmp.lt.s32.totalorder %s3120_s12, %s5333_s10 }
  0x3f   : > { %s5261_s22 = scalar_select %p3353_p13, 1, 0 }
  0x40   : > { %s243_s27 = sand.u32 1, %s3104_s8   ;;  %s2615_s24 = sadd.s32 4294967295, %s145_s9 }
  0x41   : > { %s2620_s11 = sshll.u32 %s243_s27, 2  ;;  %p147_p11 = scmp.gt.s32.totalorder %s2615_s24, 0 }
  0x42   : > { %s2621_s19 = sshll.u32 %s3124_s13, 2  ;;  %s5232_s18 = sshll.u32 %s3128_s14, 3 }
  0x43   : > { %s247_s21 = scalar_lea.vmem [#allocation16], %s2620_s11  ;;  %s5335_s24 = smov (!%p147_p11, %s2615_s24), 0 }
  0x44   : > { %s257_s3 = sshll.u32 %s247_s21, 4  ;;  %s252_s23 = sadd.s32 %s5232_s18, %s2621_s19  ;;  %s258_s3 = int_to_ptr.vmem [resolvable:$true] %s257_s3 }
  0x45   : > { %s5262_s4 = sld [smem:[#allocation45_spill]]  ;;  %p2721_p12 = pnand %p2737_p9, %p3295_p0 }
  0x46   : > { %s244_s11 = scalar_lea.sflag [#allocation11], %s243_s27  ;;  %p150_p11 = scmp.lt.s32.totalorder %s5323_s16, %s5335_s24 }
  0x47   : > { %s141_s21 = scalar_select %p140_p4, %s3120_s12, %s5333_s10 }
  0x48   : > { %s151_s19 = scalar_select %p150_p11, %s5323_s16, %s5335_s24 }
  0x49   : > { %s142_s18 = sadd.s32 %s141_s21, %s3318_s2  ;;  %p165_p8 = scmp.ne.s32.totalorder %s3092_s29, %s3088_s1 }
  0x4a   : > { %s152_s8 = sadd.s32 %s151_s19, %s149_s26  ;;  %s158_s0 = sadd.s32 1, %s3092_s29 }
  0x4b   : > { %s253_s9 = scalar_lea.hbm %s5262_s4, %s252_s23  ;;  %s154_s25 = ssub.s32 %s142_s18, %s152_s8 }
  0x4c   : > { %s255_s13 = sshll.u32 %s253_s9, 4  ;;  %s155_s23 = sor.u32 %s154_s25, %s3338_s6  ;;  %s256_s13 = int_to_ptr.hbm [resolvable:$true] %s255_s13 }
  0x4d   : > { %2723 = dma.hbm_to_vmem [thread:$0]  (!%p2721_p12), %s256_s13, 64, %s258_s3, %s244_s11  }
  0x4e   : > { %p5263_p0 = scmp.eq.s32.totalorder %s3132_s15, 0  ;;  %p156_p10 = scmp.eq.s32.totalorder %s155_s23, 0 }
  0x4f   : > { %s264_s27 = sand.u32 1, %s3092_s29   ;;  %s5266_s25 = sshll.u32 %s3128_s14, 3 }
  0x50   : > { %p167_p2 = por %p165_p8, %p5263_p0  ;;  %s2623_s3 = sshll.u32 %s264_s27, 3 }
  0x51   : > { %s3389_s10 = scalar_select %p156_p10, %s3092_s29, %s158_s0  }
  0x52   : > { %p3384_p12 = pnand %p2737_p9, %p167_p2  ;;  %s5337_s28 = smov (!%p167_p2, %s3314_s28), 0 }
  0x53   : > { %5265 = sst [smem:[#allocation42_spill]] %s3389_s10  ;;  %s5341_s28 = smov (!%p2737_p9, %s5337_s28), 0 }
  0x54   : > { %s2700_s2 = scalar_select %p167_p2, [#allocation9], [#allocation20] }
  0x55   : > { %s2702_s6 = scalar_select %p167_p2, [#allocation8], [#allocation21] }
  0x56   : > { %s5339_s2 = smov (!%p2737_p9, %s2700_s2), [#allocation22]  ;;  %s268_s19 = scalar_lea.vmem [#allocation17], %s2623_s3 }
  0x57   : > { %s271_s26 = sld [smem:[%s5339_s2 + %s5341_s28]]  ;;  %s5343_s6 = smov (!%p2737_p9, %s2702_s6), [#allocation23] }
  0x58   : > { %s275_s18 = sld [smem:[%s5343_s6 + %s5341_s28]]  ;;  %s289_s8 = sshll.u32 %s268_s19, 4  ;;  %s290_s8 = int_to_ptr.vmem [resolvable:$true] %s289_s8 }
  0x59   : > { %s265_s28 = scalar_lea.sflag [#allocation18], %s264_s27  ;;  %p2954_p8 = pneg %p3384_p12 }
  0x5a   : > { %s2957_s3 = scalar_lea.hbm %s5216_s5, 64 }
  0x5d   : > { %s2625_s24 = sadd.s32 4294967295, %s271_s26 }
  0x5e   : > { %p273_p4 = scmp.gt.s32.totalorder %s2625_s24, 0 }
  0x60   : > { %s5345_s24 = smov (!%p273_p4, %s2625_s24), 0 }
  0x61   : > { %p276_p11 = scmp.lt.s32.totalorder %s3120_s12, %s5345_s24 }
  0x63   : > { %s277_s9 = scalar_select %p276_p11, %s3120_s12, %s5345_s24 }
  0x65   : > { %s278_s11 = sadd.s32 %s277_s9, %s275_s18 }
  0x66   : > { %s2626_s21 = sshll.u32 %s278_s11, 1 }
  0x67   : > { %s283_s0 = sadd.s32 %s2626_s21, %s5266_s25 }
  0x68   : > { %s2628_s23 = sshll.u32 %s283_s0, 2 }
  0x69   : > { %s285_s16 = scalar_lea.hbm %s5216_s5, %s2628_s23 }
  0x6a   : > { %s287_s26 = sshll.u32 %s285_s16, 4  ;;  %s288_s26 = int_to_ptr.hbm [resolvable:$true] %s287_s26 }
  0x6b   : > { %s2950_s6 = sshra.s32 %s288_s26, 4  ;;  %s2951_s6 = int_to_ptr.hbm [resolvable:$true] %s2950_s6 }
  0x6c   : > { %s2952_s10 = scalar_lea.hbm %s2951_s6, 8  ;;  %p2958_p10 = scmp.lt.s32.totalorder %s2951_s6, %s5216_s5 }
  0x6d   : > { %p2953_p9 = scmp.ne.s32.totalorder %s2951_s6, %s2952_s10  ;;  %p2959_p4 = scmp.lt.s32.totalorder %s2957_s3, %s2952_s10 }
  0x6f   : > { %p2955_p0 = pnand %p2954_p8, %p2953_p9  ;;  %p2960_p11 = por %p2959_p4, %p2958_p10 }
  0x71   : > { %p2956_p2 = pneg %p2955_p0 }
  0x73   : > { %p2961_p13 = pnand %p2960_p11, %p2956_p2 }
  0x75   : > { %2964 = shalt.err (!%p2961_p13)
}
  0x76   : > { %2730 = dma.hbm_to_vmem [thread:$0]  (!%p3384_p12), %s288_s26, 128, %s290_s8, %s265_s28  }
  0x77   : > { %298 = sbr.rel (%p3262_p6) target bundleno = 777 (0x309), region = 36 }
  0x7c   : > { %3063 = dma.done.wait (%p3246_p1), [#allocation13], 16  }
  0x7d   : > { %3065 = vsyncadd (%p3246_p1), [#allocation13], 4294967280 }
  0x7e   : > { %3067 = dma.done.wait (%p3246_p1), [#allocation15], 16  }
  0x7f   : > { %3069 = vsyncadd (%p3246_p1), [#allocation15], 4294967280  ;;  %s3427_s16 = sand.u32 1, %s3100_s7  }
  0x80   : > { %s2632_s20 = sshll.u32 %s3427_s16, 2  ;;  %s311_s13 = scalar_lea.sflag [#allocation11], %s3427_s16 }
  0x81   : > { %s3431_s10 = scalar_lea.vmem [#allocation16], %s2632_s20 }
  0x82   : > { %3071 = dma.done.wait (%p3304_p3), %s311_s13, 64  }
  0x83   : > { %3073 = vsyncadd (%p3304_p3), %s311_s13, 4294967232  ;;  %s320_s21 = sand.u32 1, %s3088_s1  }
  0x84   : > { %s3438_s17 = sshll.u32 %s320_s21, 3  ;;  %s321_s19 = scalar_lea.sflag [#allocation18], %s320_s21 }
  0x85   : > { %s324_s8 = scalar_lea.vmem [#allocation17], %s3438_s17 }
  0x86   : > { %3075 = dma.done.wait (%p3258_p5), %s321_s19, 128  }
  0x87   : > { %3077 = vsyncadd (%p3258_p5), %s321_s19, 4294967168 }
  0x88   : > { %330 = sfence }
  0x89   : > { %s2634_s25 = sshll.u32 %s3427_s16, 4  ;;  %s5269_s23 = sld [smem:[#allocation31_spill]] }
  0x8a   : > { %s3446_s0 = scalar_lea.vmem [#allocation19], %s2634_s25 }
  0x8f   : > { %p2635_p1 = scmp.ne.s32.totalorder %s5269_s23, 0 }
  0x90   : > { %s5270_s2 = sld [smem:[#allocation32_spill]] (!%p2635_p1) }
  0x91   : > { %372 = sbr.rel (%p2635_p1) target bundleno = 286 (0x11e), region = 56  ;;  %s5271_s26 = sld [smem:[#allocation33_spill]] (!%p2635_p1) }
  0x96   : > { %v375_v0 = vlaneseq  ;;  %v3138_v1 = vmov 0.0   ;;  %v3139_v2 = vmov 32.0   ;;  %s2636_s28 = sshll.u32 %s5270_s2, 9  ;;  %v429_v34 = vld [vmem:[%s3431_s10] sm:$0xf] }
  0x97   : > { %373 = vst [vmem:[%s3446_s0] sm:$0xff] %v3138_v1  ;;  %2851 = vrcp.f32 %v3139_v2  ;;  %v381_v7 = vstv %s2636_s28  ;;  %s3456_s6 = sshll.u32 %s5271_s26, 4 }
  0x98   : > { %374 = vst [vmem:[%s3446_s0 + $0x8] sm:$0xff] %v3138_v1  ;;  %v376_v3 = vand.u32 127, %v375_v0  ;;  %s437_s24 = sadd.s32 1, %s3456_s6  ;;  %s454_s3 = sadd.s32 2, %s3456_s6 }
  0x99   : > { %s3459_s18 = sld [smem:[#allocation10 + %s437_s24]]  ;;  %s479_s9 = sadd.s32 5, %s3456_s6 }
  0x9a   : > { %v377_v4 = vadd.s32 128, %v376_v3  ;;  %v378_v5 = vadd.s32 256, %v376_v3  ;;  %v379_v6 = vadd.s32 384, %v376_v3  ;;  %v382_v9 = vadd.s32 %v381_v7, %v376_v3  ;;  %s3464_s11 = sld [smem:[#allocation10 + %s3456_s6]]  ;;  %s465_s4 = sadd.s32 3, %s3456_s6 }
  0x9b   : > { %s455_s20 = sld [smem:[#allocation10 + %s454_s3]]  ;;  %s472_s13 = sadd.s32 4, %s3456_s6 }
  0x9c   : > { %v383_v11 = vadd.s32 %v381_v7, %v377_v4  ;;  %v384_v12 = vadd.s32 %v381_v7, %v378_v5  ;;  %v385_v13 = vadd.s32 %v381_v7, %v379_v6  ;;  %v386_v15 = vcvt.s32.f32 %v382_v9  ;;  %s3468_s27 = sld [smem:[#allocation10 + %s479_s9]]  ;;  %s496_s19 = sadd.s32 6, %s3456_s6 }
  0x9d   : > { %v2852_v8 = vpop.eup %2851  ;;  %s466_s21 = sld [smem:[#allocation10 + %s465_s4]]  ;;  %s521_s25 = sadd.s32 9, %s3456_s6 }
  0x9e   : > { %v391_v10 = vmul.f32 32.0, %v2852_v8  ;;  %v387_v17 = vcvt.s32.f32 %v383_v11  ;;  %v388_v18 = vcvt.s32.f32 %v384_v12  ;;  %v389_v19 = vcvt.s32.f32 %v385_v13  ;;  %s473_s23 = sld [smem:[#allocation10 + %s472_s13]]  ;;  %s514_s28 = sadd.s32 8, %s3456_s6 }
  0x9f   : > { %vm395_vm0 = vweird.f32 %v2852_v8  ;;  %v439_v35 = vstv %s3459_s18  ;;  %s497_s2 = sld [smem:[#allocation10 + %s496_s19]]  ;;  %s538_s3 = sadd.s32 10, %s3456_s6 }
  0xa0   : > { %v392_v14 = vsub.f32 1.0, %v391_v10  ;;  %s3475_s24 = sld [smem:[#allocation10 + %s521_s25]]  ;;  %v3478_v40 = vmul.f32 %v439_v35, %v429_v34  ;;  %v432_v42 = vstv %s3464_s11  ;;  %s507_s10 = sadd.s32 7, %s3456_s6 }
  0xa1   : > { %s3480_s9 = sld [smem:[#allocation10 + %s514_s28]]  ;;  %v456_v43 = vstv %s455_s20  ;;  %s549_s18 = sadd.s32 11, %s3456_s6 }
  0xa2   : > { %v393_v16 = vmul.f32 %v2852_v8, %v392_v14  ;;  %v481_v44 = vstv %s3468_s27  ;;  %s3484_s4 = sld [smem:[#allocation10 + %s538_s3]]  ;;  %v442_v53 = vperm.slane %v3478_v40, 0  ;;  %v443_v54 = vperm.slane %v3478_v40, 1  ;;  %s3516_s11 = smul.u32 9, %s5271_s26 }
  0xa3   : > { %v3486_v48 = vstv %s466_s21  ;;  %v3490_v56 = vmul.f32 %v481_v44, %v429_v34  ;;  %v444_v58 = vperm.slane %v3478_v40, 2  ;;  %v445_v59 = vperm.slane %v3478_v40, 3  ;;  %s3522_s6 = sld [smem:[#allocation10 + %s507_s10]] }
  0xa4   : > { %v394_v20 = vadd.f32 %v2852_v8, %v393_v16  ;;  %v474_v55 = vstv %s473_s23  ;;  %s3524_s26 = sld [smem:[#allocation10 + %s549_s18]]  ;;  %s563_s20 = sadd.s32 1, %s3516_s11 }
  0xa5   : > { %v498_v60 = vstv %s497_s2  ;;  %v484_v7 = vperm.slane %v3490_v56, 0  ;;  %v486_v9 = vperm.slane %v3490_v56, 2  ;;  %v487_v12 = vperm.slane %v3490_v56, 3  ;;  %s3528_s13 = sld [smem:[#allocation14 + %s3516_s11]]  ;;  %s574_s27 = sadd.s32 2, %s3516_s11 }
  0xa6   : > { %v396_v21 = vsel %vm395_vm0, %v2852_v8, %v394_v20  ;;  %v523_v2 = vstv %s3475_s24  ;;  %v485_v8 = vperm.slane %v3490_v56, 1  ;;  %s614_s21 = sadd.s32 6, %s3516_s11  ;;  %s3532_s19 = sld [smem:[#allocation14 + %s563_s20]] }
  0xa7   : > { %v397_v22 = vmul.f32 %v396_v21, %v386_v15  ;;  %v398_v23 = vmul.f32 %v396_v21, %v387_v17  ;;  %v399_v24 = vmul.f32 %v396_v21, %v388_v18  ;;  %v400_v25 = vmul.f32 %v396_v21, %v389_v19  ;;  %s621_s25 = sadd.s32 7, %s3516_s11  ;;  %s3535_s23 = sld [smem:[#allocation14 + %s574_s27]] }
  0xa8   : > { %v516_v10 = vstv %s3480_s9  ;;  %v524_v13 = vmul.f32 %v523_v2, %v429_v34  ;;  %v540_v14 = vstv %s3484_s4  ;;  %s632_s2 = sadd.s32 8, %s3516_s11  ;;  %s3538_s28 = sld [smem:[#allocation14 + %s614_s21]] }
  0xa9   : > { %v401_v26 = vfloor.f32 %v397_v22  ;;  %v402_v27 = vfloor.f32 %v398_v23  ;;  %v403_v28 = vfloor.f32 %v399_v24  ;;  %v404_v29 = vfloor.f32 %v400_v25  ;;  %s585_s24 = sadd.s32 3, %s3516_s11  ;;  %s3543_s3 = sld [smem:[#allocation14 + %s621_s25]] }
  0xaa   : > { %s3547_s9 = sld [smem:[#allocation14 + %s632_s2]]  ;;  %v509_v2 = vstv %s3522_s6  ;;  %s592_s10 = sadd.s32 4, %s3516_s11 }
  0xab   : > { %v405_v30 = vmul.f32 32.0, %v401_v26  ;;  %v406_v31 = vmul.f32 32.0, %v402_v27  ;;  %v407_v32 = vmul.f32 32.0, %v403_v28  ;;  %v408_v33 = vmul.f32 32.0, %v404_v29  ;;  %s3555_s4 = sld [smem:[#allocation14 + %s585_s24]]  ;;  %s603_s6 = sadd.s32 5, %s3516_s11 }
  0xac   : > { %v421_v49 = vadd.f32 0.5, %v401_v26  ;;  %v422_v50 = vadd.f32 0.5, %v402_v27  ;;  %v423_v51 = vadd.f32 0.5, %v403_v28  ;;  %v424_v52 = vadd.f32 0.5, %v404_v29  ;;  %s3577_s18 = sld [smem:[#allocation14 + %s592_s10]] }
  0xad   : > { %v409_v36 = vsub.f32 %v386_v15, %v405_v30  ;;  %v410_v37 = vsub.f32 %v387_v17, %v406_v31  ;;  %v411_v38 = vsub.f32 %v388_v18, %v407_v32  ;;  %v412_v39 = vsub.f32 %v389_v19, %v408_v33  ;;  %s604_s11 = sld [smem:[#allocation14 + %s603_s6]] }
  0xae   : > { %v3495_v3 = vsub.f32 32.0, %v421_v49  ;;  %v3497_v4 = vsub.f32 32.0, %v422_v50  ;;  %v3499_v5 = vsub.f32 32.0, %v423_v51  ;;  %v3501_v6 = vsub.f32 32.0, %v424_v52 }
  0xaf   : > { %v413_v41 = vadd.f32 0.5, %v409_v36  ;;  %v414_v45 = vadd.f32 0.5, %v410_v37  ;;  %v415_v46 = vadd.f32 0.5, %v411_v38  ;;  %v416_v47 = vadd.f32 0.5, %v412_v39 }
  0xb0   : > { %v457_v19 = vmul.f32 %v456_v43, %v3495_v3  ;;  %v458_v20 = vmul.f32 %v456_v43, %v3497_v4  ;;  %v459_v21 = vmul.f32 %v456_v43, %v3499_v5  ;;  %v460_v22 = vmul.f32 %v456_v43, %v3501_v6 }
  0xb1   : > { %v417_v57 = vadd.f32 -16.0, %v413_v41  ;;  %v418_v61 = vadd.f32 -16.0, %v414_v45  ;;  %v419_v62 = vadd.f32 -16.0, %v415_v46  ;;  %v420_v63 = vadd.f32 -16.0, %v416_v47 }
  0xb2   : > { %v499_v23 = vmul.f32 %v498_v60, %v3495_v3  ;;  %v500_v24 = vmul.f32 %v498_v60, %v3497_v4  ;;  %v501_v25 = vmul.f32 %v498_v60, %v3499_v5  ;;  %v502_v26 = vmul.f32 %v498_v60, %v3501_v6 }
  0xb3   : > { %v433_v11 = vmul.f32 %v432_v42, %v417_v57  ;;  %v434_v15 = vmul.f32 %v432_v42, %v418_v61  ;;  %v435_v16 = vmul.f32 %v432_v42, %v419_v62  ;;  %v436_v17 = vmul.f32 %v432_v42, %v420_v63 }
  0xb4   : > { %v475_v18 = vmul.f32 %v474_v55, %v417_v57  ;;  %v476_v28 = vmul.f32 %v474_v55, %v418_v61  ;;  %v477_v29 = vmul.f32 %v474_v55, %v419_v62  ;;  %v478_v30 = vmul.f32 %v474_v55, %v420_v63 }
  0xb5   : > { %v450_v27 = vadd.f32 %v442_v53, %v433_v11  ;;  %v451_v31 = vadd.f32 %v443_v54, %v434_v15  ;;  %v452_v32 = vadd.f32 %v444_v58, %v435_v16  ;;  %v453_v33 = vadd.f32 %v445_v59, %v436_v17 }
  0xb6   : > { %v492_v34 = vadd.f32 %v484_v7, %v475_v18  ;;  %v517_v35 = vmul.f32 %v516_v10, %v417_v57  ;;  %v518_v36 = vmul.f32 %v516_v10, %v418_v61  ;;  %v526_v37 = vperm.slane %v524_v13, 0 }
  0xb7   : > { %v527_v38 = vperm.slane %v524_v13, 1  ;;  %v519_v39 = vmul.f32 %v516_v10, %v419_v62  ;;  %v520_v40 = vmul.f32 %v516_v10, %v420_v63  ;;  %v528_v41 = vperm.slane %v524_v13, 2 }
  0xb8   : > { %v529_v42 = vperm.slane %v524_v13, 3  ;;  %v461_v43 = vadd.f32 %v457_v19, %v450_v27  ;;  %v493_v44 = vadd.f32 %v485_v8, %v476_v28  ;;  %v494_v45 = vadd.f32 %v486_v9, %v477_v29 }
  0xb9   : > { %v495_v46 = vadd.f32 %v487_v12, %v478_v30  ;;  %v462_v47 = vadd.f32 %v458_v20, %v451_v31  ;;  %v463_v49 = vadd.f32 %v459_v21, %v452_v32  ;;  %v464_v50 = vadd.f32 %v460_v22, %v453_v33 }
  0xba   : > { %v503_v51 = vadd.f32 %v499_v23, %v492_v34  ;;  %v534_v52 = vadd.f32 %v526_v37, %v517_v35  ;;  %v535_v53 = vadd.f32 %v527_v38, %v518_v36  ;;  %v541_v54 = vmul.f32 %v540_v14, %v3495_v3 }
  0xbb   : > { %v542_v55 = vmul.f32 %v540_v14, %v3497_v4  ;;  %v536_v56 = vadd.f32 %v528_v41, %v519_v39  ;;  %v537_v57 = vadd.f32 %v529_v42, %v520_v40  ;;  %v543_v58 = vmul.f32 %v540_v14, %v3499_v5 }
  0xbc   : > { %v544_v59 = vmul.f32 %v540_v14, %v3501_v6  ;;  %v504_v60 = vadd.f32 %v500_v24, %v493_v44  ;;  %v505_v61 = vadd.f32 %v501_v25, %v494_v45  ;;  %v506_v62 = vadd.f32 %v502_v26, %v495_v46 }
  0xbd   : > { %v3550_v63 = vadd.f32 %v3486_v48, %v461_v43  ;;  %v551_v3 = vstv %s3524_s26  ;;  %v558_v4 = vstv %s3528_s13  ;;  %v3558_v7 = vadd.f32 %v3486_v48, %v462_v47 }
  0xbe   : > { %v3561_v5 = vadd.f32 %v3486_v48, %v463_v49  ;;  %v545_v6 = vadd.f32 %v541_v54, %v534_v52  ;;  %v546_v8 = vadd.f32 %v542_v55, %v535_v53  ;;  %v3565_v9 = vadd.f32 %v3486_v48, %v464_v50 }
  0xbf   : > { %v510_v10 = vadd.f32 %v509_v2, %v503_v51  ;;  %v547_v11 = vadd.f32 %v543_v58, %v536_v56  ;;  %v548_v12 = vadd.f32 %v544_v59, %v537_v57  ;;  %v3567_v13 = vadd.f32 %v509_v2, %v504_v60 }
  0xc0   : > { %v3569_v14 = vadd.f32 %v509_v2, %v505_v61  ;;  %v3571_v15 = vadd.f32 %v509_v2, %v506_v62  ;;  %v559_v16 = vmul.f32 %v558_v4, %v3550_v63  ;;  %v560_v17 = vmul.f32 %v558_v4, %v3558_v7 }
  0xc1   : > { %v561_v18 = vmul.f32 %v558_v4, %v3561_v5  ;;  %v562_v48 = vmul.f32 %v558_v4, %v3565_v9  ;;  %v616_v19 = vstv %s3538_s28  ;;  %v3580_v20 = vadd.f32 %v551_v3, %v545_v6 }
  0xc2   : > { %v3582_v21 = vadd.f32 %v551_v3, %v546_v8  ;;  %v565_v22 = vstv %s3532_s19  ;;  %v576_v23 = vstv %s3535_s23  ;;  %v3586_v24 = vadd.f32 %v551_v3, %v547_v11 }
  0xc3   : > { %v3588_v25 = vadd.f32 %v551_v3, %v548_v12  ;;  %v623_v26 = vstv %s3543_s3  ;;  %v634_v27 = vstv %s3547_s9  ;;  %v617_v28 = vmul.f32 %v616_v19, %v3550_v63 }
  0xc4   : > { %v618_v29 = vmul.f32 %v616_v19, %v3558_v7  ;;  %v619_v30 = vmul.f32 %v616_v19, %v3561_v5  ;;  %v620_v31 = vmul.f32 %v616_v19, %v3565_v9  ;;  %v566_v32 = vmul.f32 %v565_v22, %v510_v10 }
  0xc5   : > { %v567_v33 = vmul.f32 %v565_v22, %v3567_v13  ;;  %v568_v34 = vmul.f32 %v565_v22, %v3569_v14  ;;  %v587_v35 = vstv %s3555_s4  ;;  %v624_v36 = vmul.f32 %v623_v26, %v510_v10 }
  0xc6   : > { %v625_v37 = vmul.f32 %v623_v26, %v3567_v13  ;;  %v626_v38 = vmul.f32 %v623_v26, %v3569_v14  ;;  %v627_v39 = vmul.f32 %v623_v26, %v3571_v15  ;;  %v635_v40 = vmul.f32 %v634_v27, %v3580_v20 }
  0xc7   : > { %v636_v41 = vmul.f32 %v634_v27, %v3582_v21  ;;  %v637_v42 = vmul.f32 %v634_v27, %v3586_v24  ;;  %v638_v43 = vmul.f32 %v634_v27, %v3588_v25  ;;  %v628_v44 = vadd.f32 %v624_v36, %v617_v28 }
  0xc8   : > { %v629_v45 = vadd.f32 %v625_v37, %v618_v29  ;;  %v630_v46 = vadd.f32 %v626_v38, %v619_v30  ;;  %v631_v47 = vadd.f32 %v627_v39, %v620_v31  ;;  %v569_v49 = vmul.f32 %v565_v22, %v3571_v15 }
  0xc9   : > { %v577_v50 = vmul.f32 %v576_v23, %v3580_v20  ;;  %v578_v51 = vmul.f32 %v576_v23, %v3582_v21  ;;  %v594_v52 = vstv %s3577_s18  ;;  %v639_v53 = vadd.f32 %v635_v40, %v628_v44 }
  0xca   : > { %v640_v54 = vadd.f32 %v636_v41, %v629_v45  ;;  %v641_v55 = vadd.f32 %v637_v42, %v630_v46  ;;  %v642_v56 = vadd.f32 %v638_v43, %v631_v47  ;;  %v570_v57 = vadd.f32 %v566_v32, %v559_v16 }
  0xcb   : > { %v571_v58 = vadd.f32 %v567_v33, %v560_v17  ;;  %v579_v59 = vmul.f32 %v576_v23, %v3586_v24  ;;  %v580_v60 = vmul.f32 %v576_v23, %v3588_v25  ;;  %v572_v61 = vadd.f32 %v568_v34, %v561_v18 }
  0xcc   : > { %v643_v62 = vadd.f32 1e-07, %v639_v53  ;;  %v644_v2 = vadd.f32 1e-07, %v640_v54  ;;  %v645_v3 = vadd.f32 1e-07, %v641_v55  ;;  %v573_v4 = vadd.f32 %v569_v49, %v562_v48 }
  0xcd   : > { %v588_v6 = vmul.f32 %v587_v35, %v3550_v63  ;;  %v589_v8 = vmul.f32 %v587_v35, %v3558_v7  ;;  %v646_v11 = vadd.f32 1e-07, %v642_v56  ;;  %v595_v12 = vmul.f32 %v594_v52, %v510_v10 }
  0xce   : > { %v647_v19 = vand.u32 2147483647, %v643_v62  ;;  %v648_v22 = vand.u32 2147483647, %v644_v2  ;;  %v649_v26 = vand.u32 2147483647, %v645_v3  ;;  %v590_v16 = vmul.f32 %v587_v35, %v3561_v5 }
  0xcf   : > { %v596_v17 = vmul.f32 %v594_v52, %v3567_v13  ;;  %v597_v23 = vmul.f32 %v594_v52, %v3569_v14  ;;  %v650_v18 = vand.u32 2147483647, %v646_v11  ;;  %v591_v27 = vmul.f32 %v587_v35, %v3565_v9 }
  0xd0   : > { %vm651_vm1 = vcmp.gt.f32.partialorder %v647_v19, 1e-06  ;;  %vm652_vm2 = vcmp.gt.f32.partialorder %v648_v22, 1e-06  ;;  %vm653_vm3 = vcmp.gt.f32.partialorder %v649_v26, 1e-06  ;;  %v605_v63 = vstv %s604_s11 }
  0xd1   : > { %vm654_vm4 = vcmp.gt.f32.partialorder %v650_v18, 1e-06  ;;  %v655_v7 = vsel %vm651_vm1, %v643_v62, 1e-06  ;;  %v656_v48 = vsel %vm652_vm2, %v644_v2, 1e-06  ;;  %v598_v10 = vmul.f32 %v594_v52, %v3571_v15 }
  0xd2   : > { %v599_v28 = vadd.f32 %v595_v12, %v588_v6  ;;  %v3620_v29 = vsel %vm653_vm3, %v645_v3, 1e-06  ;;  %2853 = vrcp.f32 %v655_v7  ;;  %v600_v5 = vadd.f32 %v596_v17, %v589_v8 }
  0xd3   : > { %v601_v13 = vadd.f32 %v597_v23, %v590_v16  ;;  %v3622_v30 = vsel %vm654_vm4, %v646_v11, 1e-06  ;;  %2855 = vrcp.f32 %v656_v48  ;;  %v606_v9 = vmul.f32 %v605_v63, %v3580_v20 }
  0xd4   : > { %v607_v14 = vmul.f32 %v605_v63, %v3582_v21  ;;  %v608_v31 = vmul.f32 %v605_v63, %v3586_v24  ;;  %2857 = vrcp.f32 %v3620_v29  ;;  %v581_v32 = vadd.f32 %v577_v50, %v570_v57 }
  0xd5   : > { %v3628_v33 = vadd.f32 %v578_v51, %v571_v58  ;;  %v668_v15 = vand.u32 2147483647, %v655_v7  ;;  %v670_v34 = vand.u32 2147483648, %v655_v7  ;;  %2859 = vrcp.f32 %v3622_v30 }
  0xd6   : > { %v3631_v35 = vadd.f32 %v579_v59, %v572_v61  ;;  %v3633_v36 = vadd.f32 %v580_v60, %v573_v4  ;;  %v602_v37 = vadd.f32 %v598_v10, %v591_v27  ;;  %v609_v20 = vmul.f32 %v605_v63, %v3588_v25 }
  0xd7   : > { %v610_v21 = vadd.f32 %v606_v9, %v599_v28  ;;  %v611_v39 = vadd.f32 %v607_v14, %v600_v5  ;;  %v612_v24 = vadd.f32 %v608_v31, %v601_v13  ;;  %v685_v40 = vand.u32 2147483648, %v656_v48 }
  0xd8   : > { %v2854_v38 = vpop.eup %2853  ;;  %vm664_vm5 = vweird.f32 %v655_v7  ;;  %vm679_vm6 = vweird.f32 %v656_v48  ;;  %v683_v43 = vand.u32 2147483647, %v656_v48  ;;  %vm3636_vm7 = vcmp.eq.f32.partialorder %v668_v15, 8.507059e+37 }
  0xd9   : > { %v2856_v41 = vpop.eup %2855  ;;  %v660_v42 = vmul.f32 %v2854_v38, %v655_v7  ;;  %v671_v46 = vor.u32 1.1754944e-38, %v670_v34  ;;  %vm694_vm8 = vweird.f32 %v3620_v29  ;;  %vm665_vm9 = vweird.f32 %v2854_v38 }
  0xda   : > { %v2858_v44 = vpop.eup %2857  ;;  %v675_v47 = vmul.f32 %v2856_v41, %v656_v48  ;;  %v698_v50 = vand.u32 2147483647, %v3620_v29  ;;  %vm680_vm10 = vweird.f32 %v2856_v41  ;;  %v686_v53 = vor.u32 1.1754944e-38, %v685_v40  ;;  %vm3646_vm12 = vmor %vm664_vm5, %vm665_vm9 }
  0xdb   : > { %v661_v25 = vsub.f32 1.0, %v660_v42  ;;  %v690_v49 = vmul.f32 %v2858_v44, %v3620_v29  ;;  %v2860_v51 = vpop.eup %2859  ;;  %v700_v54 = vand.u32 2147483648, %v3620_v29  ;;  %vm695_vm11 = vweird.f32 %v2858_v44  ;;  %vm3654_vm14 = vmor %vm679_vm6, %vm680_vm10 }
  0xdc   : > { %v676_v52 = vsub.f32 1.0, %v675_v47  ;;  %v705_v57 = vmul.f32 %v2860_v51, %v3622_v30  ;;  %vm709_vm13 = vweird.f32 %v3622_v30  ;;  %v713_v60 = vand.u32 2147483647, %v3622_v30  ;;  %vm3661_vm1 = vmor %vm694_vm8, %vm695_vm11 }
  0xdd   : > { %v662_v55 = vmul.f32 %v2854_v38, %v661_v25  ;;  %v691_v56 = vsub.f32 1.0, %v690_v49  ;;  %v715_v61 = vand.u32 2147483648, %v3622_v30  ;;  %vm710_vm15 = vweird.f32 %v2860_v51 }
  0xde   : > { %v677_v59 = vmul.f32 %v2856_v41, %v676_v52  ;;  %v706_v4 = vsub.f32 1.0, %v705_v57  ;;  %v613_v6 = vadd.f32 %v609_v20, %v602_v37  ;;  %vm684_vm0 = vcmp.eq.f32.partialorder %v683_v43, 8.507059e+37  ;;  %vm3673_vm3 = vmor %vm709_vm13, %vm710_vm15 }
  0xdf   : > { %v663_v62 = vadd.f32 %v2854_v38, %v662_v55  ;;  %v692_v3 = vmul.f32 %v2858_v44, %v691_v56  ;;  %v701_v12 = vor.u32 1.1754944e-38, %v700_v54  ;;  %vm699_vm2 = vcmp.eq.f32.partialorder %v698_v50, 8.507059e+37 }
  0xe0   : > { %v678_v8 = vadd.f32 %v2856_v41, %v677_v59  ;;  %v707_v26 = vmul.f32 %v2860_v51, %v706_v4  ;;  %vm714_vm4 = vcmp.eq.f32.partialorder %v713_v60, 8.507059e+37  ;;  %v716_v18 = vor.u32 1.1754944e-38, %v715_v61 }
  0xe1   : > { %v667_v19 = vsel %vm3646_vm12, %v2854_v38, %v663_v62  ;;  %v693_v22 = vadd.f32 %v2858_v44, %v692_v3 }
  0xe2   : > { %v672_v16 = vsel %vm3636_vm7, %v671_v46, %v667_v19  ;;  %v682_v17 = vsel %vm3654_vm14, %v2856_v41, %v678_v8  ;;  %v708_v48 = vadd.f32 %v2860_v51, %v707_v26 }
  0xe3   : > { %v673_v27 = vmul.f32 %v672_v16, %v581_v32  ;;  %v687_v63 = vsel %vm684_vm0, %v686_v53, %v682_v17  ;;  %v697_v7 = vsel %vm3661_vm1, %v2858_v44, %v693_v22  ;;  %v719_v29 = vmul.f32 %v672_v16, %v610_v21 }
  0xe4   : > { %v688_v10 = vmul.f32 %v687_v63, %v3628_v33  ;;  %v702_v28 = vsel %vm699_vm2, %v701_v12, %v697_v7  ;;  %v720_v5 = vmul.f32 %v687_v63, %v611_v39  ;;  %v712_v30 = vsel %vm3673_vm3, %v2860_v51, %v708_v48 }
  0xe5   : > { %v703_v13 = vmul.f32 %v702_v28, %v3631_v35  ;;  %v721_v9 = vmul.f32 %v702_v28, %v612_v24  ;;  %v723_v14 = vmul.f32 1.032258, %v673_v27  ;;  %v717_v31 = vsel %vm714_vm4, %v716_v18, %v712_v30 }
  0xe6   : > { %v724_v15 = vmul.f32 1.032258, %v688_v10  ;;  %v731_v32 = vmul.f32 1.032258, %v719_v29  ;;  %v732_v34 = vmul.f32 1.032258, %v720_v5  ;;  %v718_v37 = vmul.f32 %v717_v31, %v3633_v36 }
  0xe7   : > { %v722_v20 = vmul.f32 %v717_v31, %v613_v6  ;;  %v725_v38 = vmul.f32 1.032258, %v703_v13  ;;  %v2638_v40 = vadd.f32 -0.5, %v723_v14  ;;  %v733_v41 = vmul.f32 1.032258, %v721_v9 }
  0xe8   : > { %v2639_v33 = vadd.f32 -0.5, %v724_v15  ;;  %v2642_v21 = vadd.f32 -0.5, %v731_v32  ;;  %v2643_v39 = vadd.f32 -0.5, %v732_v34  ;;  %v726_v42 = vmul.f32 1.032258, %v718_v37 }
  0xe9   : > { %v2640_v35 = vadd.f32 -0.5, %v725_v38  ;;  %v734_v43 = vmul.f32 1.032258, %v722_v20  ;;  %v2646_v44 = vclamps-f32 %v2638_v40, 64.0  ;;  %v2644_v45 = vadd.f32 -0.5, %v733_v41 }
  0xea   : > { %v2647_v24 = vclamps-f32 %v2639_v33, 64.0  ;;  %v2650_v46 = vclamps-f32 %v2642_v21, 64.0  ;;  %v2651_v47 = vclamps-f32 %v2643_v39, 64.0  ;;  %v2641_v25 = vadd.f32 -0.5, %v726_v42 }
  0xeb   : > { %v2645_v49 = vadd.f32 -0.5, %v734_v43  ;;  %v2648_v50 = vclamps-f32 %v2640_v35, 64.0  ;;  %v755_v51 = vfloor.f32 %v2646_v44  ;;  %v2652_v36 = vclamps-f32 %v2644_v45, 64.0 }
  0xec   : > { %v756_v52 = vfloor.f32 %v2647_v24  ;;  %v759_v53 = vfloor.f32 %v2650_v46  ;;  %v760_v54 = vfloor.f32 %v2651_v47  ;;  %v2649_v55 = vclamps-f32 %v2641_v25, 64.0 }
  0xed   : > { %v2653_v56 = vclamps-f32 %v2645_v49, 64.0  ;;  %v757_v57 = vfloor.f32 %v2648_v50  ;;  %v3684_v58 = vsub.f32 %v2646_v44, %v755_v51  ;;  %v761_v59 = vfloor.f32 %v2652_v36 }
  0xee   : > { %v3686_v60 = vsub.f32 %v2647_v24, %v756_v52  ;;  %v3688_v61 = vsub.f32 %v2650_v46, %v759_v53  ;;  %v3690_v62 = vsub.f32 %v2651_v47, %v760_v54  ;;  %v758_v2 = vfloor.f32 %v2649_v55 }
  0xef   : > { %v762_v3 = vfloor.f32 %v2653_v56  ;;  %v3692_v4 = vsub.f32 %v2648_v50, %v757_v57  ;;  %v771_v6 = vsub.f32 1.0, %v3684_v58  ;;  %v3695_v8 = vsub.f32 %v2652_v36, %v761_v59 }
  0xf0   : > { %v772_v11 = vsub.f32 1.0, %v3686_v60  ;;  %v775_v12 = vsub.f32 1.0, %v3688_v61  ;;  %v776_v19 = vsub.f32 1.0, %v3690_v62  ;;  %v3700_v22 = vsub.f32 %v2649_v55, %v758_v2 }
  0xf1   : > { %v3702_v26 = vsub.f32 %v2653_v56, %v762_v3  ;;  %v773_v16 = vsub.f32 1.0, %v3692_v4  ;;  %v3705_v17 = vcvt.f32.s32 %v755_v51  ;;  %v777_v23 = vsub.f32 1.0, %v3695_v8 }
  0xf2   : > { %v3708_v18 = vcvt.f32.s32 %v756_v52  ;;  %v3710_v27 = vcvt.f32.s32 %v757_v57  ;;  %v3712_v63 = vcvt.f32.s32 %v758_v2  ;;  %v774_v7 = vsub.f32 1.0, %v3700_v22 }
  0xf3   : > { %v778_v48 = vsub.f32 1.0, %v3702_v26  ;;  %v783_v10 = vadd.s32 1, %v3705_v17  ;;  %v3717_v28 = vcvt.f32.s32 %v759_v53  ;;  %v3722_v30 = vcvt.f32.s32 %v760_v54 }
  0xf4   : > { %v784_v29 = vadd.s32 1, %v3708_v18  ;;  %v785_v5 = vadd.s32 1, %v3710_v27  ;;  %v786_v13 = vadd.s32 1, %v3712_v63  ;;  %v3724_v9 = vcvt.f32.s32 %v761_v59 }
  0xf5   : > { %v3726_v14 = vcvt.f32.s32 %v762_v3  ;;  %v3729_v31 = vadd.s32 1, %v3717_v28  ;;  %vm795_vm5 = vcmp.ge.s32.totalorder %v3705_v17, 0  ;;  %v3733_v15 = vadd.s32 1, %v3722_v30 }
  0xf6   : > { %vm796_vm6 = vcmp.ge.s32.totalorder %v3708_v18, 0  ;;  %vm797_vm7 = vcmp.ge.s32.totalorder %v3710_v27, 0  ;;  %v3739_v32 = vadd.s32 1, %v3724_v9  ;;  %vm799_vm9 = vcmp.lt.s32.totalorder %v3705_v17, 32 }
  0xf7   : > { %v3742_v34 = vadd.s32 1, %v3726_v14  ;;  %vm800_vm10 = vcmp.lt.s32.totalorder %v3708_v18, 32  ;;  %vm801_vm11 = vcmp.lt.s32.totalorder %v3710_v27, 32  ;;  %vm802_vm12 = vcmp.lt.s32.totalorder %v3712_v63, 32  ;;  %vm803_vm13 = vmand %vm795_vm5, %vm799_vm9 }
  0xf8   : > { %vm804_vm0 = vmand %vm796_vm6, %vm800_vm10  ;;  %v3749_v37 = vsel %vm803_vm13, 1.0, %v3138_v1  ;;  %vm817_vm1 = vcmp.ge.s32.totalorder %v785_v5, 0  ;;  %vm819_vm3 = vcmp.lt.s32.totalorder %v783_v10, 32  ;;  %vm820_vm8 = vcmp.lt.s32.totalorder %v784_v29, 32 }
  0xf9   : > { %vm805_vm4 = vmand %vm797_vm7, %vm801_vm11  ;;  %v3754_v20 = vsel %vm804_vm0, 1.0, %v3138_v1  ;;  %vm821_vm5 = vcmp.lt.s32.totalorder %v785_v5, 32  ;;  %vm822_vm9 = vcmp.lt.s32.totalorder %v786_v13, 32  ;;  %vm5282_vm14 = vcmp.ge.s32.totalorder %v3712_v63, 0 }
  0xfa   : > { %vm806_vm15 = vmand %vm5282_vm14, %vm802_vm12  ;;  %v3759_v38 = vsel %vm805_vm4, 1.0, %v3138_v1  ;;  %vm835_vm6 = vcmp.ge.s32.totalorder %v3717_v28, 0  ;;  %vm5283_vm7 = vcmp.ge.s32.totalorder %v783_v10, 0  ;;  %vm839_vm2 = vcmp.lt.s32.totalorder %v3717_v28, 32 }
  0xfb   : > { %v3765_v40 = vsel %vm806_vm15, 1.0, %v3138_v1  ;;  %vm823_vm11 = vmand %vm5283_vm7, %vm819_vm3  ;;  %vm840_vm12 = vcmp.lt.s32.totalorder %v3722_v30, 32  ;;  %vm5284_vm14 = vcmp.ge.s32.totalorder %v784_v29, 0  ;;  %vm841_vm10 = vcmp.lt.s32.totalorder %v3724_v9, 32 }
  0xfc   : > { %vm824_vm4 = vmand %vm5284_vm14, %vm820_vm8  ;;  %v3773_v33 = vsel %vm823_vm11, 1.0, %v3138_v1  ;;  %vm856_vm7 = vcmp.ge.s32.totalorder %v3733_v15, 0  ;;  %vm857_vm0 = vcmp.ge.s32.totalorder %v3739_v32, 0  ;;  %vm5285_vm11 = vcmp.ge.s32.totalorder %v786_v13, 0 }
  0xfd   : > { %vm825_vm3 = vmand %vm817_vm1, %vm821_vm5  ;;  %v3781_v41 = vsel %vm824_vm4, 1.0, %v3138_v1  ;;  %vm859_vm15 = vcmp.lt.s32.totalorder %v3729_v31, 32  ;;  %vm860_vm13 = vcmp.lt.s32.totalorder %v3733_v15, 32  ;;  %vm861_vm1 = vcmp.lt.s32.totalorder %v3739_v32, 32 }
  0xfe   : > { %vm826_vm14 = vmand %vm5285_vm11, %vm822_vm9  ;;  %v3789_v21 = vsel %vm825_vm3, 1.0, %v3138_v1  ;;  %vm862_vm4 = vcmp.lt.s32.totalorder %v3742_v34, 32  ;;  %v875_v42 = vmul.u32 32, %v3717_v28  ;;  %v876_v35 = vmul.u32 32, %v3722_v30 }
  0xff   : > { %v3795_v39 = vsel %vm826_vm14, 1.0, %v3138_v1  ;;  %vm843_vm5 = vmand %vm835_vm6, %vm839_vm2  ;;  %vm5286_vm9 = vcmp.ge.s32.totalorder %v3722_v30, 0  ;;  %v877_v44 = vmul.u32 32, %v3724_v9  ;;  %v878_v45 = vmul.u32 32, %v3726_v14 }
 0x100   : > { %vm844_vm3 = vmand %vm5286_vm9, %vm840_vm12  ;;  %v2662_v43 = vsel %vm843_vm5, 1.0, %v3138_v1  ;;  %vm886_vm11 = vcmask 1040384   ;;  %vm5287_vm2 = vcmp.ge.s32.totalorder %v3724_v9, 0  ;;  %v879_v46 = vadd.s32 %v3705_v17, %v875_v42 }
 0x101   : > { %vm845_vm6 = vmand %vm5287_vm2, %vm841_vm10  ;;  %v2663_v24 = vsel %vm844_vm3, 1.0, %v3138_v1  ;;  %v880_v47 = vadd.s32 %v3708_v18, %v876_v35  ;;  %vm888_vm14 = vcmask 1042434   ;;  %vm5288_vm12 = vcmp.lt.s32.totalorder %v3726_v14, 32 }
 0x102   : > { %vm5289_vm5 = vcmp.ge.s32.totalorder %v3726_v14, 0  ;;  %v2664_v25 = vsel %vm845_vm6, 1.0, %v3138_v1  ;;  %v881_v49 = vadd.s32 %v3710_v27, %v877_v44  ;;  %v882_v50 = vadd.s32 %v3712_v63, %v878_v45  ;;  %vm864_vm6 = vmand %vm856_vm7, %vm860_vm13 }
 0x103   : > { %vm846_vm9 = vmand %vm5289_vm5, %vm5288_vm12  ;;  %vm890_vm8 = vcmask 1041408   ;;  %vm5290_vm10 = vcmp.ge.s32.totalorder %v3729_v31, 0  ;;  %v883_v36 = vrot.slane %v880_v47, 7  ;;  %vm3831_vm2 = vcmp.lt.s32.totalorder %v375_v0, 512 }
 0x104   : > { %v2665_v51 = vsel %vm846_vm9, 1.0, %v3138_v1  ;;  %vm863_vm3 = vmand %vm5290_vm10, %vm859_vm15  ;;  %v897_v53 = vmul.f32 %v775_v12, %v771_v6  ;;  %v884_v55 = vrot.slane %v881_v49, 6  ;;  %v885_v56 = vrot.slane %v882_v50, 5 }
 0x105   : > { %v3844_v54 = vsel %vm863_vm3, 1.0, %v3138_v1  ;;  %v898_v0 = vmul.f32 %v776_v19, %v772_v11  ;;  %vm865_vm15 = vmand %vm857_vm0, %vm861_vm1  ;;  %v3855_v57 = vsel %vm864_vm6, 1.0, %v3138_v1  ;;  %v887_v59 = vsel %vm886_vm11, %v879_v46, %v883_v36 }
 0x106   : > { %v899_v2 = vmul.f32 %v777_v23, %v773_v16  ;;  %v900_v3 = vmul.f32 %v778_v48, %v774_v7  ;;  %vm5293_vm13 = vcmp.ge.s32.totalorder %v3742_v34, 0  ;;  %v2668_v17 = vsel %vm865_vm15, 1.0, %v3138_v1 }
 0x107   : > { %vm866_vm0 = vmand %vm5293_vm13, %vm862_vm4  ;;  %v889_v18 = vsel %vm888_vm14, %v884_v55, %v885_v56  ;;  %v901_v27 = vmul.f32 %v2662_v43, %v897_v53  ;;  %v902_v63 = vmul.f32 %v2663_v24, %v898_v0  ;;  %v921_v9 = vmul.f32 %v775_v12, %v3684_v58 }
 0x108   : > { %v2669_v10 = vsel %vm866_vm0, 1.0, %v3138_v1  ;;  %v891_v28 = vsel %vm890_vm8, %v887_v59, %v889_v18  ;;  %v903_v29 = vmul.f32 %v2664_v25, %v899_v2  ;;  %v904_v5 = vmul.f32 %v2665_v51, %v900_v3 }
 0x109   : > { %896 = vst.msk [vmem:[#allocation2] sm:$0xf] %vm3831_vm2, %v891_v28  ;;  %v905_v13 = vmul.f32 %v3749_v37, %v901_v27  ;;  %v906_v30 = vmul.f32 %v3754_v20, %v902_v63  ;;  %v922_v14 = vmul.f32 %v776_v19, %v3686_v60  ;;  %v923_v15 = vmul.f32 %v777_v23, %v3692_v4 }
 0x10a   : > { %v907_v1 = vmul.f32 %v3759_v38, %v903_v29  ;;  %v908_v31 = vmul.f32 %v3765_v40, %v904_v5  ;;  %v924_v32 = vmul.f32 %v778_v48, %v3700_v22  ;;  %v925_v42 = vmul.f32 %v2662_v43, %v921_v9 }
 0x10b   : > { %v913_v34 = vrot.slane %v906_v30, 7  ;;  %v926_v35 = vmul.f32 %v2663_v24, %v922_v14  ;;  %v945_v12 = vmul.f32 %v771_v6, %v3688_v61  ;;  %v927_v45 = vmul.f32 %v2664_v25, %v923_v15 }
 0x10c   : > { %v914_v19 = vrot.slane %v907_v1, 6  ;;  %v915_v44 = vrot.slane %v908_v31, 5  ;;  %v928_v46 = vmul.f32 %v2665_v51, %v924_v32  ;;  %v929_v49 = vmul.f32 %v3773_v33, %v925_v42 }
 0x10d   : > { %v916_v47 = vsel %vm886_vm11, %v905_v13, %v913_v34  ;;  %v930_v23 = vmul.f32 %v3781_v41, %v926_v35  ;;  %v946_v48 = vmul.f32 %v772_v11, %v3690_v62  ;;  %v931_v24 = vmul.f32 %v3789_v21, %v927_v45 }
 0x10e   : > { %v917_v43 = vsel %vm888_vm14, %v914_v19, %v915_v44  ;;  %v932_v6 = vmul.f32 %v3795_v39, %v928_v46  ;;  %v947_v25 = vmul.f32 %v773_v16, %v3695_v8  ;;  %v948_v36 = vmul.f32 %v774_v7, %v3702_v26 }
 0x10f   : > { %v918_v50 = vsel %vm890_vm8, %v916_v47, %v917_v43  ;;  %v937_v51 = vrot.slane %v930_v23, 7  ;;  %v949_v53 = vmul.f32 %v3844_v54, %v945_v12  ;;  %v938_v11 = vrot.slane %v931_v24, 6 }
 0x110   : > { %920 = vst.msk [vmem:[#allocation3] sm:$0xf] %vm3831_vm2, %v918_v50  ;;  %v939_v55 = vrot.slane %v932_v6, 5  ;;  %v950_v56 = vmul.f32 %v3855_v57, %v946_v48  ;;  %v951_v0 = vmul.f32 %v2668_v17, %v947_v25  ;;  %v952_v16 = vmul.f32 %v2669_v10, %v948_v36 }
 0x111   : > { %v940_v59 = vsel %vm886_vm11, %v929_v49, %v937_v51  ;;  %v953_v2 = vmul.f32 %v3749_v37, %v949_v53  ;;  %v969_v3 = vmul.f32 %v3688_v61, %v3684_v58  ;;  %v970_v63 = vmul.f32 %v3690_v62, %v3686_v60 }
 0x112   : > { %v941_v7 = vsel %vm888_vm14, %v938_v11, %v939_v55  ;;  %v954_v18 = vmul.f32 %v3754_v20, %v950_v56  ;;  %v955_v27 = vmul.f32 %v3759_v38, %v951_v0  ;;  %v956_v29 = vmul.f32 %v3765_v40, %v952_v16 }
 0x113   : > { %v942_v28 = vsel %vm890_vm8, %v940_v59, %v941_v7  ;;  %v971_v5 = vmul.f32 %v3695_v8, %v3692_v4  ;;  %v972_v37 = vmul.f32 %v3702_v26, %v3700_v22  ;;  %v973_v20 = vmul.f32 %v3844_v54, %v969_v3 }
 0x114   : > { %944 = vst.msk [vmem:[#allocation4] sm:$0xf] %vm3831_vm2, %v942_v28  ;;  %v961_v58 = vrot.slane %v954_v18, 7  ;;  %v962_v61 = vrot.slane %v955_v27, 6  ;;  %v974_v38 = vmul.f32 %v3855_v57, %v970_v63  ;;  %v963_v60 = vrot.slane %v956_v29, 5 }
 0x115   : > { %v975_v62 = vmul.f32 %v2668_v17, %v971_v5  ;;  %v976_v13 = vmul.f32 %v2669_v10, %v972_v37  ;;  %v977_v30 = vmul.f32 %v3773_v33, %v973_v20 }
 0x116   : > { %v964_v40 = vsel %vm886_vm11, %v953_v2, %v961_v58  ;;  %v978_v4 = vmul.f32 %v3781_v41, %v974_v38  ;;  %v965_v8 = vsel %vm888_vm14, %v962_v61, %v963_v60 }
 0x117   : > { %v979_v22 = vmul.f32 %v3789_v21, %v975_v62  ;;  %v980_v26 = vmul.f32 %v3795_v39, %v976_v13  ;;  %v966_v9 = vsel %vm890_vm8, %v964_v40, %v965_v8 }
 0x118   : > { %v985_v54 = vrot.slane %v978_v4, 7  ;;  %968 = vst.msk [vmem:[#allocation5] sm:$0xf] %vm3831_vm2, %v966_v9 }
 0x119   : > { %v986_v57 = vrot.slane %v979_v22, 6  ;;  %v987_v17 = vrot.slane %v980_v26, 5 }
 0x11a   : > { %v988_v10 = vsel %vm886_vm11, %v977_v30, %v985_v54 }
 0x11b   : > { %v989_v33 = vsel %vm888_vm14, %v986_v57, %v987_v17 }
 0x11c   : > { %v990_v41 = vsel %vm890_vm8, %v988_v10, %v989_v33 }
 0x11d   : > { %992 = vst.msk [vmem:[#allocation6] sm:$0xf] %vm3831_vm2, %v990_v41 }
 0x11e PF: > { %s5294_s26 = sld [smem:[#allocation33_spill]] }
 0x11f   : > { %s5295_s20 = sld [smem:[#allocation32_spill]] }
 0x120   : > { %s5296_s19 = sld [smem:[#allocation31_spill]] }
 0x124   : > { %s2670_s13 = sshll.u32 %s5294_s26, 1 }
 0x125   : > { %s994_s27 = sadd.s32 %s5295_s20, %s2670_s13 }
 0x126   : > { %s995_s21 = sld [smem:[#allocation9 + %s994_s27]] }
 0x12c   : > { %p2671_p5 = scmp.ge.s32.totalorder %s5296_s19, %s995_s21 }
 0x12d   : > { %s1000_s25 = sld [smem:[#allocation8 + %s994_s27]] (!%p2671_p5) }
 0x12e   : > { %999 = sbr.rel (%p2671_p5) target bundleno = 753 (0x2f1), region = 60  ;;  %s5297_s23 = sld [smem:[#allocation31_spill]] (!%p2671_p5) }
 0x133   : > { %v1002_v21 = vlaneseq  ;;  %v1069_v39 = vld [vmem:[#allocation2] sm:$0xf]  ;;  %v1330_v14 = vld [vmem:[#allocation3] sm:$0xf]  ;;  %v1459_v1 = vld [vmem:[#allocation4] sm:$0xf] }
 0x134   : > { %v1588_v31 = vld [vmem:[#allocation5] sm:$0xf]  ;;  %v1717_v52 = vld [vmem:[#allocation6] sm:$0xf]  ;;  %v3953_v32 = vperm.slane %v1069_v39, 1  ;;  %v3957_v42 = vperm.slane %v1330_v14, 1  ;;  %s1001_s2 = sadd.s32 %s5297_s23, %s1000_s25 }
 0x135   : > { %v3951_v15 = vshrl.u32 %v1002_v21, 7  ;;  %v3955_v34 = vperm.slane %v1588_v31, 1  ;;  %v3959_v35 = vperm.slane %v1717_v52, 1  ;;  %v3961_v12 = vperm.slane %v1459_v1, 1  ;;  %s2672_s28 = sshll.u32 %s1001_s2, 8 }
 0x136   : > { %v3963_v19 = vperm.slane %v1069_v39, 0  ;;  %v3965_v44 = vperm.slane %v1717_v52, 0  ;;  %v3976_v6 = vperm.slane %v1588_v31, 0  ;;  %v3978_v25 = vperm.slane %v1459_v1, 0 }
 0x137   : > { %v1018_v45 = vadd.s32 120, %v3951_v15  ;;  %v1034_v46 = vadd.s32 248, %v3951_v15  ;;  %v1017_v47 = vadd.s32 112, %v3951_v15  ;;  %v1033_v49 = vadd.s32 240, %v3951_v15 }
 0x138   : > { %v1016_v23 = vadd.s32 104, %v3951_v15  ;;  %v1032_v48 = vadd.s32 232, %v3951_v15  ;;  %v1015_v43 = vadd.s32 96, %v3951_v15  ;;  %v1031_v24 = vadd.s32 224, %v3951_v15 }
 0x139   : > { %v3980_v50 = vperm.slane %v1330_v14, 0  ;;  %v3983_v51 = vadd.s32 88, %v3951_v15  ;;  %v3985_v36 = vstv %s2672_s28  ;;  %v3988_v53 = vadd.s32 216, %v3951_v15 }
 0x13a   : > { %v3991_v11 = vadd.s32 80, %v3951_v15  ;;  %v3994_v55 = vadd.s32 208, %v3951_v15  ;;  %v3997_v56 = vadd.s32 %v3985_v36, %v1018_v45  ;;  %v4000_v0 = vadd.s32 %v3985_v36, %v1034_v46 }
 0x13b   : > { %v4003_v59 = vadd.s32 %v3985_v36, %v1017_v47  ;;  %v4006_v16 = vadd.s32 %v3985_v36, %v1033_v49  ;;  %v4009_v2 = vadd.s32 %v3985_v36, %v1016_v23  ;;  %v4012_v3 = vadd.s32 %v3985_v36, %v1032_v48 }
 0x13c   : > { %v4015_v7 = vadd.s32 %v3985_v36, %v1015_v43  ;;  %v4018_v18 = vadd.s32 %v3985_v36, %v1031_v24  ;;  %v1135_v27 = vsub.s32 %v3997_v56, %v3953_v32  ;;  %v1199_v63 = vsub.s32 %v4000_v0, %v3953_v32 }
 0x13d   : > { %v1131_v28 = vsub.s32 %v4003_v59, %v3953_v32  ;;  %v1195_v29 = vsub.s32 %v4006_v16, %v3953_v32  ;;  %v1127_v5 = vsub.s32 %v4009_v2, %v3953_v32  ;;  %v1191_v37 = vsub.s32 %v4012_v3, %v3953_v32 }
 0x13e   : > { %v4034_v58 = vsub.s32 %v4015_v7, %v3953_v32  ;;  %v4038_v61 = vsub.s32 %v4018_v18, %v3953_v32  ;;  %vm1263_vm7 = vcmp.eq.s32.totalorder %v1135_v27, 0  ;;  %vm1392_vm8 = vcmp.eq.s32.totalorder %v1135_v27, 1 }
 0x13f   : > { %vm1521_vm1 = vcmp.eq.s32.totalorder %v1135_v27, 32  ;;  %vm1650_vm4 = vcmp.eq.s32.totalorder %v1135_v27, 33  ;;  %vm1327_vm11 = vcmp.eq.s32.totalorder %v1199_v63, 0  ;;  %vm1456_vm14 = vcmp.eq.s32.totalorder %v1199_v63, 1 }
 0x140   : > { %v1788_v20 = vsel %vm1650_vm4, %v3959_v35, 0.0  ;;  %vm1585_vm12 = vcmp.eq.s32.totalorder %v1199_v63, 32  ;;  %vm1714_vm5 = vcmp.eq.s32.totalorder %v1199_v63, 33  ;;  %vm1259_vm9 = vcmp.eq.s32.totalorder %v1131_v28, 0 }
 0x141   : > { %v1925_v38 = vsel %vm1521_vm1, %v3955_v34, %v1788_v20  ;;  %vm1388_vm10 = vcmp.eq.s32.totalorder %v1131_v28, 1  ;;  %v1852_v62 = vsel %vm1714_vm5, %v3959_v35, 0.0  ;;  %vm1517_vm3 = vcmp.eq.s32.totalorder %v1131_v28, 32 }
 0x142   : > { %v2062_v60 = vsel %vm1392_vm8, %v3961_v12, %v1925_v38  ;;  %vm1646_vm2 = vcmp.eq.s32.totalorder %v1131_v28, 33  ;;  %v1989_v40 = vsel %vm1585_vm12, %v3955_v34, %v1852_v62  ;;  %vm1323_vm6 = vcmp.eq.s32.totalorder %v1195_v29, 0 }
 0x143   : > { %v2199_v13 = vsel %vm1263_vm7, %v3957_v42, %v2062_v60  ;;  %v1784_v30 = vsel %vm1646_vm2, %v3959_v35, 0.0  ;;  %v2126_v4 = vsel %vm1456_vm14, %v3961_v12, %v1989_v40  ;;  %vm1452_vm15 = vcmp.eq.s32.totalorder %v1195_v29, 1 }
 0x144   : > { %2315 = vmatpush.msra.mxu2 %v2199_v13  ;;  %v1921_v8 = vsel %vm1517_vm3, %v3955_v34, %v1784_v30  ;;  %vm1581_vm13 = vcmp.eq.s32.totalorder %v1195_v29, 32  ;;  %v2263_v22 = vsel %vm1327_vm11, %v3957_v42, %v2126_v4  ;;  %vm1710_vm0 = vcmp.eq.s32.totalorder %v1195_v29, 33 }
 0x145   : > { %v2058_v26 = vsel %vm1388_vm10, %v3961_v12, %v1921_v8  ;;  %vm1255_vm8 = vcmp.eq.s32.totalorder %v1127_v5, 0  ;;  %2335 = vmatpush.msra.mxu3 %v2263_v22  ;;  %v1848_v54 = vsel %vm1710_vm0, %v3959_v35, 0.0  ;;  %vm1384_vm7 = vcmp.eq.s32.totalorder %v1127_v5, 1 }
 0x146   : > { %v2195_v9 = vsel %vm1259_vm9, %v3957_v42, %v2058_v26  ;;  %vm1513_vm1 = vcmp.eq.s32.totalorder %v1127_v5, 32  ;;  %v1985_v57 = vsel %vm1581_vm13, %v3955_v34, %v1848_v54  ;;  %vm1642_vm4 = vcmp.eq.s32.totalorder %v1127_v5, 33 }
 0x147   : > { %2316 = vmatpush.msra.mxu2 %v2195_v9  ;;  %vm1319_vm14 = vcmp.eq.s32.totalorder %v1191_v37, 0  ;;  %vm1448_vm12 = vcmp.eq.s32.totalorder %v1191_v37, 1  ;;  %v2122_v17 = vsel %vm1452_vm15, %v3961_v12, %v1985_v57  ;;  %v1780_v10 = vsel %vm1642_vm4, %v3959_v35, 0.0 }
 0x148   : > { %vm1577_vm11 = vcmp.eq.s32.totalorder %v1191_v37, 32  ;;  %vm1706_vm5 = vcmp.eq.s32.totalorder %v1191_v37, 33  ;;  %v2259_v33 = vsel %vm1323_vm6, %v3957_v42, %v2122_v17  ;;  %v1917_v41 = vsel %vm1513_vm1, %v3955_v34, %v1780_v10 }
 0x149   : > { %v1844_v21 = vsel %vm1706_vm5, %v3959_v35, 0.0  ;;  %vm1251_vm9 = vcmp.eq.s32.totalorder %v4034_v58, 0  ;;  %2336 = vmatpush.msra.mxu3 %v2259_v33  ;;  %v2054_v39 = vsel %vm1384_vm7, %v3961_v12, %v1917_v41  ;;  %vm1380_vm10 = vcmp.eq.s32.totalorder %v4034_v58, 1 }
 0x14a   : > { %v1981_v14 = vsel %vm1577_vm11, %v3955_v34, %v1844_v21  ;;  %vm1509_vm3 = vcmp.eq.s32.totalorder %v4034_v58, 32  ;;  %v2191_v1 = vsel %vm1255_vm8, %v3957_v42, %v2054_v39  ;;  %vm1638_vm2 = vcmp.eq.s32.totalorder %v4034_v58, 33 }
 0x14b   : > { %v2118_v31 = vsel %vm1448_vm12, %v3961_v12, %v1981_v14  ;;  %vm1315_vm6 = vcmp.eq.s32.totalorder %v4038_v61, 0  ;;  %2317 = vmatpush.msra.mxu2 %v2191_v1  ;;  %v1776_v45 = vsel %vm1638_vm2, %v3959_v35, 0.0  ;;  %vm1444_vm15 = vcmp.eq.s32.totalorder %v4038_v61, 1 }
 0x14c   : > { %v2255_v52 = vsel %vm1319_vm14, %v3957_v42, %v2118_v31  ;;  %vm1573_vm13 = vcmp.eq.s32.totalorder %v4038_v61, 32  ;;  %v1913_v46 = vsel %vm1509_vm3, %v3955_v34, %v1776_v45  ;;  %vm1702_vm0 = vcmp.eq.s32.totalorder %v4038_v61, 33 }
 0x14d   : > { %2337 = vmatpush.msra.mxu3 %v2255_v52  ;;  %v1134_v47 = vsub.s32 %v3997_v56, %v3963_v19  ;;  %v1198_v49 = vsub.s32 %v4000_v0, %v3963_v19  ;;  %v2050_v23 = vsel %vm1380_vm10, %v3961_v12, %v1913_v46  ;;  %v1840_v48 = vsel %vm1702_vm0, %v3959_v35, 0.0 }
 0x14e   : > { %v4092_v43 = vadd.s32 %v3985_v36, %v3983_v51  ;;  %v4096_v24 = vadd.s32 %v3985_v36, %v3988_v53  ;;  %v2187_v27 = vsel %vm1251_vm9, %v3957_v42, %v2050_v23  ;;  %v1977_v63 = vsel %vm1573_vm13, %v3955_v34, %v1840_v48 }
 0x14f   : > { %vm1262_vm8 = vcmp.eq.s32.totalorder %v1134_v47, 0  ;;  %vm1391_vm7 = vcmp.eq.s32.totalorder %v1134_v47, 1  ;;  %2318 = vmatpush.msra.mxu2 %v2187_v27  ;;  %v2114_v28 = vsel %vm1444_vm15, %v3961_v12, %v1977_v63  ;;  %vm1520_vm1 = vcmp.eq.s32.totalorder %v1134_v47, 32 }
 0x150   : > { %vm1649_vm4 = vcmp.eq.s32.totalorder %v1134_v47, 33  ;;  %vm1326_vm14 = vcmp.eq.s32.totalorder %v1198_v49, 0  ;;  %v2251_v51 = vsel %vm1315_vm6, %v3957_v42, %v2114_v28  ;;  %vm1455_vm12 = vcmp.eq.s32.totalorder %v1198_v49, 1 }
 0x151   : > { %v1787_v53 = vsel %vm1649_vm4, %v3965_v44, 0.0  ;;  %vm1584_vm11 = vcmp.eq.s32.totalorder %v1198_v49, 32  ;;  %2338 = vmatpush.msra.mxu3 %v2251_v51  ;;  %vm1713_vm5 = vcmp.eq.s32.totalorder %v1198_v49, 33  ;;  %v1119_v5 = vsub.s32 %v4092_v43, %v3953_v32 }
 0x152   : > { %v1924_v29 = vsel %vm1520_vm1, %v3976_v6, %v1787_v53  ;;  %v1183_v37 = vsub.s32 %v4096_v24, %v3953_v32  ;;  %v1851_v20 = vsel %vm1713_vm5, %v3965_v44, 0.0  ;;  %v1130_v61 = vsub.s32 %v4003_v59, %v3963_v19 }
 0x153   : > { %v2061_v58 = vsel %vm1391_vm7, %v3978_v25, %v1924_v29  ;;  %v1194_v38 = vsub.s32 %v4006_v16, %v3963_v19  ;;  %v1988_v62 = vsel %vm1584_vm11, %v3976_v6, %v1851_v20  ;;  %vm1247_vm9 = vcmp.eq.s32.totalorder %v1119_v5, 0 }
 0x154   : > { %v2198_v60 = vsel %vm1262_vm8, %v3980_v50, %v2061_v58  ;;  %vm1376_vm10 = vcmp.eq.s32.totalorder %v1119_v5, 1  ;;  %v2125_v13 = vsel %vm1455_vm12, %v3978_v25, %v1988_v62  ;;  %vm1505_vm3 = vcmp.eq.s32.totalorder %v1119_v5, 32 }
 0x155   : > { %2275 = vmatpush.msra.mxu0 %v2198_v60  ;;  %vm1634_vm2 = vcmp.eq.s32.totalorder %v1119_v5, 33  ;;  %vm1311_vm6 = vcmp.eq.s32.totalorder %v1183_v37, 0  ;;  %v2262_v40 = vsel %vm1326_vm14, %v3980_v50, %v2125_v13  ;;  %vm1440_vm15 = vcmp.eq.s32.totalorder %v1183_v37, 1 }
 0x156   : > { %v1772_v30 = vsel %vm1634_vm2, %v3959_v35, 0.0  ;;  %vm1569_vm13 = vcmp.eq.s32.totalorder %v1183_v37, 32  ;;  %2295 = vmatpush.msra.mxu1 %v2262_v40  ;;  %vm1698_vm0 = vcmp.eq.s32.totalorder %v1183_v37, 33  ;;  %vm1258_vm8 = vcmp.eq.s32.totalorder %v1130_v61, 0 }
 0x157   : > { %v1909_v4 = vsel %vm1505_vm3, %v3955_v34, %v1772_v30  ;;  %vm1387_vm7 = vcmp.eq.s32.totalorder %v1130_v61, 1  ;;  %v1836_v22 = vsel %vm1698_vm0, %v3959_v35, 0.0  ;;  %vm1516_vm1 = vcmp.eq.s32.totalorder %v1130_v61, 32 }
 0x158   : > { %v2046_v8 = vsel %vm1376_vm10, %v3961_v12, %v1909_v4  ;;  %vm1645_vm4 = vcmp.eq.s32.totalorder %v1130_v61, 33  ;;  %v1973_v9 = vsel %vm1569_vm13, %v3955_v34, %v1836_v22  ;;  %vm1322_vm14 = vcmp.eq.s32.totalorder %v1194_v38, 0 }
 0x159   : > { %v2183_v26 = vsel %vm1247_vm9, %v3957_v42, %v2046_v8  ;;  %v1783_v54 = vsel %vm1645_vm4, %v3965_v44, 0.0  ;;  %v2110_v57 = vsel %vm1440_vm15, %v3961_v12, %v1973_v9  ;;  %vm1451_vm12 = vcmp.eq.s32.totalorder %v1194_v38, 1 }
 0x15a   : > { %2319 = vmatpush.msra.mxu2 %v2183_v26  ;;  %v1920_v17 = vsel %vm1516_vm1, %v3976_v6, %v1783_v54  ;;  %vm1580_vm11 = vcmp.eq.s32.totalorder %v1194_v38, 32  ;;  %v2247_v10 = vsel %vm1311_vm6, %v3957_v42, %v2110_v57  ;;  %vm1709_vm5 = vcmp.eq.s32.totalorder %v1194_v38, 33 }
 0x15b   : > { %v2057_v33 = vsel %vm1387_vm7, %v3978_v25, %v1920_v17  ;;  %v4143_v41 = vadd.s32 %v3985_v36, %v3991_v11  ;;  %2339 = vmatpush.msra.mxu3 %v2247_v10  ;;  %v1847_v39 = vsel %vm1709_vm5, %v3965_v44, 0.0  ;;  %v4150_v14 = vadd.s32 %v3985_v36, %v3994_v55 }
 0x15c   : > { %v2194_v21 = vsel %vm1258_vm8, %v3980_v50, %v2057_v33  ;;  %v1126_v1 = vsub.s32 %v4009_v2, %v3963_v19  ;;  %v1984_v31 = vsel %vm1580_vm11, %v3976_v6, %v1847_v39  ;;  %v1190_v52 = vsub.s32 %v4012_v3, %v3963_v19 }
 0x15d   : > { %2276 = vmatpush.msra.mxu0 %v2194_v21  ;;  %v1115_v11 = vsub.s32 %v4143_v41, %v3953_v32  ;;  %v1012_v45 = vadd.s32 72, %v3951_v15  ;;  %v2121_v46 = vsel %vm1451_vm12, %v3978_v25, %v1984_v31  ;;  %v1179_v55 = vsub.s32 %v4150_v14, %v3953_v32 }
 0x15e   : > { %vm1254_vm9 = vcmp.eq.s32.totalorder %v1126_v1, 0  ;;  %vm1383_vm10 = vcmp.eq.s32.totalorder %v1126_v1, 1  ;;  %v2258_v47 = vsel %vm1322_vm14, %v3980_v50, %v2121_v46  ;;  %vm1512_vm1 = vcmp.eq.s32.totalorder %v1126_v1, 32 }
 0x15f   : > { %vm1243_vm3 = vcmp.eq.s32.totalorder %v1115_v11, 0  ;;  %vm1372_vm2 = vcmp.eq.s32.totalorder %v1115_v11, 1  ;;  %vm1501_vm6 = vcmp.eq.s32.totalorder %v1115_v11, 32  ;;  %2296 = vmatpush.msra.mxu1 %v2258_v47  ;;  %vm1630_vm15 = vcmp.eq.s32.totalorder %v1115_v11, 33 }
 0x160   : > { %vm1307_vm13 = vcmp.eq.s32.totalorder %v1179_v55, 0  ;;  %vm1436_vm0 = vcmp.eq.s32.totalorder %v1179_v55, 1  ;;  %vm1565_vm8 = vcmp.eq.s32.totalorder %v1179_v55, 32  ;;  %v1768_v49 = vsel %vm1630_vm15, %v3959_v35, 0.0 }
 0x161   : > { %vm1694_vm7 = vcmp.eq.s32.totalorder %v1179_v55, 33  ;;  %vm1641_vm4 = vcmp.eq.s32.totalorder %v1126_v1, 33  ;;  %v1905_v23 = vsel %vm1501_vm6, %v3955_v34, %v1768_v49  ;;  %vm1318_vm14 = vcmp.eq.s32.totalorder %v1190_v52, 0 }
 0x162   : > { %v1832_v48 = vsel %vm1694_vm7, %v3959_v35, 0.0  ;;  %v1779_v27 = vsel %vm1641_vm4, %v3965_v44, 0.0  ;;  %v2042_v63 = vsel %vm1372_vm2, %v3961_v12, %v1905_v23  ;;  %vm1447_vm12 = vcmp.eq.s32.totalorder %v1190_v52, 1 }
 0x163   : > { %v1969_v28 = vsel %vm1565_vm8, %v3955_v34, %v1832_v48  ;;  %v1916_v51 = vsel %vm1512_vm1, %v3976_v6, %v1779_v27  ;;  %v2179_v53 = vsel %vm1243_vm3, %v3957_v42, %v2042_v63  ;;  %vm1576_vm11 = vcmp.eq.s32.totalorder %v1190_v52, 32 }
 0x164   : > { %v2106_v29 = vsel %vm1436_vm0, %v3961_v12, %v1969_v28  ;;  %v2053_v5 = vsel %vm1383_vm10, %v3978_v25, %v1916_v51  ;;  %2320 = vmatpush.msra.mxu2 %v2179_v53  ;;  %vm1705_vm5 = vcmp.eq.s32.totalorder %v1190_v52, 33  ;;  %v4183_v20 = vadd.s32 %v3985_v36, %v1012_v45 }
 0x165   : > { %v2243_v37 = vsel %vm1307_vm13, %v3957_v42, %v2106_v29  ;;  %v2190_v58 = vsel %vm1254_vm9, %v3980_v50, %v2053_v5  ;;  %v1843_v61 = vsel %vm1705_vm5, %v3965_v44, 0.0  ;;  %v1028_v38 = vadd.s32 200, %v3951_v15 }
 0x166   : > { %2340 = vmatpush.msra.mxu3 %v2243_v37  ;;  %2277 = vmatpush.msra.mxu0 %v2190_v58  ;;  %v1122_v60 = vsub.s32 %v4015_v7, %v3963_v19  ;;  %v1186_v62 = vsub.s32 %v4018_v18, %v3963_v19  ;;  %v1980_v13 = vsel %vm1576_vm11, %v3976_v6, %v1843_v61  ;;  %v1011_v30 = vadd.s32 64, %v3951_v15 }
 0x167   : > { %v1111_v40 = vsub.s32 %v4183_v20, %v3953_v32  ;;  %v1027_v4 = vadd.s32 192, %v3951_v15  ;;  %v2117_v8 = vsel %vm1447_vm12, %v3978_v25, %v1980_v13  ;;  %v4199_v22 = vadd.s32 %v3985_v36, %v1028_v38 }
 0x168   : > { %vm1250_vm9 = vcmp.eq.s32.totalorder %v1122_v60, 0  ;;  %vm1379_vm10 = vcmp.eq.s32.totalorder %v1122_v60, 1  ;;  %v2254_v26 = vsel %vm1318_vm14, %v3980_v50, %v2117_v8  ;;  %vm1508_vm13 = vcmp.eq.s32.totalorder %v1122_v60, 32 }
 0x169   : > { %vm1239_vm3 = vcmp.eq.s32.totalorder %v1111_v40, 0  ;;  %vm1368_vm2 = vcmp.eq.s32.totalorder %v1111_v40, 1  ;;  %vm1497_vm6 = vcmp.eq.s32.totalorder %v1111_v40, 32  ;;  %2297 = vmatpush.msra.mxu1 %v2254_v26  ;;  %vm1626_vm15 = vcmp.eq.s32.totalorder %v1111_v40, 33 }
 0x16a   : > { %v1175_v9 = vsub.s32 %v4199_v22, %v3953_v32  ;;  %vm1637_vm0 = vcmp.eq.s32.totalorder %v1122_v60, 33  ;;  %v1764_v54 = vsel %vm1626_vm15, %v3959_v35, 0.0  ;;  %vm1314_vm8 = vcmp.eq.s32.totalorder %v1186_v62, 0 }
 0x16b   : > { %v1775_v57 = vsel %vm1637_vm0, %v3965_v44, 0.0  ;;  %vm1443_vm7 = vcmp.eq.s32.totalorder %v1186_v62, 1  ;;  %v1901_v17 = vsel %vm1497_vm6, %v3955_v34, %v1764_v54  ;;  %vm1572_vm11 = vcmp.eq.s32.totalorder %v1186_v62, 32 }
 0x16c   : > { %vm1303_vm1 = vcmp.eq.s32.totalorder %v1175_v9, 0  ;;  %vm1432_vm4 = vcmp.eq.s32.totalorder %v1175_v9, 1  ;;  %vm1561_vm14 = vcmp.eq.s32.totalorder %v1175_v9, 32  ;;  %v2038_v10 = vsel %vm1368_vm2, %v3961_v12, %v1901_v17 }
 0x16d   : > { %vm1690_vm12 = vcmp.eq.s32.totalorder %v1175_v9, 33  ;;  %v1912_v33 = vsel %vm1508_vm13, %v3976_v6, %v1775_v57  ;;  %v2175_v21 = vsel %vm1239_vm3, %v3957_v42, %v2038_v10  ;;  %vm1701_vm5 = vcmp.eq.s32.totalorder %v1186_v62, 33 }
 0x16e   : > { %v1828_v39 = vsel %vm1690_vm12, %v3959_v35, 0.0  ;;  %v2049_v1 = vsel %vm1379_vm10, %v3978_v25, %v1912_v33  ;;  %2321 = vmatpush.msra.mxu2 %v2175_v21  ;;  %v1839_v52 = vsel %vm1701_vm5, %v3965_v44, 0.0  ;;  %v4220_v45 = vadd.s32 %v3985_v36, %v1011_v30 }
 0x16f   : > { %v1965_v31 = vsel %vm1561_vm14, %v3955_v34, %v1828_v39  ;;  %v2186_v11 = vsel %vm1250_vm9, %v3980_v50, %v2049_v1  ;;  %v1976_v55 = vsel %vm1572_vm11, %v3976_v6, %v1839_v52  ;;  %v4225_v47 = vadd.s32 %v3985_v36, %v1027_v4 }
 0x170   : > { %v2102_v46 = vsel %vm1432_vm4, %v3961_v12, %v1965_v31  ;;  %2278 = vmatpush.msra.mxu0 %v2186_v11  ;;  %v1118_v49 = vsub.s32 %v4092_v43, %v3963_v19  ;;  %v2113_v48 = vsel %vm1443_vm7, %v3978_v25, %v1976_v55  ;;  %v1107_v27 = vsub.s32 %v4220_v45, %v3953_v32 }
 0x171   : > { %v2239_v23 = vsel %vm1303_vm1, %v3957_v42, %v2102_v46  ;;  %v1182_v63 = vsub.s32 %v4096_v24, %v3963_v19  ;;  %v2250_v28 = vsel %vm1314_vm8, %v3980_v50, %v2113_v48  ;;  %v1171_v51 = vsub.s32 %v4225_v47, %v3953_v32 }
 0x172   : > { %2341 = vmatpush.msra.mxu3 %v2239_v23  ;;  %vm1246_vm9 = vcmp.eq.s32.totalorder %v1118_v49, 0  ;;  %vm1375_vm10 = vcmp.eq.s32.totalorder %v1118_v49, 1  ;;  %2298 = vmatpush.msra.mxu1 %v2250_v28  ;;  %vm1235_vm3 = vcmp.eq.s32.totalorder %v1107_v27, 0  ;;  %vm1364_vm2 = vcmp.eq.s32.totalorder %v1107_v27, 1 }
 0x173   : > { %vm1493_vm6 = vcmp.eq.s32.totalorder %v1107_v27, 32  ;;  %vm1622_vm15 = vcmp.eq.s32.totalorder %v1107_v27, 33  ;;  %vm1299_vm13 = vcmp.eq.s32.totalorder %v1171_v51, 0  ;;  %vm1428_vm0 = vcmp.eq.s32.totalorder %v1171_v51, 1 }
 0x174   : > { %v1760_v53 = vsel %vm1622_vm15, %v3959_v35, 0.0  ;;  %vm1557_vm7 = vcmp.eq.s32.totalorder %v1171_v51, 32  ;;  %vm1686_vm1 = vcmp.eq.s32.totalorder %v1171_v51, 33  ;;  %vm1504_vm4 = vcmp.eq.s32.totalorder %v1118_v49, 32 }
 0x175   : > { %v1897_v29 = vsel %vm1493_vm6, %v3955_v34, %v1760_v53  ;;  %vm1633_vm8 = vcmp.eq.s32.totalorder %v1118_v49, 33  ;;  %v1824_v37 = vsel %vm1686_vm1, %v3959_v35, 0.0  ;;  %vm1310_vm14 = vcmp.eq.s32.totalorder %v1182_v63, 0 }
 0x176   : > { %v2034_v5 = vsel %vm1364_vm2, %v3961_v12, %v1897_v29  ;;  %v1771_v58 = vsel %vm1633_vm8, %v3965_v44, 0.0  ;;  %v1961_v38 = vsel %vm1557_vm7, %v3955_v34, %v1824_v37  ;;  %vm1439_vm12 = vcmp.eq.s32.totalorder %v1182_v63, 1 }
 0x177   : > { %v2171_v61 = vsel %vm1235_vm3, %v3957_v42, %v2034_v5  ;;  %v1908_v60 = vsel %vm1504_vm4, %v3976_v6, %v1771_v58  ;;  %v2098_v62 = vsel %vm1428_vm0, %v3961_v12, %v1961_v38  ;;  %vm1568_vm11 = vcmp.eq.s32.totalorder %v1182_v63, 32 }
 0x178   : > { %2322 = vmatpush.msra.mxu2 %v2171_v61  ;;  %v2045_v13 = vsel %vm1375_vm10, %v3978_v25, %v1908_v60  ;;  %vm1697_vm5 = vcmp.eq.s32.totalorder %v1182_v63, 33  ;;  %v2235_v40 = vsel %vm1299_vm13, %v3957_v42, %v2098_v62  ;;  %v1010_v8 = vadd.s32 56, %v3951_v15 }
 0x179   : > { %v2182_v30 = vsel %vm1246_vm9, %v3980_v50, %v2045_v13  ;;  %v1835_v4 = vsel %vm1697_vm5, %v3965_v44, 0.0  ;;  %2342 = vmatpush.msra.mxu3 %v2235_v40  ;;  %v1026_v9 = vadd.s32 184, %v3951_v15  ;;  %v1114_v54 = vsub.s32 %v4143_v41, %v3963_v19 }
 0x17a   : > { %2279 = vmatpush.msra.mxu0 %v2182_v30  ;;  %v1972_v26 = vsel %vm1568_vm11, %v3976_v6, %v1835_v4  ;;  %v1178_v57 = vsub.s32 %v4150_v14, %v3963_v19  ;;  %v4268_v10 = vadd.s32 %v3985_v36, %v1010_v8  ;;  %v1009_v33 = vadd.s32 48, %v3951_v15 }
 0x17b   : > { %v2109_v17 = vsel %vm1439_vm12, %v3978_v25, %v1972_v26  ;;  %v1025_v21 = vadd.s32 176, %v3951_v15  ;;  %v4275_v1 = vadd.s32 %v3985_v36, %v1026_v9  ;;  %vm1242_vm9 = vcmp.eq.s32.totalorder %v1114_v54, 0 }
 0x17c   : > { %v2246_v39 = vsel %vm1310_vm14, %v3980_v50, %v2109_v17  ;;  %vm1371_vm10 = vcmp.eq.s32.totalorder %v1114_v54, 1  ;;  %v1103_v31 = vsub.s32 %v4268_v10, %v3953_v32  ;;  %vm1500_vm3 = vcmp.eq.s32.totalorder %v1114_v54, 32 }
 0x17d   : > { %2299 = vmatpush.msra.mxu1 %v2246_v39  ;;  %vm1629_vm2 = vcmp.eq.s32.totalorder %v1114_v54, 33  ;;  %vm1306_vm6 = vcmp.eq.s32.totalorder %v1178_v57, 0  ;;  %v1167_v11 = vsub.s32 %v4275_v1, %v3953_v32  ;;  %vm1435_vm15 = vcmp.eq.s32.totalorder %v1178_v57, 1 }
 0x17e   : > { %v1767_v52 = vsel %vm1629_vm2, %v3965_v44, 0.0  ;;  %vm1564_vm13 = vcmp.eq.s32.totalorder %v1178_v57, 32  ;;  %vm1231_vm0 = vcmp.eq.s32.totalorder %v1103_v31, 0  ;;  %vm1360_vm7 = vcmp.eq.s32.totalorder %v1103_v31, 1 }
 0x17f   : > { %vm1489_vm1 = vcmp.eq.s32.totalorder %v1103_v31, 32  ;;  %vm1618_vm4 = vcmp.eq.s32.totalorder %v1103_v31, 33  ;;  %vm1295_vm8 = vcmp.eq.s32.totalorder %v1167_v11, 0  ;;  %vm1424_vm14 = vcmp.eq.s32.totalorder %v1167_v11, 1 }
 0x180   : > { %v1756_v46 = vsel %vm1618_vm4, %v3959_v35, 0.0  ;;  %vm1553_vm12 = vcmp.eq.s32.totalorder %v1167_v11, 32  ;;  %vm1682_vm11 = vcmp.eq.s32.totalorder %v1167_v11, 33  ;;  %v1904_v49 = vsel %vm1500_vm3, %v3976_v6, %v1767_v52 }
 0x181   : > { %v1893_v55 = vsel %vm1489_vm1, %v3955_v34, %v1756_v46  ;;  %vm1693_vm5 = vcmp.eq.s32.totalorder %v1178_v57, 33  ;;  %v1820_v48 = vsel %vm1682_vm11, %v3959_v35, 0.0  ;;  %v2041_v27 = vsel %vm1371_vm10, %v3978_v25, %v1904_v49 }
 0x182   : > { %v2030_v23 = vsel %vm1360_vm7, %v3961_v12, %v1893_v55  ;;  %v1831_v63 = vsel %vm1693_vm5, %v3965_v44, 0.0  ;;  %v1957_v51 = vsel %vm1553_vm12, %v3955_v34, %v1820_v48  ;;  %v2178_v53 = vsel %vm1242_vm9, %v3980_v50, %v2041_v27 }
 0x183   : > { %v2167_v28 = vsel %vm1231_vm0, %v3957_v42, %v2030_v23  ;;  %v1968_v29 = vsel %vm1564_vm13, %v3976_v6, %v1831_v63  ;;  %v2094_v5 = vsel %vm1424_vm14, %v3961_v12, %v1957_v51  ;;  %2280 = vmatpush.msra.mxu0 %v2178_v53  ;;  %v4302_v58 = vadd.s32 %v3985_v36, %v1009_v33 }
 0x184   : > { %2323 = vmatpush.msra.mxu2 %v2167_v28  ;;  %v2105_v37 = vsel %vm1435_vm15, %v3978_v25, %v1968_v29  ;;  %v1008_v61 = vadd.s32 40, %v3951_v15  ;;  %v2231_v38 = vsel %vm1295_vm8, %v3957_v42, %v2094_v5  ;;  %v4310_v62 = vadd.s32 %v3985_v36, %v1025_v21 }
 0x185   : > { %v2242_v60 = vsel %vm1306_vm6, %v3980_v50, %v2105_v37  ;;  %v1110_v13 = vsub.s32 %v4183_v20, %v3963_v19  ;;  %2343 = vmatpush.msra.mxu3 %v2231_v38  ;;  %v1099_v40 = vsub.s32 %v4302_v58, %v3953_v32  ;;  %v1174_v30 = vsub.s32 %v4199_v22, %v3963_v19 }
 0x186   : > { %2300 = vmatpush.msra.mxu1 %v2242_v60  ;;  %v4319_v4 = vadd.s32 %v3985_v36, %v1008_v61  ;;  %v1024_v8 = vadd.s32 168, %v3951_v15  ;;  %v1163_v26 = vsub.s32 %v4310_v62, %v3953_v32  ;;  %v1106_v51 = vsub.s32 %v4220_v45, %v3963_v19 }
 0x187   : > { %vm1238_vm9 = vcmp.eq.s32.totalorder %v1110_v13, 0  ;;  %vm1367_vm10 = vcmp.eq.s32.totalorder %v1110_v13, 1  ;;  %vm1496_vm3 = vcmp.eq.s32.totalorder %v1110_v13, 32  ;;  %vm1227_vm2 = vcmp.eq.s32.totalorder %v1099_v40, 0 }
 0x188   : > { %vm1356_vm6 = vcmp.eq.s32.totalorder %v1099_v40, 1  ;;  %vm1485_vm15 = vcmp.eq.s32.totalorder %v1099_v40, 32  ;;  %vm1614_vm13 = vcmp.eq.s32.totalorder %v1099_v40, 33  ;;  %vm1291_vm0 = vcmp.eq.s32.totalorder %v1163_v26, 0 }
 0x189   : > { %v1752_v9 = vsel %vm1614_vm13, %v3959_v35, 0.0  ;;  %vm1420_vm7 = vcmp.eq.s32.totalorder %v1163_v26, 1  ;;  %vm1549_vm1 = vcmp.eq.s32.totalorder %v1163_v26, 32  ;;  %vm1678_vm4 = vcmp.eq.s32.totalorder %v1163_v26, 33 }
 0x18a   : > { %v1889_v54 = vsel %vm1485_vm15, %v3955_v34, %v1752_v9  ;;  %vm1625_vm8 = vcmp.eq.s32.totalorder %v1110_v13, 33  ;;  %vm1302_vm14 = vcmp.eq.s32.totalorder %v1174_v30, 0  ;;  %v1816_v17 = vsel %vm1678_vm4, %v3959_v35, 0.0 }
 0x18b   : > { %v2026_v57 = vsel %vm1356_vm6, %v3961_v12, %v1889_v54  ;;  %v1763_v33 = vsel %vm1625_vm8, %v3965_v44, 0.0  ;;  %vm1431_vm12 = vcmp.eq.s32.totalorder %v1174_v30, 1  ;;  %v1953_v39 = vsel %vm1549_vm1, %v3955_v34, %v1816_v17 }
 0x18c   : > { %v2163_v21 = vsel %vm1227_vm2, %v3957_v42, %v2026_v57  ;;  %v1900_v31 = vsel %vm1496_vm3, %v3976_v6, %v1763_v33  ;;  %vm1560_vm11 = vcmp.eq.s32.totalorder %v1174_v30, 32  ;;  %v2090_v11 = vsel %vm1420_vm7, %v3961_v12, %v1953_v39 }
 0x18d   : > { %2324 = vmatpush.msra.mxu2 %v2163_v21  ;;  %v2037_v52 = vsel %vm1367_vm10, %v3978_v25, %v1900_v31  ;;  %vm1689_vm5 = vcmp.eq.s32.totalorder %v1174_v30, 33  ;;  %v1095_v46 = vsub.s32 %v4319_v4, %v3953_v32  ;;  %v2227_v55 = vsel %vm1291_vm0, %v3957_v42, %v2090_v11 }
 0x18e   : > { %v2174_v49 = vsel %vm1238_vm9, %v3980_v50, %v2037_v52  ;;  %v1827_v23 = vsel %vm1689_vm5, %v3965_v44, 0.0  ;;  %v4345_v48 = vadd.s32 %v3985_v36, %v1024_v8  ;;  %2344 = vmatpush.msra.mxu3 %v2227_v55  ;;  %v1170_v5 = vsub.s32 %v4225_v47, %v3963_v19 }
 0x18f   : > { %2281 = vmatpush.msra.mxu0 %v2174_v49  ;;  %v1964_v27 = vsel %vm1560_vm11, %v3976_v6, %v1827_v23  ;;  %vm1223_vm10 = vcmp.eq.s32.totalorder %v1095_v46, 0  ;;  %vm1352_vm3 = vcmp.eq.s32.totalorder %v1095_v46, 1  ;;  %vm1481_vm2 = vcmp.eq.s32.totalorder %v1095_v46, 32 }
 0x190   : > { %v2101_v63 = vsel %vm1431_vm12, %v3978_v25, %v1964_v27  ;;  %vm1610_vm6 = vcmp.eq.s32.totalorder %v1095_v46, 33  ;;  %v1159_v28 = vsub.s32 %v4345_v48, %v3953_v32  ;;  %v1007_v37 = vadd.s32 32, %v3951_v15 }
 0x191   : > { %v2238_v53 = vsel %vm1302_vm14, %v3980_v50, %v2101_v63  ;;  %v1748_v29 = vsel %vm1610_vm6, %v3959_v35, 0.0  ;;  %vm1234_vm7 = vcmp.eq.s32.totalorder %v1106_v51, 0  ;;  %vm1363_vm1 = vcmp.eq.s32.totalorder %v1106_v51, 1 }
 0x192   : > { %2301 = vmatpush.msra.mxu1 %v2238_v53  ;;  %v1885_v61 = vsel %vm1481_vm2, %v3955_v34, %v1748_v29  ;;  %vm1287_vm9 = vcmp.eq.s32.totalorder %v1159_v28, 0  ;;  %vm1416_vm15 = vcmp.eq.s32.totalorder %v1159_v28, 1  ;;  %vm1545_vm13 = vcmp.eq.s32.totalorder %v1159_v28, 32 }
 0x193   : > { %v2022_v38 = vsel %vm1352_vm3, %v3961_v12, %v1885_v61  ;;  %vm1674_vm0 = vcmp.eq.s32.totalorder %v1159_v28, 33  ;;  %vm1492_vm4 = vcmp.eq.s32.totalorder %v1106_v51, 32  ;;  %vm1621_vm8 = vcmp.eq.s32.totalorder %v1106_v51, 33 }
 0x194   : > { %v2159_v60 = vsel %vm1223_vm10, %v3957_v42, %v2022_v38  ;;  %v1812_v13 = vsel %vm1674_vm0, %v3959_v35, 0.0  ;;  %v1759_v30 = vsel %vm1621_vm8, %v3965_v44, 0.0  ;;  %vm1298_vm14 = vcmp.eq.s32.totalorder %v1170_v5, 0 }
 0x195   : > { %2325 = vmatpush.msra.mxu2 %v2159_v60  ;;  %v1949_v40 = vsel %vm1545_vm13, %v3955_v34, %v1812_v13  ;;  %vm1427_vm12 = vcmp.eq.s32.totalorder %v1170_v5, 1  ;;  %v1896_v26 = vsel %vm1492_vm4, %v3976_v6, %v1759_v30  ;;  %vm1556_vm11 = vcmp.eq.s32.totalorder %v1170_v5, 32 }
 0x196   : > { %v2086_v8 = vsel %vm1416_vm15, %v3961_v12, %v1949_v40  ;;  %vm1685_vm5 = vcmp.eq.s32.totalorder %v1170_v5, 33  ;;  %v2033_v54 = vsel %vm1363_vm1, %v3978_v25, %v1896_v26  ;;  %v4374_v17 = vadd.s32 %v3985_v36, %v1007_v37 }
 0x197   : > { %v2223_v9 = vsel %vm1287_vm9, %v3957_v42, %v2086_v8  ;;  %v1823_v57 = vsel %vm1685_vm5, %v3965_v44, 0.0  ;;  %v2170_v33 = vsel %vm1234_vm7, %v3980_v50, %v2033_v54  ;;  %v1023_v39 = vadd.s32 160, %v3951_v15 }
 0x198   : > { %2345 = vmatpush.msra.mxu3 %v2223_v9  ;;  %v1960_v21 = vsel %vm1556_vm11, %v3976_v6, %v1823_v57  ;;  %v1102_v31 = vsub.s32 %v4268_v10, %v3963_v19  ;;  %2282 = vmatpush.msra.mxu0 %v2170_v33  ;;  %v1091_v52 = vsub.s32 %v4374_v17, %v3953_v32  ;;  %v1006_v55 = vadd.s32 24, %v3951_v15 }
 0x199   : > { %v2097_v11 = vsel %vm1427_vm12, %v3978_v25, %v1960_v21  ;;  %v1166_v46 = vsub.s32 %v4275_v1, %v3963_v19  ;;  %v4391_v23 = vadd.s32 %v3985_v36, %v1023_v39  ;;  %v1022_v30 = vadd.s32 152, %v3951_v15 }
 0x19a   : > { %v2234_v49 = vsel %vm1298_vm14, %v3980_v50, %v2097_v11  ;;  %vm1230_vm10 = vcmp.eq.s32.totalorder %v1102_v31, 0  ;;  %vm1359_vm3 = vcmp.eq.s32.totalorder %v1102_v31, 1  ;;  %vm1219_vm2 = vcmp.eq.s32.totalorder %v1091_v52, 0 }
 0x19b   : > { %2302 = vmatpush.msra.mxu1 %v2234_v49  ;;  %vm1348_vm6 = vcmp.eq.s32.totalorder %v1091_v52, 1  ;;  %vm1477_vm9 = vcmp.eq.s32.totalorder %v1091_v52, 32  ;;  %vm1606_vm15 = vcmp.eq.s32.totalorder %v1091_v52, 33  ;;  %v1155_v63 = vsub.s32 %v4391_v23, %v3953_v32 }
 0x19c   : > { %v1744_v27 = vsel %vm1606_vm15, %v3959_v35, 0.0  ;;  %vm1488_vm13 = vcmp.eq.s32.totalorder %v1102_v31, 32  ;;  %vm1617_vm0 = vcmp.eq.s32.totalorder %v1102_v31, 33  ;;  %vm1294_vm7 = vcmp.eq.s32.totalorder %v1166_v46, 0 }
 0x19d   : > { %v1881_v28 = vsel %vm1477_vm9, %v3955_v34, %v1744_v27  ;;  %v1755_v51 = vsel %vm1617_vm0, %v3965_v44, 0.0  ;;  %vm1423_vm1 = vcmp.eq.s32.totalorder %v1166_v46, 1  ;;  %vm1283_vm4 = vcmp.eq.s32.totalorder %v1155_v63, 0 }
 0x19e   : > { %v2018_v53 = vsel %vm1348_vm6, %v3961_v12, %v1881_v28  ;;  %vm1412_vm8 = vcmp.eq.s32.totalorder %v1155_v63, 1  ;;  %vm1541_vm14 = vcmp.eq.s32.totalorder %v1155_v63, 32  ;;  %vm1670_vm12 = vcmp.eq.s32.totalorder %v1155_v63, 33 }
 0x19f   : > { %v2155_v29 = vsel %vm1219_vm2, %v3957_v42, %v2018_v53  ;;  %v1892_v5 = vsel %vm1488_vm13, %v3976_v6, %v1755_v51  ;;  %vm1552_vm11 = vcmp.eq.s32.totalorder %v1166_v46, 32  ;;  %v1808_v37 = vsel %vm1670_vm12, %v3959_v35, 0.0 }
 0x1a0   : > { %2326 = vmatpush.msra.mxu2 %v2155_v29  ;;  %v2029_v61 = vsel %vm1359_vm3, %v3978_v25, %v1892_v5  ;;  %vm1681_vm5 = vcmp.eq.s32.totalorder %v1166_v46, 33  ;;  %v4406_v38 = vadd.s32 %v3985_v36, %v1006_v55  ;;  %v1945_v60 = vsel %vm1541_vm14, %v3955_v34, %v1808_v37 }
 0x1a1   : > { %v2166_v13 = vsel %vm1230_vm10, %v3980_v50, %v2029_v61  ;;  %v1819_v40 = vsel %vm1681_vm5, %v3965_v44, 0.0  ;;  %v2082_v8 = vsel %vm1412_vm8, %v3961_v12, %v1945_v60  ;;  %v1098_v54 = vsub.s32 %v4302_v58, %v3963_v19 }
 0x1a2   : > { %2283 = vmatpush.msra.mxu0 %v2166_v13  ;;  %v1956_v26 = vsel %vm1552_vm11, %v3976_v6, %v1819_v40  ;;  %v1087_v9 = vsub.s32 %v4406_v38, %v3953_v32  ;;  %v2219_v57 = vsel %vm1283_vm4, %v3957_v42, %v2082_v8  ;;  %v4424_v21 = vadd.s32 %v3985_v36, %v1022_v30 }
 0x1a3   : > { %v2093_v33 = vsel %vm1423_vm1, %v3978_v25, %v1956_v26  ;;  %v1162_v39 = vsub.s32 %v4310_v62, %v3963_v19  ;;  %2346 = vmatpush.msra.mxu3 %v2219_v57  ;;  %vm1226_vm9 = vcmp.eq.s32.totalorder %v1098_v54, 0  ;;  %vm1355_vm15 = vcmp.eq.s32.totalorder %v1098_v54, 1 }
 0x1a4   : > { %v2230_v31 = vsel %vm1294_vm7, %v3980_v50, %v2093_v33  ;;  %vm1215_vm10 = vcmp.eq.s32.totalorder %v1087_v9, 0  ;;  %vm1344_vm3 = vcmp.eq.s32.totalorder %v1087_v9, 1  ;;  %vm1473_vm2 = vcmp.eq.s32.totalorder %v1087_v9, 32 }
 0x1a5   : > { %2303 = vmatpush.msra.mxu1 %v2230_v31  ;;  %vm1602_vm6 = vcmp.eq.s32.totalorder %v1087_v9, 33  ;;  %v1151_v11 = vsub.s32 %v4424_v21, %v3953_v32  ;;  %vm1484_vm13 = vcmp.eq.s32.totalorder %v1098_v54, 32  ;;  %vm1613_vm0 = vcmp.eq.s32.totalorder %v1098_v54, 33 }
 0x1a6   : > { %v1740_v52 = vsel %vm1602_vm6, %v3959_v35, 0.0  ;;  %vm1290_vm1 = vcmp.eq.s32.totalorder %v1162_v39, 0  ;;  %v1751_v49 = vsel %vm1613_vm0, %v3965_v44, 0.0  ;;  %vm1419_vm12 = vcmp.eq.s32.totalorder %v1162_v39, 1 }
 0x1a7   : > { %v1877_v55 = vsel %vm1473_vm2, %v3955_v34, %v1740_v52  ;;  %vm1279_vm4 = vcmp.eq.s32.totalorder %v1151_v11, 0  ;;  %vm1408_vm8 = vcmp.eq.s32.totalorder %v1151_v11, 1  ;;  %vm1537_vm7 = vcmp.eq.s32.totalorder %v1151_v11, 32 }
 0x1a8   : > { %v2014_v46 = vsel %vm1344_vm3, %v3961_v12, %v1877_v55  ;;  %vm1666_vm14 = vcmp.eq.s32.totalorder %v1151_v11, 33  ;;  %v1888_v28 = vsel %vm1484_vm13, %v3976_v6, %v1751_v49  ;;  %vm1548_vm11 = vcmp.eq.s32.totalorder %v1162_v39, 32 }
 0x1a9   : > { %v2151_v27 = vsel %vm1215_vm10, %v3957_v42, %v2014_v46  ;;  %v1804_v63 = vsel %vm1666_vm14, %v3959_v35, 0.0  ;;  %v2025_v53 = vsel %vm1355_vm15, %v3978_v25, %v1888_v28  ;;  %vm1677_vm5 = vcmp.eq.s32.totalorder %v1162_v39, 33 }
 0x1aa   : > { %2327 = vmatpush.msra.mxu2 %v2151_v27  ;;  %v1941_v51 = vsel %vm1537_vm7, %v3955_v34, %v1804_v63  ;;  %v1005_v29 = vadd.s32 16, %v3951_v15  ;;  %v2162_v37 = vsel %vm1226_vm9, %v3980_v50, %v2025_v53  ;;  %v1815_v61 = vsel %vm1677_vm5, %v3965_v44, 0.0 }
 0x1ab   : > { %v2078_v5 = vsel %vm1408_vm8, %v3961_v12, %v1941_v51  ;;  %v1021_v60 = vadd.s32 144, %v3951_v15  ;;  %2284 = vmatpush.msra.mxu0 %v2162_v37  ;;  %v1952_v40 = vsel %vm1548_vm11, %v3976_v6, %v1815_v61  ;;  %v1094_v8 = vsub.s32 %v4319_v4, %v3963_v19 }
 0x1ac   : > { %v2215_v13 = vsel %vm1279_vm4, %v3957_v42, %v2078_v5  ;;  %v4453_v30 = vadd.s32 %v3985_v36, %v1005_v29  ;;  %v2089_v26 = vsel %vm1419_vm12, %v3978_v25, %v1952_v40  ;;  %v1158_v54 = vsub.s32 %v4345_v48, %v3963_v19 }
 0x1ad   : > { %2347 = vmatpush.msra.mxu3 %v2215_v13  ;;  %v4460_v9 = vadd.s32 %v3985_v36, %v1021_v60  ;;  %v1004_v57 = vadd.s32 8, %v3951_v15  ;;  %v2226_v33 = vsel %vm1290_vm1, %v3980_v50, %v2089_v26  ;;  %vm1222_vm10 = vcmp.eq.s32.totalorder %v1094_v8, 0 }
 0x1ae   : > { %v1083_v31 = vsub.s32 %v4453_v30, %v3953_v32  ;;  %vm1351_vm3 = vcmp.eq.s32.totalorder %v1094_v8, 1  ;;  %2304 = vmatpush.msra.mxu1 %v2226_v33  ;;  %vm1480_vm2 = vcmp.eq.s32.totalorder %v1094_v8, 32  ;;  %vm1609_vm6 = vcmp.eq.s32.totalorder %v1094_v8, 33 }
 0x1af   : > { %v1147_v11 = vsub.s32 %v4460_v9, %v3953_v32  ;;  %vm1286_vm9 = vcmp.eq.s32.totalorder %v1158_v54, 0  ;;  %v1747_v55 = vsel %vm1609_vm6, %v3965_v44, 0.0  ;;  %vm1415_vm12 = vcmp.eq.s32.totalorder %v1158_v54, 1 }
 0x1b0   : > { %vm1211_vm15 = vcmp.eq.s32.totalorder %v1083_v31, 0  ;;  %vm1340_vm13 = vcmp.eq.s32.totalorder %v1083_v31, 1  ;;  %vm1469_vm0 = vcmp.eq.s32.totalorder %v1083_v31, 32  ;;  %vm1598_vm4 = vcmp.eq.s32.totalorder %v1083_v31, 33 }
 0x1b1   : > { %v1736_v52 = vsel %vm1598_vm4, %v3959_v35, 0.0  ;;  %vm1275_vm8 = vcmp.eq.s32.totalorder %v1147_v11, 0  ;;  %vm1404_vm1 = vcmp.eq.s32.totalorder %v1147_v11, 1  ;;  %vm1533_vm7 = vcmp.eq.s32.totalorder %v1147_v11, 32 }
 0x1b2   : > { %v1873_v39 = vsel %vm1469_vm0, %v3955_v34, %v1736_v52  ;;  %vm1662_vm14 = vcmp.eq.s32.totalorder %v1147_v11, 33  ;;  %v1884_v27 = vsel %vm1480_vm2, %v3976_v6, %v1747_v55  ;;  %vm1544_vm11 = vcmp.eq.s32.totalorder %v1158_v54, 32 }
 0x1b3   : > { %v2010_v46 = vsel %vm1340_vm13, %v3961_v12, %v1873_v39  ;;  %v1800_v49 = vsel %vm1662_vm14, %v3959_v35, 0.0  ;;  %v2021_v51 = vsel %vm1351_vm3, %v3978_v25, %v1884_v27  ;;  %vm1673_vm5 = vcmp.eq.s32.totalorder %v1158_v54, 33 }
 0x1b4   : > { %v2147_v63 = vsel %vm1211_vm15, %v3957_v42, %v2010_v46  ;;  %v1937_v28 = vsel %vm1533_vm7, %v3955_v34, %v1800_v49  ;;  %v2158_v29 = vsel %vm1222_vm10, %v3980_v50, %v2021_v51  ;;  %v1811_v5 = vsel %vm1673_vm5, %v3965_v44, 0.0 }
 0x1b5   : > { %2328 = vmatpush.msra.mxu2 %v2147_v63  ;;  %v2074_v53 = vsel %vm1404_vm1, %v3961_v12, %v1937_v28  ;;  %v4488_v37 = vadd.s32 %v3985_v36, %v1004_v57  ;;  %2285 = vmatpush.msra.mxu0 %v2158_v29  ;;  %v1948_v60 = vsel %vm1544_vm11, %v3976_v6, %v1811_v5  ;;  %v1020_v13 = vadd.s32 136, %v3951_v15 }
 0x1b6   : > { %v2211_v61 = vsel %vm1275_vm8, %v3957_v42, %v2074_v53  ;;  %v1090_v40 = vsub.s32 %v4374_v17, %v3963_v19  ;;  %v2085_v8 = vsel %vm1415_vm12, %v3978_v25, %v1948_v60  ;;  %v1154_v57 = vsub.s32 %v4391_v23, %v3963_v19 }
 0x1b7   : > { %2348 = vmatpush.msra.mxu3 %v2211_v61  ;;  %v1079_v26 = vsub.s32 %v4488_v37, %v3953_v32  ;;  %v4504_v33 = vadd.s32 %v3985_v36, %v3951_v15  ;;  %v2222_v31 = vsel %vm1286_vm9, %v3980_v50, %v2085_v8  ;;  %v4509_v11 = vadd.s32 %v3985_v36, %v1020_v13 }
 0x1b8   : > { %vm1218_vm10 = vcmp.eq.s32.totalorder %v1090_v40, 0  ;;  %vm1347_vm3 = vcmp.eq.s32.totalorder %v1090_v40, 1  ;;  %2305 = vmatpush.msra.mxu1 %v2222_v31  ;;  %vm1476_vm0 = vcmp.eq.s32.totalorder %v1090_v40, 32  ;;  %vm1605_vm4 = vcmp.eq.s32.totalorder %v1090_v40, 33 }
 0x1b9   : > { %vm1207_vm2 = vcmp.eq.s32.totalorder %v1079_v26, 0  ;;  %vm1336_vm6 = vcmp.eq.s32.totalorder %v1079_v26, 1  ;;  %vm1465_vm15 = vcmp.eq.s32.totalorder %v1079_v26, 32  ;;  %vm1594_vm13 = vcmp.eq.s32.totalorder %v1079_v26, 33 }
 0x1ba   : > { %v1732_v52 = vsel %vm1594_vm13, %v3959_v35, 0.0  ;;  %v1143_v39 = vsub.s32 %v4509_v11, %v3953_v32  ;;  %v1743_v55 = vsel %vm1605_vm4, %v3965_v44, 0.0  ;;  %vm1282_vm9 = vcmp.eq.s32.totalorder %v1154_v57, 0 }
 0x1bb   : > { %v1869_v54 = vsel %vm1465_vm15, %v3955_v34, %v1732_v52  ;;  %vm1411_vm8 = vcmp.eq.s32.totalorder %v1154_v57, 1  ;;  %v1880_v27 = vsel %vm1476_vm0, %v3976_v6, %v1743_v55  ;;  %vm1540_vm11 = vcmp.eq.s32.totalorder %v1154_v57, 32  ;;  %v4542_v52 = vld [vmem:[#allocation2] sm:$0xf]  ;;  %v4548_v55 = vld [vmem:[#allocation6] sm:$0xf] }
 0x1bc   : > { %v2006_v46 = vsel %vm1336_vm6, %v3961_v12, %v1869_v54  ;;  %vm1271_vm1 = vcmp.eq.s32.totalorder %v1143_v39, 0  ;;  %vm1400_vm7 = vcmp.eq.s32.totalorder %v1143_v39, 1  ;;  %vm1529_vm14 = vcmp.eq.s32.totalorder %v1143_v39, 32 }
 0x1bd   : > { %v2143_v49 = vsel %vm1207_vm2, %v3957_v42, %v2006_v46  ;;  %vm1658_vm12 = vcmp.eq.s32.totalorder %v1143_v39, 33  ;;  %v2017_v28 = vsel %vm1347_vm3, %v3978_v25, %v1880_v27  ;;  %vm1669_vm5 = vcmp.eq.s32.totalorder %v1154_v57, 33  ;;  %v4553_v57 = vld [vmem:[#allocation5] sm:$0xf] }
 0x1be   : > { %2329 = vmatpush.msra.mxu2 %v2143_v49  ;;  %v1796_v63 = vsel %vm1658_vm12, %v3959_v35, 0.0  ;;  %v1075_v51 = vsub.s32 %v4504_v33, %v3953_v32  ;;  %v2154_v29 = vsel %vm1218_vm10, %v3980_v50, %v2017_v28  ;;  %v1807_v5 = vsel %vm1669_vm5, %v3965_v44, 0.0 }
 0x1bf   : > { %v1933_v53 = vsel %vm1529_vm14, %v3955_v34, %v1796_v63  ;;  %v1019_v61 = vadd.s32 128, %v3951_v15  ;;  %2286 = vmatpush.msra.mxu0 %v2154_v29  ;;  %v1944_v13 = vsel %vm1540_vm11, %v3976_v6, %v1807_v5  ;;  %v4545_v54 = vperm.slane %v4542_v52, 3  ;;  %v4569_v29 = vld [vmem:[#allocation3] sm:$0xf] }
 0x1c0   : > { %v2070_v60 = vsel %vm1400_vm7, %v3961_v12, %v1933_v53  ;;  %vm1203_vm2 = vcmp.eq.s32.totalorder %v1075_v51, 0  ;;  %vm1332_vm3 = vcmp.eq.s32.totalorder %v1075_v51, 1  ;;  %v2081_v26 = vsel %vm1411_vm8, %v3978_v25, %v1944_v13 }
 0x1c1   : > { %v2207_v8 = vsel %vm1271_vm1, %v3957_v42, %v2070_v60  ;;  %vm1461_vm6 = vcmp.eq.s32.totalorder %v1075_v51, 32  ;;  %vm1590_vm15 = vcmp.eq.s32.totalorder %v1075_v51, 33  ;;  %v2218_v40 = vsel %vm1282_vm9, %v3980_v50, %v2081_v26 }
 0x1c2   : > { %2349 = vmatpush.msra.mxu3 %v2207_v8  ;;  %v1728_v15 = vsel %vm1590_vm15, %v3959_v35, 0.0  ;;  %v4540_v31 = vadd.s32 %v3985_v36, %v1019_v61  ;;  %2306 = vmatpush.msra.mxu1 %v2218_v40  ;;  %v4551_v46 = vperm.slane %v4548_v55, 3  ;;  %v4556_v49 = vperm.slane %v4553_v57, 3  ;;  %v4558_v36 = vld [vmem:[#allocation4] sm:$0xf] }
 0x1c3   : > { %v1865_v39 = vsel %vm1461_vm6, %v3955_v34, %v1728_v15  ;;  %v4561_v27 = vperm.slane %v4558_v36, 3  ;;  %v1137_v53 = vsub.s32 %v3997_v56, %v4545_v54  ;;  %v4572_v5 = vperm.slane %v4569_v29, 3 }
 0x1c4   : > { %v2002_v63 = vsel %vm1332_vm3, %v3961_v12, %v1865_v39  ;;  %v1139_v28 = vsub.s32 %v4540_v31, %v3953_v32  ;;  %v1201_v60 = vsub.s32 %v4000_v0, %v4545_v54  ;;  %v1086_v13 = vsub.s32 %v4406_v38, %v3963_v19 }
 0x1c5   : > { %v2139_v61 = vsel %vm1203_vm2, %v3957_v42, %v2002_v63  ;;  %v1150_v32 = vsub.s32 %v4424_v21, %v3963_v19  ;;  %vm1265_vm9 = vcmp.eq.s32.totalorder %v1137_v53, 0  ;;  %vm1394_vm8 = vcmp.eq.s32.totalorder %v1137_v53, 1 }
 0x1c6   : > { %2330 = vmatpush.msra.mxu2 %v2139_v61  ;;  %vm1267_vm10 = vcmp.eq.s32.totalorder %v1139_v28, 0  ;;  %vm1396_vm13 = vcmp.eq.s32.totalorder %v1139_v28, 1  ;;  %vm1525_vm0 = vcmp.eq.s32.totalorder %v1139_v28, 32  ;;  %vm1654_vm4 = vcmp.eq.s32.totalorder %v1139_v28, 33 }
 0x1c7   : > { %v1792_v8 = vsel %vm1654_vm4, %v3959_v35, 0.0  ;;  %vm1523_vm1 = vcmp.eq.s32.totalorder %v1137_v53, 32  ;;  %vm1652_vm7 = vcmp.eq.s32.totalorder %v1137_v53, 33  ;;  %vm1329_vm14 = vcmp.eq.s32.totalorder %v1201_v60, 0 }
 0x1c8   : > { %v1929_v51 = vsel %vm1525_vm0, %v3955_v34, %v1792_v8  ;;  %vm1458_vm12 = vcmp.eq.s32.totalorder %v1201_v60, 1  ;;  %v1790_v40 = vsel %vm1652_vm7, %v4551_v46, 0.0  ;;  %vm1587_vm11 = vcmp.eq.s32.totalorder %v1201_v60, 32 }
 0x1c9   : > { %v2066_v26 = vsel %vm1396_vm13, %v3961_v12, %v1929_v51  ;;  %vm1716_vm5 = vcmp.eq.s32.totalorder %v1201_v60, 33  ;;  %v1927_v39 = vsel %vm1523_vm1, %v4556_v49, %v1790_v40  ;;  %vm1214_vm2 = vcmp.eq.s32.totalorder %v1086_v13, 0 }
 0x1ca   : > { %v2203_v15 = vsel %vm1267_vm10, %v3957_v42, %v2066_v26  ;;  %v1854_v35 = vsel %vm1716_vm5, %v4551_v46, 0.0  ;;  %v2064_v34 = vsel %vm1394_vm8, %v4561_v27, %v1927_v39  ;;  %vm1343_vm3 = vcmp.eq.s32.totalorder %v1086_v13, 1 }
 0x1cb   : > { %2350 = vmatpush.msra.mxu3 %v2203_v15  ;;  %v1991_v63 = vsel %vm1587_vm11, %v4556_v49, %v1854_v35  ;;  %vm1472_vm6 = vcmp.eq.s32.totalorder %v1086_v13, 32  ;;  %v2201_v12 = vsel %vm1265_vm9, %v4572_v5, %v2064_v34  ;;  %vm1601_vm15 = vcmp.eq.s32.totalorder %v1086_v13, 33 }
 0x1cc   : > { %v2128_v61 = vsel %vm1458_vm12, %v4561_v27, %v1991_v63  ;;  %vm1278_vm13 = vcmp.eq.s32.totalorder %v1150_v32, 0  ;;  %2395 = vmatpush.msrb.mxu2 %v2201_v12  ;;  %v1739_v28 = vsel %vm1601_vm15, %v3965_v44, 0.0  ;;  %vm1407_vm10 = vcmp.eq.s32.totalorder %v1150_v32, 1 }
 0x1cd   : > { %v2265_v42 = vsel %vm1329_vm14, %v4572_v5, %v2128_v61  ;;  %vm1536_vm0 = vcmp.eq.s32.totalorder %v1150_v32, 32  ;;  %v1876_v8 = vsel %vm1472_vm6, %v3976_v6, %v1739_v28  ;;  %vm1665_vm4 = vcmp.eq.s32.totalorder %v1150_v32, 33 }
 0x1ce   : > { %2415 = vmatpush.msrb.mxu3 %v2265_v42  ;;  %v1133_v53 = vsub.s32 %v4003_v59, %v4545_v54  ;;  %v1197_v51 = vsub.s32 %v4006_v16, %v4545_v54  ;;  %v2013_v26 = vsel %vm1343_vm3, %v3978_v25, %v1876_v8  ;;  %v1803_v60 = vsel %vm1665_vm4, %v3965_v44, 0.0 }
 0x1cf   : > { %v1082_v40 = vsub.s32 %v4453_v30, %v3963_v19  ;;  %v1146_v15 = vsub.s32 %v4460_v9, %v3963_v19  ;;  %v2150_v39 = vsel %vm1214_vm2, %v3980_v50, %v2013_v26  ;;  %v1940_v35 = vsel %vm1536_vm0, %v3976_v6, %v1803_v60 }
 0x1d0   : > { %vm1261_vm9 = vcmp.eq.s32.totalorder %v1133_v53, 0  ;;  %vm1390_vm8 = vcmp.eq.s32.totalorder %v1133_v53, 1  ;;  %2287 = vmatpush.msra.mxu0 %v2150_v39  ;;  %v2077_v34 = vsel %vm1407_vm10, %v3978_v25, %v1940_v35  ;;  %vm1519_vm1 = vcmp.eq.s32.totalorder %v1133_v53, 32 }
 0x1d1   : > { %vm1648_vm7 = vcmp.eq.s32.totalorder %v1133_v53, 33  ;;  %vm1325_vm14 = vcmp.eq.s32.totalorder %v1197_v51, 0  ;;  %v2214_v63 = vsel %vm1278_vm13, %v3980_v50, %v2077_v34  ;;  %vm1454_vm12 = vcmp.eq.s32.totalorder %v1197_v51, 1 }
 0x1d2   : > { %v1786_v12 = vsel %vm1648_vm7, %v4551_v46, 0.0  ;;  %vm1583_vm11 = vcmp.eq.s32.totalorder %v1197_v51, 32  ;;  %2307 = vmatpush.msra.mxu1 %v2214_v63  ;;  %vm1712_vm5 = vcmp.eq.s32.totalorder %v1197_v51, 33  ;;  %vm1210_vm2 = vcmp.eq.s32.totalorder %v1082_v40, 0 }
 0x1d3   : > { %v1923_v13 = vsel %vm1519_vm1, %v4556_v49, %v1786_v12  ;;  %vm1339_vm3 = vcmp.eq.s32.totalorder %v1082_v40, 1  ;;  %v1850_v42 = vsel %vm1712_vm5, %v4551_v46, 0.0  ;;  %vm1468_vm6 = vcmp.eq.s32.totalorder %v1082_v40, 32 }
 0x1d4   : > { %v2060_v61 = vsel %vm1390_vm8, %v4561_v27, %v1923_v13  ;;  %vm1597_vm15 = vcmp.eq.s32.totalorder %v1082_v40, 33  ;;  %v1987_v28 = vsel %vm1583_vm11, %v4556_v49, %v1850_v42  ;;  %vm1274_vm13 = vcmp.eq.s32.totalorder %v1146_v15, 0 }
 0x1d5   : > { %v2197_v32 = vsel %vm1261_vm9, %v4572_v5, %v2060_v61  ;;  %v1735_v8 = vsel %vm1597_vm15, %v3965_v44, 0.0  ;;  %v2124_v26 = vsel %vm1454_vm12, %v4561_v27, %v1987_v28  ;;  %vm1403_vm10 = vcmp.eq.s32.totalorder %v1146_v15, 1 }
 0x1d6   : > { %2396 = vmatpush.msrb.mxu2 %v2197_v32  ;;  %v1872_v60 = vsel %vm1468_vm6, %v3976_v6, %v1735_v8  ;;  %vm1532_vm0 = vcmp.eq.s32.totalorder %v1146_v15, 32  ;;  %v2261_v39 = vsel %vm1325_vm14, %v4572_v5, %v2124_v26  ;;  %vm1661_vm4 = vcmp.eq.s32.totalorder %v1146_v15, 33 }
 0x1d7   : > { %v2009_v35 = vsel %vm1339_vm3, %v3978_v25, %v1872_v60  ;;  %v1129_v53 = vsub.s32 %v4009_v2, %v4545_v54  ;;  %2416 = vmatpush.msrb.mxu3 %v2261_v39  ;;  %v1799_v63 = vsel %vm1661_vm4, %v3965_v44, 0.0  ;;  %v1193_v12 = vsub.s32 %v4012_v3, %v4545_v54 }
 0x1d8   : > { %v2146_v34 = vsel %vm1210_vm2, %v3980_v50, %v2009_v35  ;;  %v1078_v13 = vsub.s32 %v4488_v37, %v3963_v19  ;;  %v1936_v51 = vsel %vm1532_vm0, %v3976_v6, %v1799_v63  ;;  %v1142_v35 = vsub.s32 %v4509_v11, %v3963_v19 }
 0x1d9   : > { %2288 = vmatpush.msra.mxu0 %v2146_v34  ;;  %vm1257_vm9 = vcmp.eq.s32.totalorder %v1129_v53, 0  ;;  %vm1386_vm8 = vcmp.eq.s32.totalorder %v1129_v53, 1  ;;  %vm1515_vm1 = vcmp.eq.s32.totalorder %v1129_v53, 32  ;;  %v2073_v61 = vsel %vm1403_vm10, %v3978_v25, %v1936_v51 }
 0x1da   : > { %vm1644_vm7 = vcmp.eq.s32.totalorder %v1129_v53, 33  ;;  %vm1321_vm14 = vcmp.eq.s32.totalorder %v1193_v12, 0  ;;  %vm1450_vm12 = vcmp.eq.s32.totalorder %v1193_v12, 1  ;;  %v2210_v40 = vsel %vm1274_vm13, %v3980_v50, %v2073_v61 }
 0x1db   : > { %v1782_v42 = vsel %vm1644_vm7, %v4551_v46, 0.0  ;;  %vm1579_vm11 = vcmp.eq.s32.totalorder %v1193_v12, 32  ;;  %vm1708_vm5 = vcmp.eq.s32.totalorder %v1193_v12, 33  ;;  %2308 = vmatpush.msra.mxu1 %v2210_v40  ;;  %vm1206_vm2 = vcmp.eq.s32.totalorder %v1078_v13, 0 }
 0x1dc   : > { %v1919_v32 = vsel %vm1515_vm1, %v4556_v49, %v1782_v42  ;;  %v1846_v28 = vsel %vm1708_vm5, %v4551_v46, 0.0  ;;  %vm1335_vm3 = vcmp.eq.s32.totalorder %v1078_v13, 1  ;;  %vm1464_vm6 = vcmp.eq.s32.totalorder %v1078_v13, 32 }
 0x1dd   : > { %v2056_v8 = vsel %vm1386_vm8, %v4561_v27, %v1919_v32  ;;  %v1983_v26 = vsel %vm1579_vm11, %v4556_v49, %v1846_v28  ;;  %vm1593_vm15 = vcmp.eq.s32.totalorder %v1078_v13, 33  ;;  %v1125_v51 = vsub.s32 %v4015_v7, %v4545_v54 }
 0x1de   : > { %v2193_v15 = vsel %vm1257_vm9, %v4572_v5, %v2056_v8  ;;  %v2120_v60 = vsel %vm1450_vm12, %v4561_v27, %v1983_v26  ;;  %v1731_v39 = vsel %vm1593_vm15, %v3965_v44, 0.0  ;;  %v1189_v53 = vsub.s32 %v4018_v18, %v4545_v54 }
 0x1df   : > { %2397 = vmatpush.msrb.mxu2 %v2193_v15  ;;  %v2257_v34 = vsel %vm1321_vm14, %v4572_v5, %v2120_v60  ;;  %v1868_v63 = vsel %vm1464_vm6, %v3976_v6, %v1731_v39  ;;  %vm1270_vm13 = vcmp.eq.s32.totalorder %v1142_v35, 0  ;;  %vm1399_vm10 = vcmp.eq.s32.totalorder %v1142_v35, 1 }
 0x1e0   : > { %2417 = vmatpush.msrb.mxu3 %v2257_v34  ;;  %v2005_v61 = vsel %vm1335_vm3, %v3978_v25, %v1868_v63  ;;  %vm1528_vm0 = vcmp.eq.s32.totalorder %v1142_v35, 32  ;;  %vm1657_vm4 = vcmp.eq.s32.totalorder %v1142_v35, 33  ;;  %vm1253_vm9 = vcmp.eq.s32.totalorder %v1125_v51, 0 }
 0x1e1   : > { %v2142_v40 = vsel %vm1206_vm2, %v3980_v50, %v2005_v61  ;;  %vm1382_vm8 = vcmp.eq.s32.totalorder %v1125_v51, 1  ;;  %v1795_v12 = vsel %vm1657_vm4, %v3965_v44, 0.0  ;;  %vm1511_vm1 = vcmp.eq.s32.totalorder %v1125_v51, 32 }
 0x1e2   : > { %2289 = vmatpush.msra.mxu0 %v2142_v40  ;;  %vm1640_vm7 = vcmp.eq.s32.totalorder %v1125_v51, 33  ;;  %vm1317_vm14 = vcmp.eq.s32.totalorder %v1189_v53, 0  ;;  %v1932_v42 = vsel %vm1528_vm0, %v3976_v6, %v1795_v12  ;;  %vm1446_vm12 = vcmp.eq.s32.totalorder %v1189_v53, 1 }
 0x1e3   : > { %v1778_v32 = vsel %vm1640_vm7, %v4551_v46, 0.0  ;;  %vm1575_vm11 = vcmp.eq.s32.totalorder %v1189_v53, 32  ;;  %v2069_v28 = vsel %vm1399_vm10, %v3978_v25, %v1932_v42  ;;  %vm1704_vm5 = vcmp.eq.s32.totalorder %v1189_v53, 33 }
 0x1e4   : > { %v1915_v13 = vsel %vm1511_vm1, %v4556_v49, %v1778_v32  ;;  %v1074_v8 = vsub.s32 %v4504_v33, %v3963_v19  ;;  %v2206_v26 = vsel %vm1270_vm13, %v3980_v50, %v2069_v28  ;;  %v1842_v60 = vsel %vm1704_vm5, %v4551_v46, 0.0 }
 0x1e5   : > { %v2052_v15 = vsel %vm1382_vm8, %v4561_v27, %v1915_v13  ;;  %v1138_v39 = vsub.s32 %v4540_v31, %v3963_v19  ;;  %2309 = vmatpush.msra.mxu1 %v2206_v26  ;;  %v1979_v63 = vsel %vm1575_vm11, %v4556_v49, %v1842_v60  ;;  %v4689_v40 = vperm.slane %v4542_v52, 2 }
 0x1e6   : > { %v2189_v34 = vsel %vm1253_vm9, %v4572_v5, %v2052_v15  ;;  %vm1202_vm2 = vcmp.eq.s32.totalorder %v1074_v8, 0  ;;  %vm1331_vm3 = vcmp.eq.s32.totalorder %v1074_v8, 1  ;;  %v2116_v35 = vsel %vm1446_vm12, %v4561_v27, %v1979_v63 }
 0x1e7   : > { %2398 = vmatpush.msrb.mxu2 %v2189_v34  ;;  %vm1460_vm6 = vcmp.eq.s32.totalorder %v1074_v8, 32  ;;  %vm1589_vm15 = vcmp.eq.s32.totalorder %v1074_v8, 33  ;;  %vm1266_vm13 = vcmp.eq.s32.totalorder %v1138_v39, 0  ;;  %v2253_v61 = vsel %vm1317_vm14, %v4572_v5, %v2116_v35 }
 0x1e8   : > { %v1727_v19 = vsel %vm1589_vm15, %v3965_v44, 0.0  ;;  %vm1395_vm10 = vcmp.eq.s32.totalorder %v1138_v39, 1  ;;  %vm1524_vm0 = vcmp.eq.s32.totalorder %v1138_v39, 32  ;;  %2418 = vmatpush.msrb.mxu3 %v2253_v61  ;;  %vm1653_vm4 = vcmp.eq.s32.totalorder %v1138_v39, 33 }
 0x1e9   : > { %v1864_v51 = vsel %vm1460_vm6, %v3976_v6, %v1727_v19  ;;  %v4692_v12 = vperm.slane %v4548_v55, 2  ;;  %v1791_v32 = vsel %vm1653_vm4, %v3965_v44, 0.0  ;;  %v4697_v53 = vperm.slane %v4553_v57, 2 }
 0x1ea   : > { %v2001_v42 = vsel %vm1331_vm3, %v3978_v25, %v1864_v51  ;;  %v4700_v28 = vperm.slane %v4558_v36, 2  ;;  %v1928_v26 = vsel %vm1524_vm0, %v3976_v6, %v1791_v32  ;;  %v1136_v52 = vsub.s32 %v3997_v56, %v4689_v40 }
 0x1eb   : > { %v2138_v13 = vsel %vm1202_vm2, %v3980_v50, %v2001_v42  ;;  %v4708_v55 = vperm.slane %v4569_v29, 2  ;;  %v2065_v44 = vsel %vm1395_vm10, %v3978_v25, %v1928_v26  ;;  %v1200_v57 = vsub.s32 %v4000_v0, %v4689_v40 }
 0x1ec   : > { %2290 = vmatpush.msra.mxu0 %v2138_v13  ;;  %v1121_v36 = vsub.s32 %v4092_v43, %v4545_v54  ;;  %v1185_v8 = vsub.s32 %v4096_v24, %v4545_v54  ;;  %v2202_v6 = vsel %vm1266_vm13, %v3980_v50, %v2065_v44  ;;  %vm1264_vm9 = vcmp.eq.s32.totalorder %v1136_v52, 0 }
 0x1ed   : > { %vm1393_vm8 = vcmp.eq.s32.totalorder %v1136_v52, 1  ;;  %vm1522_vm1 = vcmp.eq.s32.totalorder %v1136_v52, 32  ;;  %2310 = vmatpush.msra.mxu1 %v2202_v6  ;;  %vm1651_vm7 = vcmp.eq.s32.totalorder %v1136_v52, 33  ;;  %vm1328_vm14 = vcmp.eq.s32.totalorder %v1200_v57, 0 }
 0x1ee   : > { %vm1457_vm12 = vcmp.eq.s32.totalorder %v1200_v57, 1  ;;  %vm1586_vm11 = vcmp.eq.s32.totalorder %v1200_v57, 32  ;;  %v1789_v25 = vsel %vm1651_vm7, %v4692_v12, 0.0  ;;  %vm1715_vm5 = vcmp.eq.s32.totalorder %v1200_v57, 33 }
 0x1ef   : > { %vm1249_vm2 = vcmp.eq.s32.totalorder %v1121_v36, 0  ;;  %vm1378_vm3 = vcmp.eq.s32.totalorder %v1121_v36, 1  ;;  %v1926_v56 = vsel %vm1522_vm1, %v4697_v53, %v1789_v25  ;;  %v1853_v0 = vsel %vm1715_vm5, %v4692_v12, 0.0 }
 0x1f0   : > { %vm1507_vm6 = vcmp.eq.s32.totalorder %v1121_v36, 32  ;;  %vm1636_vm15 = vcmp.eq.s32.totalorder %v1121_v36, 33  ;;  %v2063_v50 = vsel %vm1393_vm8, %v4700_v28, %v1926_v56  ;;  %v1990_v29 = vsel %vm1586_vm11, %v4697_v53, %v1853_v0 }
 0x1f1   : > { %v1774_v15 = vsel %vm1636_vm15, %v4551_v46, 0.0  ;;  %vm1313_vm13 = vcmp.eq.s32.totalorder %v1185_v8, 0  ;;  %v2200_v60 = vsel %vm1264_vm9, %v4708_v55, %v2063_v50  ;;  %v2127_v39 = vsel %vm1457_vm12, %v4700_v28, %v1990_v29 }
 0x1f2   : > { %v1911_v34 = vsel %vm1507_vm6, %v4556_v49, %v1774_v15  ;;  %vm1442_vm10 = vcmp.eq.s32.totalorder %v1185_v8, 1  ;;  %2355 = vmatpush.msrb.mxu0 %v2200_v60  ;;  %v2264_v63 = vsel %vm1328_vm14, %v4708_v55, %v2127_v39  ;;  %vm1571_vm0 = vcmp.eq.s32.totalorder %v1185_v8, 32 }
 0x1f3   : > { %v2048_v35 = vsel %vm1378_vm3, %v4561_v27, %v1911_v34  ;;  %vm1700_vm4 = vcmp.eq.s32.totalorder %v1185_v8, 33  ;;  %2375 = vmatpush.msrb.mxu1 %v2264_v63  ;;  %v1132_v51 = vsub.s32 %v4003_v59, %v4689_v40  ;;  %v1196_v42 = vsub.s32 %v4006_v16, %v4689_v40 }
 0x1f4   : > { %v2185_v61 = vsel %vm1249_vm2, %v4572_v5, %v2048_v35  ;;  %v1838_v19 = vsel %vm1700_vm4, %v4551_v46, 0.0  ;;  %v1117_v13 = vsub.s32 %v4143_v41, %v4545_v54  ;;  %v1181_v26 = vsub.s32 %v4150_v14, %v4545_v54 }
 0x1f5   : > { %2399 = vmatpush.msrb.mxu2 %v2185_v61  ;;  %v1975_v32 = vsel %vm1571_vm0, %v4556_v49, %v1838_v19  ;;  %v1128_v52 = vsub.s32 %v4009_v2, %v4689_v40  ;;  %vm1260_vm9 = vcmp.eq.s32.totalorder %v1132_v51, 0  ;;  %vm1389_vm8 = vcmp.eq.s32.totalorder %v1132_v51, 1 }
 0x1f6   : > { %v2112_v44 = vsel %vm1442_vm10, %v4561_v27, %v1975_v32  ;;  %vm1518_vm1 = vcmp.eq.s32.totalorder %v1132_v51, 32  ;;  %vm1647_vm7 = vcmp.eq.s32.totalorder %v1132_v51, 33  ;;  %vm1324_vm14 = vcmp.eq.s32.totalorder %v1196_v42, 0 }
 0x1f7   : > { %v2249_v59 = vsel %vm1313_vm13, %v4572_v5, %v2112_v44  ;;  %vm1453_vm12 = vcmp.eq.s32.totalorder %v1196_v42, 1  ;;  %v1785_v16 = vsel %vm1647_vm7, %v4692_v12, 0.0  ;;  %vm1582_vm11 = vcmp.eq.s32.totalorder %v1196_v42, 32 }
 0x1f8   : > { %2419 = vmatpush.msrb.mxu3 %v2249_v59  ;;  %vm1711_vm5 = vcmp.eq.s32.totalorder %v1196_v42, 33  ;;  %vm1245_vm2 = vcmp.eq.s32.totalorder %v1117_v13, 0  ;;  %v1922_v2 = vsel %vm1518_vm1, %v4697_v53, %v1785_v16  ;;  %vm1374_vm3 = vcmp.eq.s32.totalorder %v1117_v13, 1 }
 0x1f9   : > { %v1849_v57 = vsel %vm1711_vm5, %v4692_v12, 0.0  ;;  %vm1503_vm6 = vcmp.eq.s32.totalorder %v1117_v13, 32  ;;  %v2059_v36 = vsel %vm1389_vm8, %v4700_v28, %v1922_v2  ;;  %vm1632_vm15 = vcmp.eq.s32.totalorder %v1117_v13, 33 }
 0x1fa   : > { %v1986_v8 = vsel %vm1582_vm11, %v4697_v53, %v1849_v57  ;;  %vm1309_vm13 = vcmp.eq.s32.totalorder %v1181_v26, 0  ;;  %v2196_v6 = vsel %vm1260_vm9, %v4708_v55, %v2059_v36  ;;  %v1770_v56 = vsel %vm1632_vm15, %v4551_v46, 0.0 }
 0x1fb   : > { %v2123_v25 = vsel %vm1453_vm12, %v4700_v28, %v1986_v8  ;;  %vm1438_vm10 = vcmp.eq.s32.totalorder %v1181_v26, 1  ;;  %2356 = vmatpush.msrb.mxu0 %v2196_v6  ;;  %v1907_v50 = vsel %vm1503_vm6, %v4556_v49, %v1770_v56  ;;  %vm1567_vm0 = vcmp.eq.s32.totalorder %v1181_v26, 32 }
 0x1fc   : > { %v2260_v0 = vsel %vm1324_vm14, %v4708_v55, %v2123_v25  ;;  %vm1696_vm4 = vcmp.eq.s32.totalorder %v1181_v26, 33  ;;  %v2044_v29 = vsel %vm1374_vm3, %v4561_v27, %v1907_v50  ;;  %vm1256_vm9 = vcmp.eq.s32.totalorder %v1128_v52, 0 }
 0x1fd   : > { %2376 = vmatpush.msrb.mxu1 %v2260_v0  ;;  %v1834_v15 = vsel %vm1696_vm4, %v4551_v46, 0.0  ;;  %vm1385_vm8 = vcmp.eq.s32.totalorder %v1128_v52, 1  ;;  %v2181_v60 = vsel %vm1245_vm2, %v4572_v5, %v2044_v29  ;;  %vm1514_vm1 = vcmp.eq.s32.totalorder %v1128_v52, 32 }
 0x1fe   : > { %v1971_v39 = vsel %vm1567_vm0, %v4556_v49, %v1834_v15  ;;  %vm1643_vm7 = vcmp.eq.s32.totalorder %v1128_v52, 33  ;;  %2400 = vmatpush.msrb.mxu2 %v2181_v60  ;;  %v1192_v35 = vsub.s32 %v4012_v3, %v4689_v40  ;;  %v1113_v61 = vsub.s32 %v4183_v20, %v4545_v54 }
 0x1ff   : > { %v2108_v34 = vsel %vm1438_vm10, %v4561_v27, %v1971_v39  ;;  %v1781_v63 = vsel %vm1643_vm7, %v4692_v12, 0.0  ;;  %v1177_v42 = vsub.s32 %v4199_v22, %v4545_v54  ;;  %v1124_v32 = vsub.s32 %v4015_v7, %v4689_v40 }
 0x200   : > { %v2245_v19 = vsel %vm1309_vm13, %v4572_v5, %v2108_v34  ;;  %v1918_v51 = vsel %vm1514_vm1, %v4697_v53, %v1781_v63  ;;  %vm1320_vm14 = vcmp.eq.s32.totalorder %v1192_v35, 0  ;;  %vm1449_vm12 = vcmp.eq.s32.totalorder %v1192_v35, 1 }
 0x201   : > { %2420 = vmatpush.msrb.mxu3 %v2245_v19  ;;  %v2055_v13 = vsel %vm1385_vm8, %v4700_v28, %v1918_v51  ;;  %vm1578_vm11 = vcmp.eq.s32.totalorder %v1192_v35, 32  ;;  %vm1707_vm5 = vcmp.eq.s32.totalorder %v1192_v35, 33  ;;  %vm1241_vm2 = vcmp.eq.s32.totalorder %v1113_v61, 0 }
 0x202   : > { %v2192_v3 = vsel %vm1256_vm9, %v4708_v55, %v2055_v13  ;;  %vm1370_vm3 = vcmp.eq.s32.totalorder %v1113_v61, 1  ;;  %v1845_v26 = vsel %vm1707_vm5, %v4692_v12, 0.0  ;;  %vm1499_vm6 = vcmp.eq.s32.totalorder %v1113_v61, 32 }
 0x203   : > { %2357 = vmatpush.msrb.mxu0 %v2192_v3  ;;  %vm1628_vm15 = vcmp.eq.s32.totalorder %v1113_v61, 33  ;;  %vm1305_vm13 = vcmp.eq.s32.totalorder %v1177_v42, 0  ;;  %v1982_v7 = vsel %vm1578_vm11, %v4697_v53, %v1845_v26  ;;  %vm1434_vm10 = vcmp.eq.s32.totalorder %v1177_v42, 1 }
 0x204   : > { %v1766_v44 = vsel %vm1628_vm15, %v4551_v46, 0.0  ;;  %vm1563_vm0 = vcmp.eq.s32.totalorder %v1177_v42, 32  ;;  %v2119_v59 = vsel %vm1449_vm12, %v4700_v28, %v1982_v7  ;;  %vm1692_vm4 = vcmp.eq.s32.totalorder %v1177_v42, 33 }
 0x205   : > { %v1903_v52 = vsel %vm1499_vm6, %v4556_v49, %v1766_v44  ;;  %vm1252_vm9 = vcmp.eq.s32.totalorder %v1124_v32, 0  ;;  %v2256_v16 = vsel %vm1320_vm14, %v4708_v55, %v2119_v59  ;;  %v1830_v57 = vsel %vm1692_vm4, %v4551_v46, 0.0 }
 0x206   : > { %v2040_v2 = vsel %vm1370_vm3, %v4561_v27, %v1903_v52  ;;  %vm1381_vm8 = vcmp.eq.s32.totalorder %v1124_v32, 1  ;;  %2377 = vmatpush.msrb.mxu1 %v2256_v16  ;;  %v1967_v8 = vsel %vm1563_vm0, %v4556_v49, %v1830_v57  ;;  %vm1510_vm1 = vcmp.eq.s32.totalorder %v1124_v32, 32 }
 0x207   : > { %v2177_v36 = vsel %vm1241_vm2, %v4572_v5, %v2040_v2  ;;  %vm1639_vm7 = vcmp.eq.s32.totalorder %v1124_v32, 33  ;;  %v2104_v6 = vsel %vm1434_vm10, %v4561_v27, %v1967_v8  ;;  %v1188_v56 = vsub.s32 %v4018_v18, %v4689_v40  ;;  %v2268_v32 = vld [vmem:[%s324_s8] sm:$0xff] }
 0x208   : > { %2401 = vmatpush.msrb.mxu2 %v2177_v36  ;;  %v1777_v25 = vsel %vm1639_vm7, %v4692_v12, 0.0  ;;  %v1109_v0 = vsub.s32 %v4220_v45, %v4545_v54  ;;  %v2241_v50 = vsel %vm1305_vm13, %v4572_v5, %v2104_v6  ;;  %v1173_v15 = vsub.s32 %v4225_v47, %v4545_v54  ;;  %2270 = vst [vmem:[#allocation1] ss:$2 sm:$0xff] %v2268_v32 }
 0x209   : > { %v1914_v29 = vsel %vm1510_vm1, %v4697_v53, %v1777_v25  ;;  %v1120_v60 = vsub.s32 %v4092_v43, %v4689_v40  ;;  %2421 = vmatpush.msrb.mxu3 %v2241_v50  ;;  %vm1316_vm14 = vcmp.eq.s32.totalorder %v1188_v56, 0  ;;  %vm1445_vm12 = vcmp.eq.s32.totalorder %v1188_v56, 1 }
 0x20a   : > { %v2051_v39 = vsel %vm1381_vm8, %v4700_v28, %v1914_v29  ;;  %vm1574_vm11 = vcmp.eq.s32.totalorder %v1188_v56, 32  ;;  %vm1703_vm5 = vcmp.eq.s32.totalorder %v1188_v56, 33  ;;  %vm1237_vm2 = vcmp.eq.s32.totalorder %v1109_v0, 0 }
 0x20b   : > { %v2188_v18 = vsel %vm1252_vm9, %v4708_v55, %v2051_v39  ;;  %vm1366_vm3 = vcmp.eq.s32.totalorder %v1109_v0, 1  ;;  %v1841_v34 = vsel %vm1703_vm5, %v4692_v12, 0.0  ;;  %vm1495_vm6 = vcmp.eq.s32.totalorder %v1109_v0, 32 }
 0x20c   : > { %2358 = vmatpush.msrb.mxu0 %v2188_v18  ;;  %vm1624_vm15 = vcmp.eq.s32.totalorder %v1109_v0, 33  ;;  %vm1301_vm13 = vcmp.eq.s32.totalorder %v1173_v15, 0  ;;  %v1978_v43 = vsel %vm1574_vm11, %v4697_v53, %v1841_v34  ;;  %vm1430_vm10 = vcmp.eq.s32.totalorder %v1173_v15, 1 }
 0x20d   : > { %v1762_v63 = vsel %vm1624_vm15, %v4551_v46, 0.0  ;;  %vm1559_vm0 = vcmp.eq.s32.totalorder %v1173_v15, 32  ;;  %v2115_v35 = vsel %vm1445_vm12, %v4700_v28, %v1978_v43  ;;  %vm1688_vm4 = vcmp.eq.s32.totalorder %v1173_v15, 33 }
 0x20e   : > { %v1899_v61 = vsel %vm1495_vm6, %v4556_v49, %v1762_v63  ;;  %vm1248_vm9 = vcmp.eq.s32.totalorder %v1120_v60, 0  ;;  %v2252_v19 = vsel %vm1316_vm14, %v4708_v55, %v2115_v35  ;;  %v1826_v42 = vsel %vm1688_vm4, %v4551_v46, 0.0 }
 0x20f   : > { %v2036_v51 = vsel %vm1366_vm3, %v4561_v27, %v1899_v61  ;;  %vm1377_vm8 = vcmp.eq.s32.totalorder %v1120_v60, 1  ;;  %2378 = vmatpush.msrb.mxu1 %v2252_v19  ;;  %v1963_v3 = vsel %vm1559_vm0, %v4556_v49, %v1826_v42  ;;  %vm1506_vm1 = vcmp.eq.s32.totalorder %v1120_v60, 32  ;;  %v4853_v0 = vld.sshfl [vmem:[#allocation1] sm:$0xff pattern:$0x75316420] }
 0x210   : > { %v2173_v13 = vsel %vm1237_vm2, %v4572_v5, %v2036_v51  ;;  %vm1635_vm7 = vcmp.eq.s32.totalorder %v1120_v60, 33  ;;  %v2100_v26 = vsel %vm1430_vm10, %v4561_v27, %v1963_v3  ;;  %v1184_v44 = vsub.s32 %v4096_v24, %v4689_v40  ;;  %2331 = vmatmul.f32.vlgmr.msra.gmra.mxu2 %v4853_v0  ;;  %v4861_v60 = vld.sshfl [vmem:[#allocation1 + $0x8] sm:$0xff pattern:$0x75316420]  ;;  %2291 = vmatmul.f32.vlgmr.msra.gmra.mxu0 %v4853_v0 }
 0x211   : > { %2402 = vmatpush.msrb.mxu2 %v2173_v13  ;;  %v1773_v7 = vsel %vm1635_vm7, %v4692_v12, 0.0  ;;  %v1105_v59 = vsub.s32 %v4268_v10, %v4545_v54  ;;  %v2237_v52 = vsel %vm1301_vm13, %v4572_v5, %v2100_v26  ;;  %v1169_v2 = vsub.s32 %v4275_v1, %v4545_v54  ;;  %2351 = vmatmul.f32.vlgmr.msra.gmra.mxu3 %v4861_v60 }
 0x212   : > { %v1910_v16 = vsel %vm1506_vm1, %v4697_v53, %v1773_v7  ;;  %v1116_v57 = vsub.s32 %v4143_v41, %v4689_v40  ;;  %2422 = vmatpush.msrb.mxu3 %v2237_v52  ;;  %vm1312_vm14 = vcmp.eq.s32.totalorder %v1184_v44, 0  ;;  %vm1441_vm12 = vcmp.eq.s32.totalorder %v1184_v44, 1  ;;  %2311 = vmatmul.f32.vlgmr.msra.gmra.mxu1 %v4861_v60 }
 0x213   : > { %v2047_v36 = vsel %vm1377_vm8, %v4700_v28, %v1910_v16  ;;  %vm1570_vm11 = vcmp.eq.s32.totalorder %v1184_v44, 32  ;;  %vm1699_vm5 = vcmp.eq.s32.totalorder %v1184_v44, 33  ;;  %vm1233_vm2 = vcmp.eq.s32.totalorder %v1105_v59, 0 }
 0x214   : > { %v2184_v24 = vsel %vm1248_vm9, %v4708_v55, %v2047_v36  ;;  %vm1362_vm3 = vcmp.eq.s32.totalorder %v1105_v59, 1  ;;  %v1837_v8 = vsel %vm1699_vm5, %v4692_v12, 0.0  ;;  %vm1491_vm6 = vcmp.eq.s32.totalorder %v1105_v59, 32 }
 0x215   : > { %2359 = vmatpush.msrb.mxu0 %v2184_v24  ;;  %vm1620_vm15 = vcmp.eq.s32.totalorder %v1105_v59, 33  ;;  %vm1297_vm13 = vcmp.eq.s32.totalorder %v1169_v2, 0  ;;  %v1974_v41 = vsel %vm1570_vm11, %v4697_v53, %v1837_v8  ;;  %vm1426_vm10 = vcmp.eq.s32.totalorder %v1169_v2, 1 }
 0x216   : > { %v1758_v6 = vsel %vm1620_vm15, %v4551_v46, 0.0  ;;  %vm1555_vm0 = vcmp.eq.s32.totalorder %v1169_v2, 32  ;;  %v2111_v25 = vsel %vm1441_vm12, %v4700_v28, %v1974_v41  ;;  %vm1684_vm4 = vcmp.eq.s32.totalorder %v1169_v2, 33 }
 0x217   : > { %v1895_v56 = vsel %vm1491_vm6, %v4556_v49, %v1758_v6  ;;  %vm1244_vm9 = vcmp.eq.s32.totalorder %v1116_v57, 0  ;;  %v2248_v50 = vsel %vm1312_vm14, %v4708_v55, %v2111_v25  ;;  %v1822_v15 = vsel %vm1684_vm4, %v4551_v46, 0.0 }
 0x218   : > { %v2032_v29 = vsel %vm1362_vm3, %v4561_v27, %v1895_v56  ;;  %vm1373_vm8 = vcmp.eq.s32.totalorder %v1116_v57, 1  ;;  %2379 = vmatpush.msrb.mxu1 %v2248_v50  ;;  %v1959_v18 = vsel %vm1555_vm0, %v4556_v49, %v1822_v15  ;;  %vm1502_vm1 = vcmp.eq.s32.totalorder %v1116_v57, 32 }
 0x219   : > { %v2169_v39 = vsel %vm1233_vm2, %v4572_v5, %v2032_v29  ;;  %vm1631_vm7 = vcmp.eq.s32.totalorder %v1116_v57, 33  ;;  %v2096_v34 = vsel %vm1426_vm10, %v4561_v27, %v1959_v18  ;;  %v1180_v63 = vsub.s32 %v4150_v14, %v4689_v40 }
 0x21a   : > { %2403 = vmatpush.msrb.mxu2 %v2169_v39  ;;  %v1769_v43 = vsel %vm1631_vm7, %v4692_v12, 0.0  ;;  %v1101_v35 = vsub.s32 %v4302_v58, %v4545_v54  ;;  %v2233_v61 = vsel %vm1297_vm13, %v4572_v5, %v2096_v34  ;;  %v1165_v51 = vsub.s32 %v4310_v62, %v4545_v54 }
 0x21b   : > { %v1906_v19 = vsel %vm1502_vm1, %v4697_v53, %v1769_v43  ;;  %v1112_v42 = vsub.s32 %v4183_v20, %v4689_v40  ;;  %2423 = vmatpush.msrb.mxu3 %v2233_v61  ;;  %vm1308_vm14 = vcmp.eq.s32.totalorder %v1180_v63, 0  ;;  %vm1437_vm12 = vcmp.eq.s32.totalorder %v1180_v63, 1 }
 0x21c   : > { %v2043_v14 = vsel %vm1373_vm8, %v4700_v28, %v1906_v19  ;;  %vm1566_vm11 = vcmp.eq.s32.totalorder %v1180_v63, 32  ;;  %vm1695_vm5 = vcmp.eq.s32.totalorder %v1180_v63, 33  ;;  %vm1229_vm2 = vcmp.eq.s32.totalorder %v1101_v35, 0 }
 0x21d   : > { %v2180_v32 = vsel %vm1244_vm9, %v4708_v55, %v2043_v14  ;;  %vm1358_vm3 = vcmp.eq.s32.totalorder %v1101_v35, 1  ;;  %v1833_v13 = vsel %vm1695_vm5, %v4692_v12, 0.0  ;;  %vm1487_vm6 = vcmp.eq.s32.totalorder %v1101_v35, 32 }
 0x21e   : > { %2360 = vmatpush.msrb.mxu0 %v2180_v32  ;;  %vm1616_vm15 = vcmp.eq.s32.totalorder %v1101_v35, 33  ;;  %vm1293_vm13 = vcmp.eq.s32.totalorder %v1165_v51, 0  ;;  %v1970_v20 = vsel %vm1566_vm11, %v4697_v53, %v1833_v13  ;;  %vm1422_vm10 = vcmp.eq.s32.totalorder %v1165_v51, 1 }
 0x21f   : > { %v1754_v3 = vsel %vm1616_vm15, %v4551_v46, 0.0  ;;  %vm1551_vm0 = vcmp.eq.s32.totalorder %v1165_v51, 32  ;;  %v2107_v26 = vsel %vm1437_vm12, %v4700_v28, %v1970_v20  ;;  %vm1680_vm4 = vcmp.eq.s32.totalorder %v1165_v51, 33 }
 0x220   : > { %v1891_v7 = vsel %vm1487_vm6, %v4556_v49, %v1754_v3  ;;  %vm1240_vm9 = vcmp.eq.s32.totalorder %v1112_v42, 0  ;;  %v2244_v44 = vsel %vm1308_vm14, %v4708_v55, %v2107_v26  ;;  %v1818_v52 = vsel %vm1680_vm4, %v4551_v46, 0.0 }
 0x221   : > { %v2028_v59 = vsel %vm1358_vm3, %v4561_v27, %v1891_v7  ;;  %vm1369_vm8 = vcmp.eq.s32.totalorder %v1112_v42, 1  ;;  %2380 = vmatpush.msrb.mxu1 %v2244_v44  ;;  %v1955_v2 = vsel %vm1551_vm0, %v4556_v49, %v1818_v52  ;;  %vm1498_vm1 = vcmp.eq.s32.totalorder %v1112_v42, 32 }
 0x222   : > { %v2165_v16 = vsel %vm1229_vm2, %v4572_v5, %v2028_v59  ;;  %vm1627_vm7 = vcmp.eq.s32.totalorder %v1112_v42, 33  ;;  %v2092_v57 = vsel %vm1422_vm10, %v4561_v27, %v1955_v2  ;;  %v1176_v24 = vsub.s32 %v4199_v22, %v4689_v40 }
 0x223   : > { %2404 = vmatpush.msrb.mxu2 %v2165_v16  ;;  %v1765_v36 = vsel %vm1627_vm7, %v4692_v12, 0.0  ;;  %v1097_v8 = vsub.s32 %v4319_v4, %v4545_v54  ;;  %v2229_v41 = vsel %vm1293_vm13, %v4572_v5, %v2092_v57  ;;  %v1161_v25 = vsub.s32 %v4345_v48, %v4545_v54 }
 0x224   : > { %v1902_v6 = vsel %vm1498_vm1, %v4697_v53, %v1765_v36  ;;  %v1108_v56 = vsub.s32 %v4220_v45, %v4689_v40  ;;  %2424 = vmatpush.msrb.mxu3 %v2229_v41  ;;  %vm1304_vm14 = vcmp.eq.s32.totalorder %v1176_v24, 0  ;;  %vm1433_vm12 = vcmp.eq.s32.totalorder %v1176_v24, 1 }
 0x225   : > { %v2039_v50 = vsel %vm1369_vm8, %v4700_v28, %v1902_v6  ;;  %vm1562_vm11 = vcmp.eq.s32.totalorder %v1176_v24, 32  ;;  %vm1691_vm5 = vcmp.eq.s32.totalorder %v1176_v24, 33  ;;  %vm1225_vm2 = vcmp.eq.s32.totalorder %v1097_v8, 0 }
 0x226   : > { %v2176_v22 = vsel %vm1240_vm9, %v4708_v55, %v2039_v50  ;;  %vm1354_vm3 = vcmp.eq.s32.totalorder %v1097_v8, 1  ;;  %v1829_v29 = vsel %vm1691_vm5, %v4692_v12, 0.0  ;;  %vm1483_vm6 = vcmp.eq.s32.totalorder %v1097_v8, 32 }
 0x227   : > { %2361 = vmatpush.msrb.mxu0 %v2176_v22  ;;  %vm1612_vm15 = vcmp.eq.s32.totalorder %v1097_v8, 33  ;;  %vm1289_vm13 = vcmp.eq.s32.totalorder %v1161_v25, 0  ;;  %v1966_v45 = vsel %vm1562_vm11, %v4697_v53, %v1829_v29  ;;  %vm1418_vm10 = vcmp.eq.s32.totalorder %v1161_v25, 1 }
 0x228   : > { %v1750_v15 = vsel %vm1612_vm15, %v4551_v46, 0.0  ;;  %vm1547_vm0 = vcmp.eq.s32.totalorder %v1161_v25, 32  ;;  %v2103_v39 = vsel %vm1433_vm12, %v4700_v28, %v1966_v45  ;;  %vm1676_vm4 = vcmp.eq.s32.totalorder %v1161_v25, 33 }
 0x229   : > { %v1887_v18 = vsel %vm1483_vm6, %v4556_v49, %v1750_v15  ;;  %vm1236_vm9 = vcmp.eq.s32.totalorder %v1108_v56, 0  ;;  %v2240_v34 = vsel %vm1304_vm14, %v4708_v55, %v2103_v39  ;;  %v1814_v63 = vsel %vm1676_vm4, %v4551_v46, 0.0 }
 0x22a   : > { %v2024_v43 = vsel %vm1354_vm3, %v4561_v27, %v1887_v18  ;;  %vm1365_vm8 = vcmp.eq.s32.totalorder %v1108_v56, 1  ;;  %2381 = vmatpush.msrb.mxu1 %v2240_v34  ;;  %v1951_v61 = vsel %vm1547_vm0, %v4556_v49, %v1814_v63  ;;  %vm1494_vm1 = vcmp.eq.s32.totalorder %v1108_v56, 32 }
 0x22b   : > { %v2161_v35 = vsel %vm1225_vm2, %v4572_v5, %v2024_v43  ;;  %vm1623_vm7 = vcmp.eq.s32.totalorder %v1108_v56, 33  ;;  %v2088_v19 = vsel %vm1418_vm10, %v4561_v27, %v1951_v61  ;;  %v1172_v42 = vsub.s32 %v4225_v47, %v4689_v40 }
 0x22c   : > { %2405 = vmatpush.msrb.mxu2 %v2161_v35  ;;  %v1761_v51 = vsel %vm1623_vm7, %v4692_v12, 0.0  ;;  %v1093_v14 = vsub.s32 %v4374_v17, %v4545_v54  ;;  %v2225_v32 = vsel %vm1289_vm13, %v4572_v5, %v2088_v19  ;;  %v1157_v20 = vsub.s32 %v4391_v23, %v4545_v54 }
 0x22d   : > { %v1898_v13 = vsel %vm1494_vm1, %v4697_v53, %v1761_v51  ;;  %v1104_v3 = vsub.s32 %v4268_v10, %v4689_v40  ;;  %2425 = vmatpush.msrb.mxu3 %v2225_v32  ;;  %vm1300_vm14 = vcmp.eq.s32.totalorder %v1172_v42, 0  ;;  %vm1429_vm12 = vcmp.eq.s32.totalorder %v1172_v42, 1 }
 0x22e   : > { %v2035_v26 = vsel %vm1365_vm8, %v4700_v28, %v1898_v13  ;;  %vm1558_vm11 = vcmp.eq.s32.totalorder %v1172_v42, 32  ;;  %vm1687_vm5 = vcmp.eq.s32.totalorder %v1172_v42, 33  ;;  %vm1221_vm2 = vcmp.eq.s32.totalorder %v1093_v14, 0 }
 0x22f   : > { %v2172_v47 = vsel %vm1236_vm9, %v4708_v55, %v2035_v26  ;;  %vm1350_vm3 = vcmp.eq.s32.totalorder %v1093_v14, 1  ;;  %v1825_v7 = vsel %vm1687_vm5, %v4692_v12, 0.0  ;;  %vm1479_vm6 = vcmp.eq.s32.totalorder %v1093_v14, 32 }
 0x230   : > { %2362 = vmatpush.msrb.mxu0 %v2172_v47  ;;  %vm1608_vm15 = vcmp.eq.s32.totalorder %v1093_v14, 33  ;;  %vm1285_vm13 = vcmp.eq.s32.totalorder %v1157_v20, 0  ;;  %v1962_v10 = vsel %vm1558_vm11, %v4697_v53, %v1825_v7  ;;  %vm1414_vm10 = vcmp.eq.s32.totalorder %v1157_v20, 1 }
 0x231   : > { %v1746_v44 = vsel %vm1608_vm15, %v4551_v46, 0.0  ;;  %vm1543_vm0 = vcmp.eq.s32.totalorder %v1157_v20, 32  ;;  %v2099_v59 = vsel %vm1429_vm12, %v4700_v28, %v1962_v10  ;;  %vm1672_vm4 = vcmp.eq.s32.totalorder %v1157_v20, 33 }
 0x232   : > { %v1883_v52 = vsel %vm1479_vm6, %v4556_v49, %v1746_v44  ;;  %vm1232_vm9 = vcmp.eq.s32.totalorder %v1104_v3, 0  ;;  %v2236_v16 = vsel %vm1300_vm14, %v4708_v55, %v2099_v59  ;;  %v1810_v57 = vsel %vm1672_vm4, %v4551_v46, 0.0 }
 0x233   : > { %v2020_v2 = vsel %vm1350_vm3, %v4561_v27, %v1883_v52  ;;  %vm1361_vm8 = vcmp.eq.s32.totalorder %v1104_v3, 1  ;;  %2382 = vmatpush.msrb.mxu1 %v2236_v16  ;;  %v1947_v24 = vsel %vm1543_vm0, %v4556_v49, %v1810_v57  ;;  %vm1490_vm1 = vcmp.eq.s32.totalorder %v1104_v3, 32 }
 0x234   : > { %v2157_v36 = vsel %vm1221_vm2, %v4572_v5, %v2020_v2  ;;  %vm1619_vm7 = vcmp.eq.s32.totalorder %v1104_v3, 33  ;;  %v2084_v8 = vsel %vm1414_vm10, %v4561_v27, %v1947_v24  ;;  %v1168_v6 = vsub.s32 %v4275_v1, %v4689_v40 }
 0x235   : > { %2406 = vmatpush.msrb.mxu2 %v2157_v36  ;;  %v1757_v41 = vsel %vm1619_vm7, %v4692_v12, 0.0  ;;  %v1089_v25 = vsub.s32 %v4406_v38, %v4545_v54  ;;  %v2221_v56 = vsel %vm1285_vm13, %v4572_v5, %v2084_v8  ;;  %v1153_v22 = vsub.s32 %v4424_v21, %v4545_v54 }
 0x236   : > { %v1894_v50 = vsel %vm1490_vm1, %v4697_v53, %v1757_v41  ;;  %v1100_v29 = vsub.s32 %v4302_v58, %v4689_v40  ;;  %2426 = vmatpush.msrb.mxu3 %v2221_v56  ;;  %vm1296_vm14 = vcmp.eq.s32.totalorder %v1168_v6, 0  ;;  %vm1425_vm12 = vcmp.eq.s32.totalorder %v1168_v6, 1 }
 0x237   : > { %v2031_v45 = vsel %vm1361_vm8, %v4700_v28, %v1894_v50  ;;  %vm1554_vm11 = vcmp.eq.s32.totalorder %v1168_v6, 32  ;;  %vm1683_vm5 = vcmp.eq.s32.totalorder %v1168_v6, 33  ;;  %vm1217_vm2 = vcmp.eq.s32.totalorder %v1089_v25, 0 }
 0x238   : > { %v2168_v1 = vsel %vm1232_vm9, %v4708_v55, %v2031_v45  ;;  %vm1346_vm3 = vcmp.eq.s32.totalorder %v1089_v25, 1  ;;  %v1821_v15 = vsel %vm1683_vm5, %v4692_v12, 0.0  ;;  %vm1475_vm6 = vcmp.eq.s32.totalorder %v1089_v25, 32 }
 0x239   : > { %2363 = vmatpush.msrb.mxu0 %v2168_v1  ;;  %vm1604_vm15 = vcmp.eq.s32.totalorder %v1089_v25, 33  ;;  %vm1281_vm13 = vcmp.eq.s32.totalorder %v1153_v22, 0  ;;  %v1958_v58 = vsel %vm1554_vm11, %v4697_v53, %v1821_v15  ;;  %vm1410_vm10 = vcmp.eq.s32.totalorder %v1153_v22, 1 }
 0x23a   : > { %v1742_v39 = vsel %vm1604_vm15, %v4551_v46, 0.0  ;;  %vm1539_vm0 = vcmp.eq.s32.totalorder %v1153_v22, 32  ;;  %v2095_v18 = vsel %vm1425_vm12, %v4700_v28, %v1958_v58  ;;  %vm1668_vm4 = vcmp.eq.s32.totalorder %v1153_v22, 33 }
 0x23b   : > { %v1879_v34 = vsel %vm1475_vm6, %v4556_v49, %v1742_v39  ;;  %vm1228_vm9 = vcmp.eq.s32.totalorder %v1100_v29, 0  ;;  %v2232_v43 = vsel %vm1296_vm14, %v4708_v55, %v2095_v18  ;;  %v1806_v35 = vsel %vm1668_vm4, %v4551_v46, 0.0 }
 0x23c   : > { %v2016_v63 = vsel %vm1346_vm3, %v4561_v27, %v1879_v34  ;;  %vm1357_vm8 = vcmp.eq.s32.totalorder %v1100_v29, 1  ;;  %2383 = vmatpush.msrb.mxu1 %v2232_v43  ;;  %v1943_v19 = vsel %vm1539_vm0, %v4556_v49, %v1806_v35  ;;  %vm1486_vm1 = vcmp.eq.s32.totalorder %v1100_v29, 32 }
 0x23d   : > { %v2153_v61 = vsel %vm1217_vm2, %v4572_v5, %v2016_v63  ;;  %vm1615_vm7 = vcmp.eq.s32.totalorder %v1100_v29, 33  ;;  %v2080_v51 = vsel %vm1410_vm10, %v4561_v27, %v1943_v19  ;;  %v1164_v14 = vsub.s32 %v4310_v62, %v4689_v40 }
 0x23e   : > { %2407 = vmatpush.msrb.mxu2 %v2153_v61  ;;  %v1753_v42 = vsel %vm1615_vm7, %v4692_v12, 0.0  ;;  %v1085_v32 = vsub.s32 %v4453_v30, %v4545_v54  ;;  %v2217_v13 = vsel %vm1281_vm13, %v4572_v5, %v2080_v51  ;;  %v1149_v3 = vsub.s32 %v4460_v9, %v4545_v54 }
 0x23f   : > { %v1890_v20 = vsel %vm1486_vm1, %v4697_v53, %v1753_v42  ;;  %v1096_v26 = vsub.s32 %v4319_v4, %v4689_v40  ;;  %2427 = vmatpush.msrb.mxu3 %v2217_v13  ;;  %vm1292_vm14 = vcmp.eq.s32.totalorder %v1164_v14, 0  ;;  %vm1421_vm12 = vcmp.eq.s32.totalorder %v1164_v14, 1 }
 0x240   : > { %v2027_v47 = vsel %vm1357_vm8, %v4700_v28, %v1890_v20  ;;  %vm1550_vm11 = vcmp.eq.s32.totalorder %v1164_v14, 32  ;;  %vm1679_vm5 = vcmp.eq.s32.totalorder %v1164_v14, 33  ;;  %vm1213_vm2 = vcmp.eq.s32.totalorder %v1085_v32, 0 }
 0x241   : > { %v2164_v62 = vsel %vm1228_vm9, %v4708_v55, %v2027_v47  ;;  %vm1342_vm3 = vcmp.eq.s32.totalorder %v1085_v32, 1  ;;  %v1817_v7 = vsel %vm1679_vm5, %v4692_v12, 0.0  ;;  %vm1471_vm6 = vcmp.eq.s32.totalorder %v1085_v32, 32 }
 0x242   : > { %2364 = vmatpush.msrb.mxu0 %v2164_v62  ;;  %vm1600_vm15 = vcmp.eq.s32.totalorder %v1085_v32, 33  ;;  %vm1277_vm13 = vcmp.eq.s32.totalorder %v1149_v3, 0  ;;  %v1954_v4 = vsel %vm1550_vm11, %v4697_v53, %v1817_v7  ;;  %vm1406_vm10 = vcmp.eq.s32.totalorder %v1149_v3, 1 }
 0x243   : > { %v1738_v10 = vsel %vm1600_vm15, %v4551_v46, 0.0  ;;  %vm1535_vm0 = vcmp.eq.s32.totalorder %v1149_v3, 32  ;;  %v2091_v44 = vsel %vm1421_vm12, %v4700_v28, %v1954_v4  ;;  %vm1664_vm4 = vcmp.eq.s32.totalorder %v1149_v3, 33 }
 0x244   : > { %v1875_v59 = vsel %vm1471_vm6, %v4556_v49, %v1738_v10  ;;  %vm1224_vm9 = vcmp.eq.s32.totalorder %v1096_v26, 0  ;;  %v2228_v52 = vsel %vm1292_vm14, %v4708_v55, %v2091_v44  ;;  %v1802_v2 = vsel %vm1664_vm4, %v4551_v46, 0.0 }
 0x245   : > { %v2012_v16 = vsel %vm1342_vm3, %v4561_v27, %v1875_v59  ;;  %vm1353_vm8 = vcmp.eq.s32.totalorder %v1096_v26, 1  ;;  %2384 = vmatpush.msrb.mxu1 %v2228_v52  ;;  %v1939_v36 = vsel %vm1535_vm0, %v4556_v49, %v1802_v2  ;;  %vm1482_vm1 = vcmp.eq.s32.totalorder %v1096_v26, 32 }
 0x246   : > { %v2149_v57 = vsel %vm1213_vm2, %v4572_v5, %v2012_v16  ;;  %vm1611_vm7 = vcmp.eq.s32.totalorder %v1096_v26, 33  ;;  %v2076_v24 = vsel %vm1406_vm10, %v4561_v27, %v1939_v36  ;;  %v1160_v41 = vsub.s32 %v4345_v48, %v4689_v40 }
 0x247   : > { %2408 = vmatpush.msrb.mxu2 %v2149_v57  ;;  %v1749_v8 = vsel %vm1611_vm7, %v4692_v12, 0.0  ;;  %v1081_v6 = vsub.s32 %v4488_v37, %v4545_v54  ;;  %v2213_v25 = vsel %vm1277_vm13, %v4572_v5, %v2076_v24  ;;  %v1145_v50 = vsub.s32 %v4509_v11, %v4545_v54 }
 0x248   : > { %v1886_v56 = vsel %vm1482_vm1, %v4697_v53, %v1749_v8  ;;  %v1092_v22 = vsub.s32 %v4374_v17, %v4689_v40  ;;  %2428 = vmatpush.msrb.mxu3 %v2213_v25  ;;  %vm1288_vm14 = vcmp.eq.s32.totalorder %v1160_v41, 0  ;;  %vm1417_vm12 = vcmp.eq.s32.totalorder %v1160_v41, 1 }
 0x249   : > { %v2023_v29 = vsel %vm1353_vm8, %v4700_v28, %v1886_v56  ;;  %vm1546_vm11 = vcmp.eq.s32.totalorder %v1160_v41, 32  ;;  %vm1675_vm5 = vcmp.eq.s32.totalorder %v1160_v41, 33  ;;  %vm1209_vm2 = vcmp.eq.s32.totalorder %v1081_v6, 0 }
 0x24a   : > { %v2160_v48 = vsel %vm1224_vm9, %v4708_v55, %v2023_v29  ;;  %vm1338_vm3 = vcmp.eq.s32.totalorder %v1081_v6, 1  ;;  %v1813_v45 = vsel %vm1675_vm5, %v4692_v12, 0.0  ;;  %vm1467_vm6 = vcmp.eq.s32.totalorder %v1081_v6, 32 }
 0x24b   : > { %2365 = vmatpush.msrb.mxu0 %v2160_v48  ;;  %vm1596_vm15 = vcmp.eq.s32.totalorder %v1081_v6, 33  ;;  %vm1273_vm13 = vcmp.eq.s32.totalorder %v1145_v50, 0  ;;  %v1950_v17 = vsel %vm1546_vm11, %v4697_v53, %v1813_v45  ;;  %vm1402_vm10 = vcmp.eq.s32.totalorder %v1145_v50, 1 }
 0x24c   : > { %v1734_v1 = vsel %vm1596_vm15, %v4551_v46, 0.0  ;;  %vm1531_vm0 = vcmp.eq.s32.totalorder %v1145_v50, 32  ;;  %v2087_v15 = vsel %vm1417_vm12, %v4700_v28, %v1950_v17  ;;  %vm1660_vm4 = vcmp.eq.s32.totalorder %v1145_v50, 33 }
 0x24d   : > { %v1871_v58 = vsel %vm1467_vm6, %v4556_v49, %v1734_v1  ;;  %vm1220_vm9 = vcmp.eq.s32.totalorder %v1092_v22, 0  ;;  %v2224_v39 = vsel %vm1288_vm14, %v4708_v55, %v2087_v15  ;;  %v1798_v34 = vsel %vm1660_vm4, %v4551_v46, 0.0 }
 0x24e   : > { %v2008_v18 = vsel %vm1338_vm3, %v4561_v27, %v1871_v58  ;;  %vm1349_vm8 = vcmp.eq.s32.totalorder %v1092_v22, 1  ;;  %2385 = vmatpush.msrb.mxu1 %v2224_v39  ;;  %v1935_v63 = vsel %vm1531_vm0, %v4556_v49, %v1798_v34  ;;  %vm1478_vm1 = vcmp.eq.s32.totalorder %v1092_v22, 32 }
 0x24f   : > { %v2145_v43 = vsel %vm1209_vm2, %v4572_v5, %v2008_v18  ;;  %vm1607_vm7 = vcmp.eq.s32.totalorder %v1092_v22, 33  ;;  %v2072_v35 = vsel %vm1402_vm10, %v4561_v27, %v1935_v63  ;;  %v1156_v19 = vsub.s32 %v4391_v23, %v4689_v40 }
 0x250   : > { %2409 = vmatpush.msrb.mxu2 %v2145_v43  ;;  %v1745_v61 = vsel %vm1607_vm7, %v4692_v12, 0.0  ;;  %v1077_v51 = vsub.s32 %v4504_v33, %v4545_v54  ;;  %v2209_v42 = vsel %vm1273_vm13, %v4572_v5, %v2072_v35  ;;  %v1141_v32 = vsub.s32 %v4540_v31, %v4545_v54 }
 0x251   : > { %v1882_v14 = vsel %vm1478_vm1, %v4697_v53, %v1745_v61  ;;  %v1088_v13 = vsub.s32 %v4406_v38, %v4689_v40  ;;  %2429 = vmatpush.msrb.mxu3 %v2209_v42  ;;  %vm1284_vm14 = vcmp.eq.s32.totalorder %v1156_v19, 0  ;;  %vm1413_vm12 = vcmp.eq.s32.totalorder %v1156_v19, 1 }
 0x252   : > { %v2019_v20 = vsel %vm1349_vm8, %v4700_v28, %v1882_v14  ;;  %vm1542_vm11 = vcmp.eq.s32.totalorder %v1156_v19, 32  ;;  %vm1671_vm5 = vcmp.eq.s32.totalorder %v1156_v19, 33  ;;  %vm1205_vm2 = vcmp.eq.s32.totalorder %v1077_v51, 0 }
 0x253   : > { %v2156_v23 = vsel %vm1220_vm9, %v4708_v55, %v2019_v20  ;;  %vm1334_vm3 = vcmp.eq.s32.totalorder %v1077_v51, 1  ;;  %v1809_v3 = vsel %vm1671_vm5, %v4692_v12, 0.0  ;;  %vm1463_vm6 = vcmp.eq.s32.totalorder %v1077_v51, 32  ;;  %v2266_v20 = vld [vmem:[%s3446_s0] sm:$0xff] }
 0x254   : > { %2366 = vmatpush.msrb.mxu0 %v2156_v23  ;;  %vm1592_vm15 = vcmp.eq.s32.totalorder %v1077_v51, 33  ;;  %vm1269_vm13 = vcmp.eq.s32.totalorder %v1141_v32, 0  ;;  %v1946_v38 = vsel %vm1542_vm11, %v4697_v53, %v1809_v3  ;;  %vm1398_vm10 = vcmp.eq.s32.totalorder %v1141_v32, 1 }
 0x255   : > { %v1730_v54 = vsel %vm1592_vm15, %v4551_v46, 0.0  ;;  %vm1527_vm0 = vcmp.eq.s32.totalorder %v1141_v32, 32  ;;  %v2083_v26 = vsel %vm1413_vm12, %v4700_v28, %v1946_v38  ;;  %vm1656_vm4 = vcmp.eq.s32.totalorder %v1141_v32, 33 }
 0x256   : > { %v1867_v47 = vsel %vm1463_vm6, %v4556_v49, %v1730_v54  ;;  %vm1216_vm9 = vcmp.eq.s32.totalorder %v1088_v13, 0  ;;  %v2220_v62 = vsel %vm1284_vm14, %v4708_v55, %v2083_v26  ;;  %v1794_v4 = vsel %vm1656_vm4, %v4551_v46, 0.0  ;;  %v2267_v26 = vld [vmem:[%s3446_s0 + $0x8] sm:$0xff] }
 0x257   : > { %v2004_v7 = vsel %vm1334_vm3, %v4561_v27, %v1867_v47  ;;  %vm1345_vm8 = vcmp.eq.s32.totalorder %v1088_v13, 1  ;;  %2386 = vmatpush.msrb.mxu1 %v2220_v62  ;;  %v1931_v44 = vsel %vm1527_vm0, %v4556_v49, %v1794_v4  ;;  %vm1474_vm1 = vcmp.eq.s32.totalorder %v1088_v13, 32 }
 0x258   : > { %v2141_v10 = vsel %vm1205_vm2, %v4572_v5, %v2004_v7  ;;  %vm1603_vm7 = vcmp.eq.s32.totalorder %v1088_v13, 33  ;;  %v2068_v59 = vsel %vm1398_vm10, %v4561_v27, %v1931_v44  ;;  %v1152_v16 = vsub.s32 %v4424_v21, %v4689_v40 }
 0x259   : > { %2410 = vmatpush.msrb.mxu2 %v2141_v10  ;;  %v1741_v52 = vsel %vm1603_vm7, %v4692_v12, 0.0  ;;  %v1084_v46 = vsub.s32 %v4453_v30, %v4689_v40  ;;  %v2205_v2 = vsel %vm1269_vm13, %v4572_v5, %v2068_v59  ;;  %v1148_v57 = vsub.s32 %v4460_v9, %v4689_v40 }
 0x25a   : > { %2411 = vmatmul.f32.vlgmr.msrb.gmra.mxu2 %v4853_v0  ;;  %v1878_v49 = vsel %vm1474_vm1, %v4697_v53, %v1741_v52  ;;  %v1080_v27 = vsub.s32 %v4488_v37, %v4689_v40  ;;  %2430 = vmatpush.msrb.mxu3 %v2205_v2  ;;  %vm1280_vm14 = vcmp.eq.s32.totalorder %v1152_v16, 0  ;;  %vm1409_vm12 = vcmp.eq.s32.totalorder %v1152_v16, 1 }
 0x25b   : > { %v2015_v21 = vsel %vm1345_vm8, %v4700_v28, %v1878_v49  ;;  %vm1538_vm11 = vcmp.eq.s32.totalorder %v1152_v16, 32  ;;  %2431 = vmatmul.f32.vlgmr.msrb.gmra.mxu3 %v4861_v60  ;;  %vm1667_vm5 = vcmp.eq.s32.totalorder %v1152_v16, 33  ;;  %vm1212_vm2 = vcmp.eq.s32.totalorder %v1084_v46, 0 }
 0x25c   : > { %v2152_v30 = vsel %vm1216_vm9, %v4708_v55, %v2015_v21  ;;  %vm1341_vm3 = vcmp.eq.s32.totalorder %v1084_v46, 1  ;;  %v1805_v9 = vsel %vm1667_vm5, %v4692_v12, 0.0  ;;  %vm1470_vm6 = vcmp.eq.s32.totalorder %v1084_v46, 32 }
 0x25d   : > { %2367 = vmatpush.msrb.mxu0 %v2152_v30  ;;  %vm1599_vm15 = vcmp.eq.s32.totalorder %v1084_v46, 33  ;;  %vm1276_vm13 = vcmp.eq.s32.totalorder %v1148_v57, 0  ;;  %v1942_v37 = vsel %vm1538_vm11, %v4697_v53, %v1805_v9  ;;  %vm1405_vm10 = vcmp.eq.s32.totalorder %v1148_v57, 1 }
 0x25e   : > { %v1737_v5 = vsel %vm1599_vm15, %v4692_v12, 0.0  ;;  %vm1534_vm0 = vcmp.eq.s32.totalorder %v1148_v57, 32  ;;  %v2079_v36 = vsel %vm1409_vm12, %v4700_v28, %v1942_v37  ;;  %vm1663_vm4 = vcmp.eq.s32.totalorder %v1148_v57, 33 }
 0x25f   : > { %v1874_v24 = vsel %vm1470_vm6, %v4697_v53, %v1737_v5  ;;  %vm1208_vm9 = vcmp.eq.s32.totalorder %v1080_v27, 0  ;;  %v2216_v8 = vsel %vm1280_vm14, %v4708_v55, %v2079_v36  ;;  %v1801_v6 = vsel %vm1663_vm4, %v4692_v12, 0.0 }
 0x260   : > { %v2011_v41 = vsel %vm1341_vm3, %v4700_v28, %v1874_v24  ;;  %vm1337_vm8 = vcmp.eq.s32.totalorder %v1080_v27, 1  ;;  %2387 = vmatpush.msrb.mxu1 %v2216_v8  ;;  %v1938_v56 = vsel %vm1534_vm0, %v4697_v53, %v1801_v6  ;;  %vm1466_vm1 = vcmp.eq.s32.totalorder %v1080_v27, 32 }
 0x261   : > { %v2148_v25 = vsel %vm1212_vm2, %v4708_v55, %v2011_v41  ;;  %vm1595_vm7 = vcmp.eq.s32.totalorder %v1080_v27, 33  ;;  %v2075_v50 = vsel %vm1405_vm10, %v4700_v28, %v1938_v56  ;;  %v1144_v29 = vsub.s32 %v4509_v11, %v4689_v40 }
 0x262   : > { %2368 = vmatpush.msrb.mxu0 %v2148_v25  ;;  %v1733_v22 = vsel %vm1595_vm7, %v4692_v12, 0.0  ;;  %v1076_v48 = vsub.s32 %v4504_v33, %v4689_v40  ;;  %v2212_v45 = vsel %vm1276_vm13, %v4708_v55, %v2075_v50  ;;  %v1140_v1 = vsub.s32 %v4540_v31, %v4689_v40 }
 0x263   : > { %v1870_v17 = vsel %vm1466_vm1, %v4697_v53, %v1733_v22  ;;  %2388 = vmatpush.msrb.mxu1 %v2212_v45  ;;  %vm1530_vm14 = vcmp.eq.s32.totalorder %v1144_v29, 32  ;;  %vm1272_vm12 = vcmp.eq.s32.totalorder %v1144_v29, 0  ;;  %vm1401_vm11 = vcmp.eq.s32.totalorder %v1144_v29, 1 }
 0x264   : > { %v2007_v15 = vsel %vm1337_vm8, %v4700_v28, %v1870_v17  ;;  %vm1659_vm5 = vcmp.eq.s32.totalorder %v1144_v29, 33  ;;  %vm1333_vm2 = vcmp.eq.s32.totalorder %v1076_v48, 1  ;;  %vm1462_vm3 = vcmp.eq.s32.totalorder %v1076_v48, 32 }
 0x265   : > { %v2144_v58 = vsel %vm1208_vm9, %v4708_v55, %v2007_v15  ;;  %v1797_v33 = vsel %vm1659_vm5, %v4692_v12, 0.0  ;;  %vm1591_vm6 = vcmp.eq.s32.totalorder %v1076_v48, 33  ;;  %vm1204_vm15 = vcmp.eq.s32.totalorder %v1076_v48, 0 }
 0x266   : > { %2369 = vmatpush.msrb.mxu0 %v2144_v58  ;;  %v1934_v11 = vsel %vm1530_vm14, %v4697_v53, %v1797_v33  ;;  %v1729_v31 = vsel %vm1591_vm6, %v4692_v12, 0.0  ;;  %vm1526_vm13 = vcmp.eq.s32.totalorder %v1140_v1, 32  ;;  %vm1397_vm10 = vcmp.eq.s32.totalorder %v1140_v1, 1 }
 0x267   : > { %v2071_v40 = vsel %vm1401_vm11, %v4700_v28, %v1934_v11  ;;  %v1866_v39 = vsel %vm1462_vm3, %v4697_v53, %v1729_v31  ;;  %vm1655_vm0 = vcmp.eq.s32.totalorder %v1140_v1, 33  ;;  %vm1268_vm4 = vcmp.eq.s32.totalorder %v1140_v1, 0 }
 0x268   : > { %v2208_v18 = vsel %vm1272_vm12, %v4708_v55, %v2071_v40  ;;  %v2003_v34 = vsel %vm1333_vm2, %v4700_v28, %v1866_v39  ;;  %v1793_v43 = vsel %vm1655_vm0, %v4692_v12, 0.0  ;;  %vm2441_vm9 = vcmask 1043456  }
 0x269   : > { %2389 = vmatpush.msrb.mxu1 %v2208_v18  ;;  %v2140_v63 = vsel %vm1204_vm15, %v4708_v55, %v2003_v34  ;;  %v1930_v35 = vsel %vm1526_vm13, %v4697_v53, %v1793_v43 }
 0x26a   : > { %2370 = vmatpush.msrb.mxu0 %v2140_v63  ;;  %v2067_v61 = vsel %vm1397_vm10, %v4700_v28, %v1930_v35 }
 0x26b   : > { %v2204_v19 = vsel %vm1268_vm4, %v4708_v55, %v2067_v61  ;;  %2371 = vmatmul.f32.vlgmr.msrb.gmra.mxu0 %v4853_v0 }
 0x26c   : > { %2390 = vmatpush.msrb.mxu1 %v2204_v19 }
 0x26d   : > { %2391 = vmatmul.f32.vlgmr.msrb.gmra.mxu1 %v4861_v60 }
 0x28d   : > { %v2292_v51 = vpop.f32.mrf.mxu0 }
 0x28f   : > { %v2312_v42 = vpop.f32.mrf.mxu1 }
 0x290   : > { %v2313_v13 = vadd.f32 %v2312_v42, %v2292_v51 }
 0x293   : > { %v2332_v12 = vpop.f32.mrf.mxu2 }
 0x294   : > { %v2352_v14 = vpop.f32.mrf.mxu3 }
 0x295   : > { %v2353_v32 = vadd.f32 %v2352_v14, %v2332_v12 }
 0x297   : > { %v2439_v53 = vrot.slane %v2353_v32, 4 }
 0x299   : > { %v2442_v28 = vsel %vm2441_vm9, %v2313_v13, %v2439_v53 }
 0x29a   : > { %v2446_v23 = vadd.f32 %v2442_v28, %v2266_v20 }
 0x29c   : > { %2448 = vst [vmem:[%s3446_s0] sm:$0xff] %v2446_v23 }
 0x2dd   : > { %v2412_v55 = vpop.f32.mrf.mxu2 }
 0x2de   : > { %v2432_v3 = vpop.f32.mrf.mxu3 }
 0x2df   : > { %v2433_v0 = vadd.f32 %v2432_v3, %v2412_v55 }
 0x2e1   : > { %v2440_v54 = vrot.slane %v2433_v0, 4 }
 0x2e8   : > { %v2372_v38 = vpop.f32.mrf.mxu0 }
 0x2ea   : > { %v2392_v60 = vpop.f32.mrf.mxu1 }
 0x2eb   : > { %v2393_v47 = vadd.f32 %v2392_v60, %v2372_v38 }
 0x2ed   : > { %v2443_v62 = vsel %vm2441_vm9, %v2393_v47, %v2440_v54 }
 0x2ee   : > { %v2447_v7 = vadd.f32 %v2443_v62, %v2267_v26 }
 0x2f0   : > { %2449 = vst [vmem:[%s3446_s0 + $0x8] sm:$0xff] %v2447_v7 }
 0x2f1 PF: > { %s5298_s17 = sld [smem:[#allocation32_spill]]  ;;  %s2466_s4 = sshll.u32 %s3446_s0, 4  ;;  %s2467_s4 = int_to_ptr.vmem [resolvable:$true] %s2466_s4 }
 0x2f2   : > { %s5299_s8 = sld [smem:[#allocation33_spill]]  ;;  %s2451_s27 = scalar_lea.sflag [#allocation12], %s3427_s16 }
 0x2f3   : > { %s5301_s26 = sld [smem:[#allocation46_spill]] }
 0x2f7   : > { %s2674_s3 = sshll.u32 %s5298_s17, 2 }
 0x2f8   : > { %s2675_s9 = sshll.u32 %s5299_s8, 3 }
 0x2f9   : > { %s2462_s10 = sadd.s32 %s2675_s9, %s2674_s3  ;;  %s3000_s0 = scalar_lea.hbm %s5301_s26, 64 }
 0x2fa   : > { %s2676_s18 = sshll.u32 %s2462_s10, 2 }
 0x2fb   : > { %s2464_s20 = scalar_lea.hbm %s5301_s26, %s2676_s18 }
 0x2fc   : > { %s2468_s13 = sshll.u32 %s2464_s20, 4  ;;  %s2469_s13 = int_to_ptr.hbm [resolvable:$true] %s2468_s13 }
 0x2fd   : > { %s2994_s21 = sshra.s32 %s2469_s13, 4  ;;  %s2995_s21 = int_to_ptr.hbm [resolvable:$true] %s2994_s21 }
 0x2fe   : > { %s2996_s19 = scalar_lea.hbm %s2995_s21, 16  ;;  %p3001_p12 = scmp.lt.s32.totalorder %s2995_s21, %s5301_s26 }
 0x2ff   : > { %p2997_p6 = scmp.ne.s32.totalorder %s2995_s21, %s2996_s19  ;;  %p3002_p9 = scmp.lt.s32.totalorder %s3000_s0, %s2996_s19 }
 0x301   : > { %p2998_p3 = pnand %p2997_p6, %p3325_p7  ;;  %p3003_p8 = por %p3002_p9, %p3001_p12 }
 0x303   : > { %p2999_p13 = pneg %p2998_p3 }
 0x305   : > { %p3004_p0 = pnand %p3003_p8, %p2999_p13 }
 0x307   : > { %3007 = shalt.err (!%p3004_p0)
}
 0x308   : > { %2711 = dma.vmem_to_hbm [thread:$0]  (%p3325_p7), %s2467_s4, 256, %s2469_s13, %s2451_s27  }
 0x309 PF: > { %p2740_p2 = scmp.ge.s32.totalorder %s3132_s15, 2  ;;  %s2480_s16 = sand.u32 1, %s3096_s30  }
 0x30a   : > { %p5302_p10 = scmp.ne.s32.totalorder %s5261_s22, 0  ;;  %s2481_s17 = scalar_lea.sflag [#allocation12], %s2480_s16 }
 0x30c   : > { %p2732_p4 = pnand %p2740_p2, %p5302_p10 }
 0x30e   : > { %p2733_p11 = pneg %p2732_p4 }
 0x310   : > { %3079 = dma.done.wait (%p2733_p11), %s2481_s17, 256  }
 0x311   : > { %3081 = vsyncadd (%p2733_p11), %s2481_s17, 4294967040  ;;  %s40_s15 = sadd.s32 1, %s3132_s15   ;;  %s5304_s24 = sld [smem:[#allocation42_spill]] }
 0x312   : > { %p5168_p1 = scmp.ge.s32.totalorder %s40_s15, 14   ;;  %s5305_s3 = sld [smem:[#allocation30_spill]] }
 0x313   : > { %s5306_s9 = sld [smem:[#allocation41_spill]]  ;;  %s5312_s0 = smov %s3088_s1 }
 0x314   : > { %s5307_s10 = sld [smem:[#allocation34_spill]]  ;;  %s5313_s1 = smov %s3092_s29 }
 0x315   : > { %s5308_s22 = sld [smem:[#allocation36_spill]]  ;;  %s5315_s30 = smov %s3100_s7 }
 0x316   : > { %s5309_s13 = sld [smem:[#allocation38_spill]]  ;;  %s5319_s11 = smov %s3128_s14 }
 0x317   : > { %s5310_s4 = sld [smem:[#allocation40_spill]]  ;;  %s5314_s29 = smov %s5304_s24 }
 0x318   : > { %s5316_s7 = smov %s5305_s3 }
 0x319   : > { %s5317_s8 = smov %s5306_s9  ;;  %s5318_s9 = smov %s3120_s12 }
 0x31a   :  { %39 = sbr.rel (!%p5168_p1) target bundleno = 24 (0x18), region = 111 }
 0x31b   : > { %s5320_s12 = smov %s5308_s22 }
 0x31d   : > { %s5321_s14 = smov %s5310_s4 }
 0x31f   :  { %2487 = vsyncpa [#allocation11], 1 }
 0x320   :  { %2489 = vsyncpa [#allocation11 + $0x1], 1 }
 0x321   :  { %2490 = vsyncpa [#allocation18], 1 }
 0x322   :  { %2492 = vsyncpa [#allocation18 + $0x1], 1 }
 0x323   :  { %2493 = vsyncpa [#allocation12], 1 }
 0x324   :  { %2495 = vsyncpa [#allocation12 + $0x1], 1 }
 0x325   :  { %2496 = vsyncpa [#allocation13], 1 }
 0x326   :  { %2498 = vsyncpa [#allocation13 + $0x1], 1 }
 0x327   :  { %2499 = vsyncpa [#allocation15], 1 }

</bundles_post_ra>
